<compile_context>
chip_gen: v6e
topology: v6e:2x2x1
jax: 0.10.0
libtpu: 0.0.40
codegen_flags: <defaults>
</compile_context>

<pallas_src>
import functools

import jax
import jax.numpy as jnp
from jax.experimental import pallas as pl
from jax.experimental.pallas import tpu as pltpu

LANES = 128          # channel lane padding
K = 5                # conv kernel size
K1_PAD = 32          # conv1 per-quadrant contraction: 25 taps + bias lane + pad
BIAS_LANE = 25       # constant-1.0 lane carrying conv1 bias
C1, C2 = 20, 50      # conv channel counts
H0 = W0 = 28         # input spatial
H1 = W1 = 24         # conv1 output spatial
P1 = 12              # pool1 output spatial
QR = P1 * P1         # 144 pooled positions per image
H2 = W2 = 8          # conv2 output spatial
P2 = 4               # pool2 output spatial
N_PAIRS = (K * K + 1) // 2   # 13 conv2 tap pairs (last pair half-zero)


# ---------------------------------------------------------------------------
# Fused kernel: conv1 + pool1 + conv2 + pool2 + fc for one batch tile.
# ---------------------------------------------------------------------------
def _fused_kernel(p1_ref, w1_ref, w2_ref, b2_ref, wf_ref, bf_ref,
                  o_ref, pool1_scr, t2_scr, pool2_scr):
    bt = pool1_scr.shape[0]

    # ---- conv1 + pool1 ------------------------------------------------------
    # Patch lanes are q*32 + tap (q = 2x2 pool quadrant); w1 is block-diagonal
    # (128, 512) so output lane group q*128..q*128+127 holds quadrant q's conv1
    # output.  Bias is folded into the constant-1.0 lane (tap 25).  The 2x2
    # max-pool is then a 128-aligned lane-group max; relu commutes with max.
    x1 = p1_ref[...].reshape(bt * QR, 4 * K1_PAD)             # (bt*144, 128) bf16
    h0 = jnp.dot(x1, w1_ref[:, :2 * LANES],
                 preferred_element_type=jnp.float32)          # quadrants 0,1
    h1 = jnp.dot(x1, w1_ref[:, 2 * LANES:],
                 preferred_element_type=jnp.float32)          # quadrants 2,3
    pooled1 = jnp.maximum(
        jnp.maximum(jnp.maximum(h0[:, :LANES], h0[:, LANES:]),
                    jnp.maximum(h1[:, :LANES], h1[:, LANES:])), 0.0)
    pool1_scr[...] = pooled1.reshape(bt, P1, P1, LANES)       # (bt,12,12,128) f32

    # ---- conv2: 13 tap-pair matmuls (K=256, bf16 operands) ------------------
    # Two independent accumulators break the 25-deep serial add chain.
    part = [None, None]
    for p in range(N_PAIRS):
        t0 = 2 * p
        t1 = min(2 * p + 1, K * K - 1)   # last pair: 2nd weight half is zero
        kh0, kw0 = divmod(t0, K)
        kh1, kw1 = divmod(t1, K)
        xs0 = pool1_scr[:, kh0:kh0 + H2, kw0:kw0 + W2, :].reshape(
            bt * H2 * W2, LANES)
        xs1 = pool1_scr[:, kh1:kh1 + H2, kw1:kw1 + W2, :].reshape(
            bt * H2 * W2, LANES)
        xs = jnp.concatenate([xs0, xs1], axis=-1).astype(jnp.bfloat16)
        contrib = jnp.dot(xs, w2_ref[p], preferred_element_type=jnp.float32)
        i = p & 1
        part[i] = contrib if part[i] is None else part[i] + contrib
    a2 = jnp.maximum(part[0] + part[1] + b2_ref[...], 0.0)    # (bt*64, 128)

    # ---- pool2 (2x2 max) ----------------------------------------------------
    # Row pair-max at value level, column pair-max via stride-2 reads of a
    # small f32 scratch (tiny traffic).
    a2 = a2.reshape(bt, P2, 2, W2, LANES)
    t2_scr[...] = jnp.maximum(a2[:, :, 0, :, :], a2[:, :, 1, :, :])
    pool2_scr[...] = jnp.maximum(
        t2_scr[:, :, pl.ds(0, P2, stride=2), :],
        t2_scr[:, :, pl.ds(1, P2, stride=2), :])              # (bt,4,4,128)

    # ---- fc: single K=2048 matmul + bias + ReLU (lane-dense output) ---------
    x_flat = jnp.concatenate(
        [pool2_scr[:, s // P2, s % P2, :] for s in range(P2 * P2)], axis=-1)
    out = jnp.dot(x_flat.astype(jnp.bfloat16), wf_ref[...],
                  preferred_element_type=jnp.float32) + bf_ref[...]
    o_ref[...] = jnp.maximum(out, 0.0)


# ---------------------------------------------------------------------------
# One-time parameter preparation (outside the jitted forward).
# ---------------------------------------------------------------------------
def prepare_params(params, feature_dim):
    fpad = pl.cdiv(feature_dim, LANES) * LANES

    # conv1: block-diagonal (128, 512) bf16 weight.  Input lane q*32 + t,
    # output lane q*128 + c; bias folded into the constant-1.0 lane (t = 25).
    w1 = params["conv1_w"].astype(jnp.float32).reshape(C1, K * K).T   # (25, 20)
    b1 = params["conv1_b"].astype(jnp.float32)
    w1_big = jnp.zeros((4 * K1_PAD, 4 * LANES), jnp.float32)
    for q in range(4):
        w1_big = w1_big.at[q * K1_PAD:q * K1_PAD + K * K,
                           q * LANES:q * LANES + C1].set(w1)
        w1_big = w1_big.at[q * K1_PAD + BIAS_LANE,
                           q * LANES:q * LANES + C1].set(b1)
    w1_big = w1_big.astype(jnp.bfloat16)

    # conv2: (tap, cin, cout), taps fused in pairs along the contraction dim.
    w2 = jnp.transpose(params["conv2_w"].astype(jnp.float32),
                       (2, 3, 1, 0)).reshape(K * K, C1, C2)
    w2p = jnp.zeros((K * K, LANES, LANES), jnp.float32).at[:, :C1, :C2].set(w2)
    w2pairs = jnp.zeros((N_PAIRS, 2 * LANES, LANES), jnp.float32)
    w2pairs = w2pairs.at[:, :LANES, :].set(w2p[0::2])             # taps 0,2,...,24
    w2pairs = w2pairs.at[:K * K // 2, LANES:, :].set(w2p[1::2])   # taps 1,3,...,23
    w2pairs = w2pairs.astype(jnp.bfloat16)
    b2p = jnp.zeros((1, LANES), jnp.float32).at[0, :C2].set(
        params["conv2_b"].astype(jnp.float32))

    # fc: torch flattens (c, h, w) as c*16 + h*4 + w; kernel x_flat is
    # (s = h*4+w) major, channel minor -> flat weight row = s*128 + c.
    wf = params["fc_w"].astype(jnp.float32).reshape(feature_dim, C2, P2 * P2)
    wf = jnp.transpose(wf, (2, 1, 0))                              # (16, 50, F)
    wfp = jnp.zeros((P2 * P2, LANES, fpad), jnp.float32).at[
        :, :C2, :feature_dim].set(wf)
    wfp = wfp.reshape(P2 * P2 * LANES, fpad).astype(jnp.bfloat16)  # (2048, fpad)
    bfp = jnp.zeros((1, fpad), jnp.float32).at[0, :feature_dim].set(
        params["fc_b"].astype(jnp.float32))

    return {"w1": w1_big, "w2": w2pairs, "b2": b2p, "wf": wfp, "bf": bfp}


# ---------------------------------------------------------------------------
# Forward pass.
# ---------------------------------------------------------------------------
@functools.partial(jax.jit, static_argnames=("feature_dim", "batch_tile"))
def conv_feature_extractor(x_nchw, pp, *, feature_dim, batch_tile=16):
    n = x_nchw.shape[0]
    x = x_nchw.reshape(n, H0, W0).astype(jnp.float32)   # Cin == 1

    # im2col of the 1-channel raw input (XLA glue), quadrant-major lane packing:
    # conv1 output (oh, ow) = (2i+di, 2j+dj) -> row i*12+j, lane (2di+dj)*32+tap.
    cols = [x[:, kh:kh + H1, kw:kw + W1] for kh in range(K) for kw in range(K)]
    cols.append(jnp.ones_like(cols[0]))                          # bias lane (1.0)
    patches = jnp.stack(cols, axis=-1)                           # (n, 24, 24, 26)
    patches = jnp.pad(patches,
                      ((0, 0), (0, 0), (0, 0), (0, K1_PAD - (K * K + 1))))
    patches = patches.reshape(n, P1, 2, P1, 2, K1_PAD)           # [n,i,di,j,dj,t]
    patches = patches.transpose(0, 1, 3, 2, 4, 5)                # [n,i,j,di,dj,t]
    patches = patches.reshape(n, QR, 4 * K1_PAD).astype(jnp.bfloat16)

    bt = min(batch_tile, n)
    n_pad = pl.cdiv(n, bt) * bt
    if n_pad != n:
        patches = jnp.pad(patches, ((0, n_pad - n), (0, 0), (0, 0)))

    fpad = pp["wf"].shape[-1]

    out = pl.pallas_call(
        _fused_kernel,
        out_shape=jax.ShapeDtypeStruct((n_pad, fpad), jnp.float32),
        grid=(n_pad // bt,),
        in_specs=[
            pl.BlockSpec((bt, QR, 4 * K1_PAD), lambda i: (i, 0, 0)),        # patches
            pl.BlockSpec((4 * K1_PAD, 4 * LANES), lambda i: (0, 0)),        # w1 (resident)
            pl.BlockSpec((N_PAIRS, 2 * LANES, LANES), lambda i: (0, 0, 0)), # w2 pairs
            pl.BlockSpec((1, LANES), lambda i: (0, 0)),                     # b2
            pl.BlockSpec((P2 * P2 * LANES, fpad), lambda i: (0, 0)),        # wf flat
            pl.BlockSpec((1, fpad), lambda i: (0, 0)),                      # bf
        ],
        out_specs=pl.BlockSpec((bt, fpad), lambda i: (i, 0)),
        scratch_shapes=[
            pltpu.VMEM((bt, P1, P1, LANES), jnp.float32),   # pooled conv1
            pltpu.VMEM((bt, P2, W2, LANES), jnp.float32),   # pool2 row stage
            pltpu.VMEM((bt, P2, P2, LANES), jnp.float32),   # pooled conv2
        ],
        compiler_params=pltpu.CompilerParams(
            dimension_semantics=("parallel",),
            vmem_limit_bytes=32 * 1024 * 1024),
    )(patches, pp["w1"], pp["w2"], pp["b2"], pp["wf"], pp["bf"])

    return out[:n, :feature_dim]


# ---------------------------------------------------------------------------
# Pure-XLA reference (mirrors the PyTorch module) for a correctness check.
# ---------------------------------------------------------------------------
def _reference_forward(x, params):
    hp = jax.lax.Precision.HIGHEST
    dn = ("NCHW", "OIHW", "NCHW")
    y = jax.lax.conv_general_dilated(x, params["conv1_w"], (1, 1), "VALID",
                                     dimension_numbers=dn, precision=hp)
    y = jax.nn.relu(y + params["conv1_b"][None, :, None, None])
    y = jax.lax.reduce_window(y, -jnp.inf, jax.lax.max,
                              (1, 1, 2, 2), (1, 1, 2, 2), "VALID")
    y = jax.lax.conv_general_dilated(y, params["conv2_w"], (1, 1), "VALID",
                                     dimension_numbers=dn, precision=hp)
    y = jax.nn.relu(y + params["conv2_b"][None, :, None, None])
    y = jax.lax.reduce_window(y, -jnp.inf, jax.lax.max,
                              (1, 1, 2, 2), (1, 1, 2, 2), "VALID")
    y = y.reshape(y.shape[0], -1)
    y = jnp.dot(y, params["fc_w"].T, precision=hp) + params["fc_b"]
    return jax.nn.relu(y)


if __name__ == "__main__":
    feature_dim = 32
    key = jax.random.PRNGKey(0)
    k_x, k1, k2, k3, k4, k5, k6 = jax.random.split(key, 7)

    # Small batch; 28x28x1 input is dictated by the module's fc layer.
    x = jax.random.normal(k_x, (2, 1, 28, 28), jnp.float32)
    params = {
        "conv1_w": jax.random.normal(k1, (20, 1, 5, 5), jnp.float32) * 0.1,
        "conv1_b": jax.random.normal(k2, (20,), jnp.float32) * 0.1,
        "conv2_w": jax.random.normal(k3, (50, 20, 5, 5), jnp.float32) * 0.05,
        "conv2_b": jax.random.normal(k4, (50,), jnp.float32) * 0.05,
        "fc_w": jax.random.normal(k5, (feature_dim, 50 * 4 * 4), jnp.float32) * 0.02,
        "fc_b": jax.random.normal(k6, (feature_dim,), jnp.float32) * 0.02,
    }

    pp = prepare_params(params, feature_dim)          # one-time weight prep
    out = conv_feature_extractor(x, pp, feature_dim=feature_dim)
    out = jax.block_until_ready(out)

    assert out.shape == (2, feature_dim)
    assert out.dtype == jnp.float32
    assert bool(jnp.all(out >= 0.0))                  # final ReLU

    ref = jax.block_until_ready(_reference_forward(x, params))
    max_err = float(jnp.max(jnp.abs(out - ref)))
    assert max_err < 5e-2, f"mismatch vs reference: {max_err}"

    print("KERNEL_OK")
</pallas_src>

<mosaic_0001>
module attributes {stable_mosaic.version = 11 : i64} {
  func.func @_fused_kernel(%arg0: i32, %arg1: memref<2x144x128xbf16, #tpu.memory_space<vmem>>, %arg2: memref<128x512xbf16, #tpu.memory_space<vmem>>, %arg3: memref<13x256x128xbf16, #tpu.memory_space<vmem>>, %arg4: memref<1x128xf32, #tpu.memory_space<vmem>>, %arg5: memref<2048x128xbf16, #tpu.memory_space<vmem>>, %arg6: memref<1x128xf32, #tpu.memory_space<vmem>>, %arg7: memref<2x128xf32, #tpu.memory_space<vmem>>, %arg8: memref<2x12x12x128xf32, #tpu.memory_space<vmem>>, %arg9: memref<2x4x8x128xf32, #tpu.memory_space<vmem>>, %arg10: memref<2x4x4x128xf32, #tpu.memory_space<vmem>>) attributes {dimension_semantics = [#tpu.dimension_semantics<parallel>], iteration_bounds = array<i64: 1>, scalar_prefetch = 0 : i64, scratch_operands = 3 : i64, tpu.core_type = #tpu.core_type<tc>, window_params = [{transform_indices = @transform_0, window_bounds = array<i64: 2, 144, 128>}, {pipeline_mode = #tpu.pipeline_mode<synchronous>, transform_indices = @transform_1, window_bounds = array<i64: 128, 512>}, {pipeline_mode = #tpu.pipeline_mode<synchronous>, transform_indices = @transform_2, window_bounds = array<i64: 13, 256, 128>}, {pipeline_mode = #tpu.pipeline_mode<synchronous>, transform_indices = @transform_3, window_bounds = array<i64: 1, 128>}, {pipeline_mode = #tpu.pipeline_mode<synchronous>, transform_indices = @transform_4, window_bounds = array<i64: 2048, 128>}, {pipeline_mode = #tpu.pipeline_mode<synchronous>, transform_indices = @transform_5, window_bounds = array<i64: 1, 128>}, {transform_indices = @transform_6, window_bounds = array<i64: 2, 128>}]} {
    %c0 = arith.constant 0 : index
    %c0_0 = arith.constant 0 : index
    %c0_1 = arith.constant 0 : index
    %0 = vector.load %arg1[%c0, %c0_0, %c0_1] : memref<2x144x128xbf16, #tpu.memory_space<vmem>>, vector<2x144x128xbf16>
    %1 = vector.shape_cast %0 : vector<2x144x128xbf16> to vector<288x128xbf16>
    %c0_2 = arith.constant 0 : index
    %c0_3 = arith.constant 0 : index
    %2 = vector.load %arg2[%c0_2, %c0_3] : memref<128x512xbf16, #tpu.memory_space<vmem>>, vector<128x256xbf16>
    %cst = arith.constant dense<0.000000e+00> : vector<288x256xf32>
    %3 = tpu.matmul %1, %2, %cst {dimension_numbers = #tpu.dot_dimension_numbers<[1], [0], [0], [1], [0, 0, 1, 1], [], []>} : vector<288x128xbf16>, vector<128x256xbf16>, vector<288x256xf32> -> vector<288x256xf32>
    %c0_4 = arith.constant 0 : index
    %c256 = arith.constant 256 : index
    %4 = vector.load %arg2[%c0_4, %c256] : memref<128x512xbf16, #tpu.memory_space<vmem>>, vector<128x256xbf16>
    %cst_5 = arith.constant dense<0.000000e+00> : vector<288x256xf32>
    %5 = tpu.matmul %1, %4, %cst_5 {dimension_numbers = #tpu.dot_dimension_numbers<[1], [0], [0], [1], [0, 0, 1, 1], [], []>} : vector<288x128xbf16>, vector<128x256xbf16>, vector<288x256xf32> -> vector<288x256xf32>
    %6 = vector.extract_strided_slice %3 {offsets = [0, 0], sizes = [288, 128], strides = [1, 1]} : vector<288x256xf32> to vector<288x128xf32>
    %7 = vector.extract_strided_slice %3 {offsets = [0, 128], sizes = [288, 128], strides = [1, 1]} : vector<288x256xf32> to vector<288x128xf32>
    %8 = arith.maximumf %6, %7 : vector<288x128xf32>
    %9 = vector.extract_strided_slice %5 {offsets = [0, 0], sizes = [288, 128], strides = [1, 1]} : vector<288x256xf32> to vector<288x128xf32>
    %10 = vector.extract_strided_slice %5 {offsets = [0, 128], sizes = [288, 128], strides = [1, 1]} : vector<288x256xf32> to vector<288x128xf32>
    %11 = arith.maximumf %9, %10 : vector<288x128xf32>
    %12 = arith.maximumf %8, %11 : vector<288x128xf32>
    %cst_6 = arith.constant 0.000000e+00 : f32
    %13 = vector.broadcast %cst_6 : f32 to vector<288x128xf32>
    %14 = arith.maximumf %12, %13 : vector<288x128xf32>
    %15 = vector.shape_cast %14 : vector<288x128xf32> to vector<2x12x12x128xf32>
    %c0_7 = arith.constant 0 : index
    %c0_8 = arith.constant 0 : index
    %c0_9 = arith.constant 0 : index
    %c0_10 = arith.constant 0 : index
    %16 = vector.load %arg8[%c0_7, %c0_8, %c0_9, %c0_10] : memref<2x12x12x128xf32, #tpu.memory_space<vmem>>, vector<2x12x12x128xf32>
    tpu.vector_store %arg8[%c0_7, %c0_8, %c0_9, %c0_10], %15 {strides = array<i32>} : memref<2x12x12x128xf32, #tpu.memory_space<vmem>>, vector<2x12x12x128xf32>,
    %c0_11 = arith.constant 0 : index
    %c0_12 = arith.constant 0 : index
    %c0_13 = arith.constant 0 : index
    %c0_14 = arith.constant 0 : index
    %17 = vector.load %arg8[%c0_11, %c0_12, %c0_13, %c0_14] : memref<2x12x12x128xf32, #tpu.memory_space<vmem>>, vector<2x8x8x128xf32>
    %18 = vector.shape_cast %17 : vector<2x8x8x128xf32> to vector<128x128xf32>
    %c0_15 = arith.constant 0 : index
    %c0_16 = arith.constant 0 : index
    %c1 = arith.constant 1 : index
    %c0_17 = arith.constant 0 : index
    %19 = vector.load %arg8[%c0_15, %c0_16, %c1, %c0_17] : memref<2x12x12x128xf32, #tpu.memory_space<vmem>>, vector<2x8x8x128xf32>
    %20 = vector.shape_cast %19 : vector<2x8x8x128xf32> to vector<128x128xf32>
    %21 = tpu.concatenate %18, %20 in 1 : vector<128x128xf32>, vector<128x128xf32> -> vector<128x256xf32>
    %22 = arith.truncf %21 : vector<128x256xf32> to vector<128x256xbf16>
    %c0_18 = arith.constant 0 : index
    %c0_19 = arith.constant 0 : index
    %c0_20 = arith.constant 0 : index
    %23 = vector.load %arg3[%c0_18, %c0_19, %c0_20] : memref<13x256x128xbf16, #tpu.memory_space<vmem>>, vector<1x256x128xbf16>
    %24 = vector.shape_cast %23 : vector<1x256x128xbf16> to vector<256x128xbf16>
    %cst_21 = arith.constant dense<0.000000e+00> : vector<128x128xf32>
    %25 = tpu.matmul %22, %24, %cst_21 {dimension_numbers = #tpu.dot_dimension_numbers<[1], [0], [0], [1], [0, 0, 1, 1], [], []>} : vector<128x256xbf16>, vector<256x128xbf16>, vector<128x128xf32> -> vector<128x128xf32>
    %c0_22 = arith.constant 0 : index
    %c0_23 = arith.constant 0 : index
    %c2 = arith.constant 2 : index
    %c0_24 = arith.constant 0 : index
    %26 = vector.load %arg8[%c0_22, %c0_23, %c2, %c0_24] : memref<2x12x12x128xf32, #tpu.memory_space<vmem>>, vector<2x8x8x128xf32>
    %27 = vector.shape_cast %26 : vector<2x8x8x128xf32> to vector<128x128xf32>
    %c0_25 = arith.constant 0 : index
    %c0_26 = arith.constant 0 : index
    %c3 = arith.constant 3 : index
    %c0_27 = arith.constant 0 : index
    %28 = vector.load %arg8[%c0_25, %c0_26, %c3, %c0_27] : memref<2x12x12x128xf32, #tpu.memory_space<vmem>>, vector<2x8x8x128xf32>
    %29 = vector.shape_cast %28 : vector<2x8x8x128xf32> to vector<128x128xf32>
    %30 = tpu.concatenate %27, %29 in 1 : vector<128x128xf32>, vector<128x128xf32> -> vector<128x256xf32>
    %31 = arith.truncf %30 : vector<128x256xf32> to vector<128x256xbf16>
    %c1_28 = arith.constant 1 : index
    %c0_29 = arith.constant 0 : index
    %c0_30 = arith.constant 0 : index
    %32 = vector.load %arg3[%c1_28, %c0_29, %c0_30] : memref<13x256x128xbf16, #tpu.memory_space<vmem>>, vector<1x256x128xbf16>
    %33 = vector.shape_cast %32 : vector<1x256x128xbf16> to vector<256x128xbf16>
    %cst_31 = arith.constant dense<0.000000e+00> : vector<128x128xf32>
    %34 = tpu.matmul %31, %33, %cst_31 {dimension_numbers = #tpu.dot_dimension_numbers<[1], [0], [0], [1], [0, 0, 1, 1], [], []>} : vector<128x256xbf16>, vector<256x128xbf16>, vector<128x128xf32> -> vector<128x128xf32>
    %c0_32 = arith.constant 0 : index
    %c0_33 = arith.constant 0 : index
    %c4 = arith.constant 4 : index
    %c0_34 = arith.constant 0 : index
    %35 = vector.load %arg8[%c0_32, %c0_33, %c4, %c0_34] : memref<2x12x12x128xf32, #tpu.memory_space<vmem>>, vector<2x8x8x128xf32>
    %36 = vector.shape_cast %35 : vector<2x8x8x128xf32> to vector<128x128xf32>
    %c0_35 = arith.constant 0 : index
    %c1_36 = arith.constant 1 : index
    %c0_37 = arith.constant 0 : index
    %c0_38 = arith.constant 0 : index
    %37 = vector.load %arg8[%c0_35, %c1_36, %c0_37, %c0_38] : memref<2x12x12x128xf32, #tpu.memory_space<vmem>>, vector<2x8x8x128xf32>
    %38 = vector.shape_cast %37 : vector<2x8x8x128xf32> to vector<128x128xf32>
    %39 = tpu.concatenate %36, %38 in 1 : vector<128x128xf32>, vector<128x128xf32> -> vector<128x256xf32>
    %40 = arith.truncf %39 : vector<128x256xf32> to vector<128x256xbf16>
    %c2_39 = arith.constant 2 : index
    %c0_40 = arith.constant 0 : index
    %c0_41 = arith.constant 0 : index
    %41 = vector.load %arg3[%c2_39, %c0_40, %c0_41] : memref<13x256x128xbf16, #tpu.memory_space<vmem>>, vector<1x256x128xbf16>
    %42 = vector.shape_cast %41 : vector<1x256x128xbf16> to vector<256x128xbf16>
    %cst_42 = arith.constant dense<0.000000e+00> : vector<128x128xf32>
    %43 = tpu.matmul %40, %42, %cst_42 {dimension_numbers = #tpu.dot_dimension_numbers<[1], [0], [0], [1], [0, 0, 1, 1], [], []>} : vector<128x256xbf16>, vector<256x128xbf16>, vector<128x128xf32> -> vector<128x128xf32>
    %44 = arith.addf %25, %43 : vector<128x128xf32>
    %c0_43 = arith.constant 0 : index
    %c1_44 = arith.constant 1 : index
    %c1_45 = arith.constant 1 : index
    %c0_46 = arith.constant 0 : index
    %45 = vector.load %arg8[%c0_43, %c1_44, %c1_45, %c0_46] : memref<2x12x12x128xf32, #tpu.memory_space<vmem>>, vector<2x8x8x128xf32>
    %46 = vector.shape_cast %45 : vector<2x8x8x128xf32> to vector<128x128xf32>
    %c0_47 = arith.constant 0 : index
    %c1_48 = arith.constant 1 : index
    %c2_49 = arith.constant 2 : index
    %c0_50 = arith.constant 0 : index
    %47 = vector.load %arg8[%c0_47, %c1_48, %c2_49, %c0_50] : memref<2x12x12x128xf32, #tpu.memory_space<vmem>>, vector<2x8x8x128xf32>
    %48 = vector.shape_cast %47 : vector<2x8x8x128xf32> to vector<128x128xf32>
    %49 = tpu.concatenate %46, %48 in 1 : vector<128x128xf32>, vector<128x128xf32> -> vector<128x256xf32>
    %50 = arith.truncf %49 : vector<128x256xf32> to vector<128x256xbf16>
    %c3_51 = arith.constant 3 : index
    %c0_52 = arith.constant 0 : index
    %c0_53 = arith.constant 0 : index
    %51 = vector.load %arg3[%c3_51, %c0_52, %c0_53] : memref<13x256x128xbf16, #tpu.memory_space<vmem>>, vector<1x256x128xbf16>
    %52 = vector.shape_cast %51 : vector<1x256x128xbf16> to vector<256x128xbf16>
    %cst_54 = arith.constant dense<0.000000e+00> : vector<128x128xf32>
    %53 = tpu.matmul %50, %52, %cst_54 {dimension_numbers = #tpu.dot_dimension_numbers<[1], [0], [0], [1], [0, 0, 1, 1], [], []>} : vector<128x256xbf16>, vector<256x128xbf16>, vector<128x128xf32> -> vector<128x128xf32>
    %54 = arith.addf %34, %53 : vector<128x128xf32>
    %c0_55 = arith.constant 0 : index
    %c1_56 = arith.constant 1 : index
    %c3_57 = arith.constant 3 : index
    %c0_58 = arith.constant 0 : index
    %55 = vector.load %arg8[%c0_55, %c1_56, %c3_57, %c0_58] : memref<2x12x12x128xf32, #tpu.memory_space<vmem>>, vector<2x8x8x128xf32>
    %56 = vector.shape_cast %55 : vector<2x8x8x128xf32> to vector<128x128xf32>
    %c0_59 = arith.constant 0 : index
    %c1_60 = arith.constant 1 : index
    %c4_61 = arith.constant 4 : index
    %c0_62 = arith.constant 0 : index
    %57 = vector.load %arg8[%c0_59, %c1_60, %c4_61, %c0_62] : memref<2x12x12x128xf32, #tpu.memory_space<vmem>>, vector<2x8x8x128xf32>
    %58 = vector.shape_cast %57 : vector<2x8x8x128xf32> to vector<128x128xf32>
    %59 = tpu.concatenate %56, %58 in 1 : vector<128x128xf32>, vector<128x128xf32> -> vector<128x256xf32>
    %60 = arith.truncf %59 : vector<128x256xf32> to vector<128x256xbf16>
    %c4_63 = arith.constant 4 : index
    %c0_64 = arith.constant 0 : index
    %c0_65 = arith.constant 0 : index
    %61 = vector.load %arg3[%c4_63, %c0_64, %c0_65] : memref<13x256x128xbf16, #tpu.memory_space<vmem>>, vector<1x256x128xbf16>
    %62 = vector.shape_cast %61 : vector<1x256x128xbf16> to vector<256x128xbf16>
    %cst_66 = arith.constant dense<0.000000e+00> : vector<128x128xf32>
    %63 = tpu.matmul %60, %62, %cst_66 {dimension_numbers = #tpu.dot_dimension_numbers<[1], [0], [0], [1], [0, 0, 1, 1], [], []>} : vector<128x256xbf16>, vector<256x128xbf16>, vector<128x128xf32> -> vector<128x128xf32>
    %64 = arith.addf %44, %63 : vector<128x128xf32>
    %c0_67 = arith.constant 0 : index
    %c2_68 = arith.constant 2 : index
    %c0_69 = arith.constant 0 : index
    %c0_70 = arith.constant 0 : index
    %65 = vector.load %arg8[%c0_67, %c2_68, %c0_69, %c0_70] : memref<2x12x12x128xf32, #tpu.memory_space<vmem>>, vector<2x8x8x128xf32>
    %66 = vector.shape_cast %65 : vector<2x8x8x128xf32> to vector<128x128xf32>
    %c0_71 = arith.constant 0 : index
    %c2_72 = arith.constant 2 : index
    %c1_73 = arith.constant 1 : index
    %c0_74 = arith.constant 0 : index
    %67 = vector.load %arg8[%c0_71, %c2_72, %c1_73, %c0_74] : memref<2x12x12x128xf32, #tpu.memory_space<vmem>>, vector<2x8x8x128xf32>
    %68 = vector.shape_cast %67 : vector<2x8x8x128xf32> to vector<128x128xf32>
    %69 = tpu.concatenate %66, %68 in 1 : vector<128x128xf32>, vector<128x128xf32> -> vector<128x256xf32>
    %70 = arith.truncf %69 : vector<128x256xf32> to vector<128x256xbf16>
    %c5 = arith.constant 5 : index
    %c0_75 = arith.constant 0 : index
    %c0_76 = arith.constant 0 : index
    %71 = vector.load %arg3[%c5, %c0_75, %c0_76] : memref<13x256x128xbf16, #tpu.memory_space<vmem>>, vector<1x256x128xbf16>
    %72 = vector.shape_cast %71 : vector<1x256x128xbf16> to vector<256x128xbf16>
    %cst_77 = arith.constant dense<0.000000e+00> : vector<128x128xf32>
    %73 = tpu.matmul %70, %72, %cst_77 {dimension_numbers = #tpu.dot_dimension_numbers<[1], [0], [0], [1], [0, 0, 1, 1], [], []>} : vector<128x256xbf16>, vector<256x128xbf16>, vector<128x128xf32> -> vector<128x128xf32>
    %74 = arith.addf %54, %73 : vector<128x128xf32>
    %c0_78 = arith.constant 0 : index
    %c2_79 = arith.constant 2 : index
    %c2_80 = arith.constant 2 : index
    %c0_81 = arith.constant 0 : index
    %75 = vector.load %arg8[%c0_78, %c2_79, %c2_80, %c0_81] : memref<2x12x12x128xf32, #tpu.memory_space<vmem>>, vector<2x8x8x128xf32>
    %76 = vector.shape_cast %75 : vector<2x8x8x128xf32> to vector<128x128xf32>
    %c0_82 = arith.constant 0 : index
    %c2_83 = arith.constant 2 : index
    %c3_84 = arith.constant 3 : index
    %c0_85 = arith.constant 0 : index
    %77 = vector.load %arg8[%c0_82, %c2_83, %c3_84, %c0_85] : memref<2x12x12x128xf32, #tpu.memory_space<vmem>>, vector<2x8x8x128xf32>
    %78 = vector.shape_cast %77 : vector<2x8x8x128xf32> to vector<128x128xf32>
    %79 = tpu.concatenate %76, %78 in 1 : vector<128x128xf32>, vector<128x128xf32> -> vector<128x256xf32>
    %80 = arith.truncf %79 : vector<128x256xf32> to vector<128x256xbf16>
    %c6 = arith.constant 6 : index
    %c0_86 = arith.constant 0 : index
    %c0_87 = arith.constant 0 : index
    %81 = vector.load %arg3[%c6, %c0_86, %c0_87] : memref<13x256x128xbf16, #tpu.memory_space<vmem>>, vector<1x256x128xbf16>
    %82 = vector.shape_cast %81 : vector<1x256x128xbf16> to vector<256x128xbf16>
    %cst_88 = arith.constant dense<0.000000e+00> : vector<128x128xf32>
    %83 = tpu.matmul %80, %82, %cst_88 {dimension_numbers = #tpu.dot_dimension_numbers<[1], [0], [0], [1], [0, 0, 1, 1], [], []>} : vector<128x256xbf16>, vector<256x128xbf16>, vector<128x128xf32> -> vector<128x128xf32>
    %84 = arith.addf %64, %83 : vector<128x128xf32>
    %c0_89 = arith.constant 0 : index
    %c2_90 = arith.constant 2 : index
    %c4_91 = arith.constant 4 : index
    %c0_92 = arith.constant 0 : index
    %85 = vector.load %arg8[%c0_89, %c2_90, %c4_91, %c0_92] : memref<2x12x12x128xf32, #tpu.memory_space<vmem>>, vector<2x8x8x128xf32>
    %86 = vector.shape_cast %85 : vector<2x8x8x128xf32> to vector<128x128xf32>
    %c0_93 = arith.constant 0 : index
    %c3_94 = arith.constant 3 : index
    %c0_95 = arith.constant 0 : index
    %c0_96 = arith.constant 0 : index
    %87 = vector.load %arg8[%c0_93, %c3_94, %c0_95, %c0_96] : memref<2x12x12x128xf32, #tpu.memory_space<vmem>>, vector<2x8x8x128xf32>
    %88 = vector.shape_cast %87 : vector<2x8x8x128xf32> to vector<128x128xf32>
    %89 = tpu.concatenate %86, %88 in 1 : vector<128x128xf32>, vector<128x128xf32> -> vector<128x256xf32>
    %90 = arith.truncf %89 : vector<128x256xf32> to vector<128x256xbf16>
    %c7 = arith.constant 7 : index
    %c0_97 = arith.constant 0 : index
    %c0_98 = arith.constant 0 : index
    %91 = vector.load %arg3[%c7, %c0_97, %c0_98] : memref<13x256x128xbf16, #tpu.memory_space<vmem>>, vector<1x256x128xbf16>
    %92 = vector.shape_cast %91 : vector<1x256x128xbf16> to vector<256x128xbf16>
    %cst_99 = arith.constant dense<0.000000e+00> : vector<128x128xf32>
    %93 = tpu.matmul %90, %92, %cst_99 {dimension_numbers = #tpu.dot_dimension_numbers<[1], [0], [0], [1], [0, 0, 1, 1], [], []>} : vector<128x256xbf16>, vector<256x128xbf16>, vector<128x128xf32> -> vector<128x128xf32>
    %94 = arith.addf %74, %93 : vector<128x128xf32>
    %c0_100 = arith.constant 0 : index
    %c3_101 = arith.constant 3 : index
    %c1_102 = arith.constant 1 : index
    %c0_103 = arith.constant 0 : index
    %95 = vector.load %arg8[%c0_100, %c3_101, %c1_102, %c0_103] : memref<2x12x12x128xf32, #tpu.memory_space<vmem>>, vector<2x8x8x128xf32>
    %96 = vector.shape_cast %95 : vector<2x8x8x128xf32> to vector<128x128xf32>
    %c0_104 = arith.constant 0 : index
    %c3_105 = arith.constant 3 : index
    %c2_106 = arith.constant 2 : index
    %c0_107 = arith.constant 0 : index
    %97 = vector.load %arg8[%c0_104, %c3_105, %c2_106, %c0_107] : memref<2x12x12x128xf32, #tpu.memory_space<vmem>>, vector<2x8x8x128xf32>
    %98 = vector.shape_cast %97 : vector<2x8x8x128xf32> to vector<128x128xf32>
    %99 = tpu.concatenate %96, %98 in 1 : vector<128x128xf32>, vector<128x128xf32> -> vector<128x256xf32>
    %100 = arith.truncf %99 : vector<128x256xf32> to vector<128x256xbf16>
    %c8 = arith.constant 8 : index
    %c0_108 = arith.constant 0 : index
    %c0_109 = arith.constant 0 : index
    %101 = vector.load %arg3[%c8, %c0_108, %c0_109] : memref<13x256x128xbf16, #tpu.memory_space<vmem>>, vector<1x256x128xbf16>
    %102 = vector.shape_cast %101 : vector<1x256x128xbf16> to vector<256x128xbf16>
    %cst_110 = arith.constant dense<0.000000e+00> : vector<128x128xf32>
    %103 = tpu.matmul %100, %102, %cst_110 {dimension_numbers = #tpu.dot_dimension_numbers<[1], [0], [0], [1], [0, 0, 1, 1], [], []>} : vector<128x256xbf16>, vector<256x128xbf16>, vector<128x128xf32> -> vector<128x128xf32>
    %104 = arith.addf %84, %103 : vector<128x128xf32>
    %c0_111 = arith.constant 0 : index
    %c3_112 = arith.constant 3 : index
    %c3_113 = arith.constant 3 : index
    %c0_114 = arith.constant 0 : index
    %105 = vector.load %arg8[%c0_111, %c3_112, %c3_113, %c0_114] : memref<2x12x12x128xf32, #tpu.memory_space<vmem>>, vector<2x8x8x128xf32>
    %106 = vector.shape_cast %105 : vector<2x8x8x128xf32> to vector<128x128xf32>
    %c0_115 = arith.constant 0 : index
    %c3_116 = arith.constant 3 : index
    %c4_117 = arith.constant 4 : index
    %c0_118 = arith.constant 0 : index
    %107 = vector.load %arg8[%c0_115, %c3_116, %c4_117, %c0_118] : memref<2x12x12x128xf32, #tpu.memory_space<vmem>>, vector<2x8x8x128xf32>
    %108 = vector.shape_cast %107 : vector<2x8x8x128xf32> to vector<128x128xf32>
    %109 = tpu.concatenate %106, %108 in 1 : vector<128x128xf32>, vector<128x128xf32> -> vector<128x256xf32>
    %110 = arith.truncf %109 : vector<128x256xf32> to vector<128x256xbf16>
    %c9 = arith.constant 9 : index
    %c0_119 = arith.constant 0 : index
    %c0_120 = arith.constant 0 : index
    %111 = vector.load %arg3[%c9, %c0_119, %c0_120] : memref<13x256x128xbf16, #tpu.memory_space<vmem>>, vector<1x256x128xbf16>
    %112 = vector.shape_cast %111 : vector<1x256x128xbf16> to vector<256x128xbf16>
    %cst_121 = arith.constant dense<0.000000e+00> : vector<128x128xf32>
    %113 = tpu.matmul %110, %112, %cst_121 {dimension_numbers = #tpu.dot_dimension_numbers<[1], [0], [0], [1], [0, 0, 1, 1], [], []>} : vector<128x256xbf16>, vector<256x128xbf16>, vector<128x128xf32> -> vector<128x128xf32>
    %114 = arith.addf %94, %113 : vector<128x128xf32>
    %c0_122 = arith.constant 0 : index
    %c4_123 = arith.constant 4 : index
    %c0_124 = arith.constant 0 : index
    %c0_125 = arith.constant 0 : index
    %115 = vector.load %arg8[%c0_122, %c4_123, %c0_124, %c0_125] : memref<2x12x12x128xf32, #tpu.memory_space<vmem>>, vector<2x8x8x128xf32>
    %116 = vector.shape_cast %115 : vector<2x8x8x128xf32> to vector<128x128xf32>
    %c0_126 = arith.constant 0 : index
    %c4_127 = arith.constant 4 : index
    %c1_128 = arith.constant 1 : index
    %c0_129 = arith.constant 0 : index
    %117 = vector.load %arg8[%c0_126, %c4_127, %c1_128, %c0_129] : memref<2x12x12x128xf32, #tpu.memory_space<vmem>>, vector<2x8x8x128xf32>
    %118 = vector.shape_cast %117 : vector<2x8x8x128xf32> to vector<128x128xf32>
    %119 = tpu.concatenate %116, %118 in 1 : vector<128x128xf32>, vector<128x128xf32> -> vector<128x256xf32>
    %120 = arith.truncf %119 : vector<128x256xf32> to vector<128x256xbf16>
    %c10 = arith.constant 10 : index
    %c0_130 = arith.constant 0 : index
    %c0_131 = arith.constant 0 : index
    %121 = vector.load %arg3[%c10, %c0_130, %c0_131] : memref<13x256x128xbf16, #tpu.memory_space<vmem>>, vector<1x256x128xbf16>
    %122 = vector.shape_cast %121 : vector<1x256x128xbf16> to vector<256x128xbf16>
    %cst_132 = arith.constant dense<0.000000e+00> : vector<128x128xf32>
    %123 = tpu.matmul %120, %122, %cst_132 {dimension_numbers = #tpu.dot_dimension_numbers<[1], [0], [0], [1], [0, 0, 1, 1], [], []>} : vector<128x256xbf16>, vector<256x128xbf16>, vector<128x128xf32> -> vector<128x128xf32>
    %124 = arith.addf %104, %123 : vector<128x128xf32>
    %c0_133 = arith.constant 0 : index
    %c4_134 = arith.constant 4 : index
    %c2_135 = arith.constant 2 : index
    %c0_136 = arith.constant 0 : index
    %125 = vector.load %arg8[%c0_133, %c4_134, %c2_135, %c0_136] : memref<2x12x12x128xf32, #tpu.memory_space<vmem>>, vector<2x8x8x128xf32>
    %126 = vector.shape_cast %125 : vector<2x8x8x128xf32> to vector<128x128xf32>
    %c0_137 = arith.constant 0 : index
    %c4_138 = arith.constant 4 : index
    %c3_139 = arith.constant 3 : index
    %c0_140 = arith.constant 0 : index
    %127 = vector.load %arg8[%c0_137, %c4_138, %c3_139, %c0_140] : memref<2x12x12x128xf32, #tpu.memory_space<vmem>>, vector<2x8x8x128xf32>
    %128 = vector.shape_cast %127 : vector<2x8x8x128xf32> to vector<128x128xf32>
    %129 = tpu.concatenate %126, %128 in 1 : vector<128x128xf32>, vector<128x128xf32> -> vector<128x256xf32>
    %130 = arith.truncf %129 : vector<128x256xf32> to vector<128x256xbf16>
    %c11 = arith.constant 11 : index
    %c0_141 = arith.constant 0 : index
    %c0_142 = arith.constant 0 : index
    %131 = vector.load %arg3[%c11, %c0_141, %c0_142] : memref<13x256x128xbf16, #tpu.memory_space<vmem>>, vector<1x256x128xbf16>
    %132 = vector.shape_cast %131 : vector<1x256x128xbf16> to vector<256x128xbf16>
    %cst_143 = arith.constant dense<0.000000e+00> : vector<128x128xf32>
    %133 = tpu.matmul %130, %132, %cst_143 {dimension_numbers = #tpu.dot_dimension_numbers<[1], [0], [0], [1], [0, 0, 1, 1], [], []>} : vector<128x256xbf16>, vector<256x128xbf16>, vector<128x128xf32> -> vector<128x128xf32>
    %134 = arith.addf %114, %133 : vector<128x128xf32>
    %c0_144 = arith.constant 0 : index
    %c4_145 = arith.constant 4 : index
    %c4_146 = arith.constant 4 : index
    %c0_147 = arith.constant 0 : index
    %135 = vector.load %arg8[%c0_144, %c4_145, %c4_146, %c0_147] : memref<2x12x12x128xf32, #tpu.memory_space<vmem>>, vector<2x8x8x128xf32>
    %136 = vector.shape_cast %135 : vector<2x8x8x128xf32> to vector<128x128xf32>
    %c0_148 = arith.constant 0 : index
    %c4_149 = arith.constant 4 : index
    %c4_150 = arith.constant 4 : index
    %c0_151 = arith.constant 0 : index
    %137 = vector.load %arg8[%c0_148, %c4_149, %c4_150, %c0_151] : memref<2x12x12x128xf32, #tpu.memory_space<vmem>>, vector<2x8x8x128xf32>
    %138 = vector.shape_cast %137 : vector<2x8x8x128xf32> to vector<128x128xf32>
    %139 = tpu.concatenate %136, %138 in 1 : vector<128x128xf32>, vector<128x128xf32> -> vector<128x256xf32>
    %140 = arith.truncf %139 : vector<128x256xf32> to vector<128x256xbf16>
    %c12 = arith.constant 12 : index
    %c0_152 = arith.constant 0 : index
    %c0_153 = arith.constant 0 : index
    %141 = vector.load %arg3[%c12, %c0_152, %c0_153] : memref<13x256x128xbf16, #tpu.memory_space<vmem>>, vector<1x256x128xbf16>
    %142 = vector.shape_cast %141 : vector<1x256x128xbf16> to vector<256x128xbf16>
    %cst_154 = arith.constant dense<0.000000e+00> : vector<128x128xf32>
    %143 = tpu.matmul %140, %142, %cst_154 {dimension_numbers = #tpu.dot_dimension_numbers<[1], [0], [0], [1], [0, 0, 1, 1], [], []>} : vector<128x256xbf16>, vector<256x128xbf16>, vector<128x128xf32> -> vector<128x128xf32>
    %144 = arith.addf %124, %143 : vector<128x128xf32>
    %145 = arith.addf %144, %134 : vector<128x128xf32>
    %c0_155 = arith.constant 0 : index
    %c0_156 = arith.constant 0 : index
    %146 = vector.load %arg4[%c0_155, %c0_156] : memref<1x128xf32, #tpu.memory_space<vmem>>, vector<1x128xf32>
    %147 = vector.broadcast %146 : vector<1x128xf32> to vector<128x128xf32>
    %148 = arith.addf %145, %147 : vector<128x128xf32>
    %cst_157 = arith.constant 0.000000e+00 : f32
    %149 = vector.broadcast %cst_157 : f32 to vector<128x128xf32>
    %150 = arith.maximumf %148, %149 : vector<128x128xf32>
    %151 = vector.shape_cast %150 : vector<128x128xf32> to vector<2x4x2x8x128xf32>
    %152 = vector.extract_strided_slice %151 {offsets = [0, 0, 0, 0, 0], sizes = [2, 4, 1, 8, 128], strides = [1, 1, 1, 1, 1]} : vector<2x4x2x8x128xf32> to vector<2x4x1x8x128xf32>
    %153 = vector.shape_cast %152 : vector<2x4x1x8x128xf32> to vector<2x4x8x128xf32>
    %154 = vector.extract_strided_slice %151 {offsets = [0, 0, 1, 0, 0], sizes = [2, 4, 1, 8, 128], strides = [1, 1, 1, 1, 1]} : vector<2x4x2x8x128xf32> to vector<2x4x1x8x128xf32>
    %155 = vector.shape_cast %154 : vector<2x4x1x8x128xf32> to vector<2x4x8x128xf32>
    %156 = arith.maximumf %153, %155 : vector<2x4x8x128xf32>
    %c0_158 = arith.constant 0 : index
    %c0_159 = arith.constant 0 : index
    %c0_160 = arith.constant 0 : index
    %c0_161 = arith.constant 0 : index
    %157 = vector.load %arg9[%c0_158, %c0_159, %c0_160, %c0_161] : memref<2x4x8x128xf32, #tpu.memory_space<vmem>>, vector<2x4x8x128xf32>
    tpu.vector_store %arg9[%c0_158, %c0_159, %c0_160, %c0_161], %156 {strides = array<i32>} : memref<2x4x8x128xf32, #tpu.memory_space<vmem>>, vector<2x4x8x128xf32>,
    %c0_162 = arith.constant 0 : index
    %c0_163 = arith.constant 0 : index
    %c0_164 = arith.constant 0 : index
    %c0_165 = arith.constant 0 : index
    %158 = tpu.strided_load %arg9[%c0_162, %c0_163, %c0_164, %c0_165] {strides = array<i32: 1, 1, 2, 1>} : memref<2x4x8x128xf32, #tpu.memory_space<vmem>>, vector<2x4x4x128xf32>
    %c0_166 = arith.constant 0 : index
    %c0_167 = arith.constant 0 : index
    %c1_168 = arith.constant 1 : index
    %c0_169 = arith.constant 0 : index
    %159 = tpu.strided_load %arg9[%c0_166, %c0_167, %c1_168, %c0_169] {strides = array<i32: 1, 1, 2, 1>} : memref<2x4x8x128xf32, #tpu.memory_space<vmem>>, vector<2x4x4x128xf32>
    %160 = arith.maximumf %158, %159 : vector<2x4x4x128xf32>
    %c0_170 = arith.constant 0 : index
    %c0_171 = arith.constant 0 : index
    %c0_172 = arith.constant 0 : index
    %c0_173 = arith.constant 0 : index
    %161 = vector.load %arg10[%c0_170, %c0_171, %c0_172, %c0_173] : memref<2x4x4x128xf32, #tpu.memory_space<vmem>>, vector<2x4x4x128xf32>
    tpu.vector_store %arg10[%c0_170, %c0_171, %c0_172, %c0_173], %160 {strides = array<i32>} : memref<2x4x4x128xf32, #tpu.memory_space<vmem>>, vector<2x4x4x128xf32>,
    %c0_174 = arith.constant 0 : index
    %c0_175 = arith.constant 0 : index
    %c0_176 = arith.constant 0 : index
    %c0_177 = arith.constant 0 : index
    %162 = vector.load %arg10[%c0_174, %c0_175, %c0_176, %c0_177] : memref<2x4x4x128xf32, #tpu.memory_space<vmem>>, vector<2x1x1x128xf32>
    %163 = vector.shape_cast %162 : vector<2x1x1x128xf32> to vector<2x128xf32>
    %c0_178 = arith.constant 0 : index
    %c0_179 = arith.constant 0 : index
    %c1_180 = arith.constant 1 : index
    %c0_181 = arith.constant 0 : index
    %164 = vector.load %arg10[%c0_178, %c0_179, %c1_180, %c0_181] : memref<2x4x4x128xf32, #tpu.memory_space<vmem>>, vector<2x1x1x128xf32>
    %165 = vector.shape_cast %164 : vector<2x1x1x128xf32> to vector<2x128xf32>
    %c0_182 = arith.constant 0 : index
    %c0_183 = arith.constant 0 : index
    %c2_184 = arith.constant 2 : index
    %c0_185 = arith.constant 0 : index
    %166 = vector.load %arg10[%c0_182, %c0_183, %c2_184, %c0_185] : memref<2x4x4x128xf32, #tpu.memory_space<vmem>>, vector<2x1x1x128xf32>
    %167 = vector.shape_cast %166 : vector<2x1x1x128xf32> to vector<2x128xf32>
    %c0_186 = arith.constant 0 : index
    %c0_187 = arith.constant 0 : index
    %c3_188 = arith.constant 3 : index
    %c0_189 = arith.constant 0 : index
    %168 = vector.load %arg10[%c0_186, %c0_187, %c3_188, %c0_189] : memref<2x4x4x128xf32, #tpu.memory_space<vmem>>, vector<2x1x1x128xf32>
    %169 = vector.shape_cast %168 : vector<2x1x1x128xf32> to vector<2x128xf32>
    %c0_190 = arith.constant 0 : index
    %c1_191 = arith.constant 1 : index
    %c0_192 = arith.constant 0 : index
    %c0_193 = arith.constant 0 : index
    %170 = vector.load %arg10[%c0_190, %c1_191, %c0_192, %c0_193] : memref<2x4x4x128xf32, #tpu.memory_space<vmem>>, vector<2x1x1x128xf32>
    %171 = vector.shape_cast %170 : vector<2x1x1x128xf32> to vector<2x128xf32>
    %c0_194 = arith.constant 0 : index
    %c1_195 = arith.constant 1 : index
    %c1_196 = arith.constant 1 : index
    %c0_197 = arith.constant 0 : index
    %172 = vector.load %arg10[%c0_194, %c1_195, %c1_196, %c0_197] : memref<2x4x4x128xf32, #tpu.memory_space<vmem>>, vector<2x1x1x128xf32>
    %173 = vector.shape_cast %172 : vector<2x1x1x128xf32> to vector<2x128xf32>
    %c0_198 = arith.constant 0 : index
    %c1_199 = arith.constant 1 : index
    %c2_200 = arith.constant 2 : index
    %c0_201 = arith.constant 0 : index
    %174 = vector.load %arg10[%c0_198, %c1_199, %c2_200, %c0_201] : memref<2x4x4x128xf32, #tpu.memory_space<vmem>>, vector<2x1x1x128xf32>
    %175 = vector.shape_cast %174 : vector<2x1x1x128xf32> to vector<2x128xf32>
    %c0_202 = arith.constant 0 : index
    %c1_203 = arith.constant 1 : index
    %c3_204 = arith.constant 3 : index
    %c0_205 = arith.constant 0 : index
    %176 = vector.load %arg10[%c0_202, %c1_203, %c3_204, %c0_205] : memref<2x4x4x128xf32, #tpu.memory_space<vmem>>, vector<2x1x1x128xf32>
    %177 = vector.shape_cast %176 : vector<2x1x1x128xf32> to vector<2x128xf32>
    %c0_206 = arith.constant 0 : index
    %c2_207 = arith.constant 2 : index
    %c0_208 = arith.constant 0 : index
    %c0_209 = arith.constant 0 : index
    %178 = vector.load %arg10[%c0_206, %c2_207, %c0_208, %c0_209] : memref<2x4x4x128xf32, #tpu.memory_space<vmem>>, vector<2x1x1x128xf32>
    %179 = vector.shape_cast %178 : vector<2x1x1x128xf32> to vector<2x128xf32>
    %c0_210 = arith.constant 0 : index
    %c2_211 = arith.constant 2 : index
    %c1_212 = arith.constant 1 : index
    %c0_213 = arith.constant 0 : index
    %180 = vector.load %arg10[%c0_210, %c2_211, %c1_212, %c0_213] : memref<2x4x4x128xf32, #tpu.memory_space<vmem>>, vector<2x1x1x128xf32>
    %181 = vector.shape_cast %180 : vector<2x1x1x128xf32> to vector<2x128xf32>
    %c0_214 = arith.constant 0 : index
    %c2_215 = arith.constant 2 : index
    %c2_216 = arith.constant 2 : index
    %c0_217 = arith.constant 0 : index
    %182 = vector.load %arg10[%c0_214, %c2_215, %c2_216, %c0_217] : memref<2x4x4x128xf32, #tpu.memory_space<vmem>>, vector<2x1x1x128xf32>
    %183 = vector.shape_cast %182 : vector<2x1x1x128xf32> to vector<2x128xf32>
    %c0_218 = arith.constant 0 : index
    %c2_219 = arith.constant 2 : index
    %c3_220 = arith.constant 3 : index
    %c0_221 = arith.constant 0 : index
    %184 = vector.load %arg10[%c0_218, %c2_219, %c3_220, %c0_221] : memref<2x4x4x128xf32, #tpu.memory_space<vmem>>, vector<2x1x1x128xf32>
    %185 = vector.shape_cast %184 : vector<2x1x1x128xf32> to vector<2x128xf32>
    %c0_222 = arith.constant 0 : index
    %c3_223 = arith.constant 3 : index
    %c0_224 = arith.constant 0 : index
    %c0_225 = arith.constant 0 : index
    %186 = vector.load %arg10[%c0_222, %c3_223, %c0_224, %c0_225] : memref<2x4x4x128xf32, #tpu.memory_space<vmem>>, vector<2x1x1x128xf32>
    %187 = vector.shape_cast %186 : vector<2x1x1x128xf32> to vector<2x128xf32>
    %c0_226 = arith.constant 0 : index
    %c3_227 = arith.constant 3 : index
    %c1_228 = arith.constant 1 : index
    %c0_229 = arith.constant 0 : index
    %188 = vector.load %arg10[%c0_226, %c3_227, %c1_228, %c0_229] : memref<2x4x4x128xf32, #tpu.memory_space<vmem>>, vector<2x1x1x128xf32>
    %189 = vector.shape_cast %188 : vector<2x1x1x128xf32> to vector<2x128xf32>
    %c0_230 = arith.constant 0 : index
    %c3_231 = arith.constant 3 : index
    %c2_232 = arith.constant 2 : index
    %c0_233 = arith.constant 0 : index
    %190 = vector.load %arg10[%c0_230, %c3_231, %c2_232, %c0_233] : memref<2x4x4x128xf32, #tpu.memory_space<vmem>>, vector<2x1x1x128xf32>
    %191 = vector.shape_cast %190 : vector<2x1x1x128xf32> to vector<2x128xf32>
    %c0_234 = arith.constant 0 : index
    %c3_235 = arith.constant 3 : index
    %c3_236 = arith.constant 3 : index
    %c0_237 = arith.constant 0 : index
    %192 = vector.load %arg10[%c0_234, %c3_235, %c3_236, %c0_237] : memref<2x4x4x128xf32, #tpu.memory_space<vmem>>, vector<2x1x1x128xf32>
    %193 = vector.shape_cast %192 : vector<2x1x1x128xf32> to vector<2x128xf32>
    %194 = tpu.concatenate %163, %165, %167, %169, %171, %173, %175, %177, %179, %181, %183, %185, %187, %189, %191, %193 in 1 : vector<2x128xf32>, vector<2x128xf32>, vector<2x128xf32>, vector<2x128xf32>, vector<2x128xf32>, vector<2x128xf32>, vector<2x128xf32>, vector<2x128xf32>, vector<2x128xf32>, vector<2x128xf32>, vector<2x128xf32>, vector<2x128xf32>, vector<2x128xf32>, vector<2x128xf32>, vector<2x128xf32>, vector<2x128xf32> -> vector<2x2048xf32>
    %195 = arith.truncf %194 : vector<2x2048xf32> to vector<2x2048xbf16>
    %c0_238 = arith.constant 0 : index
    %c0_239 = arith.constant 0 : index
    %196 = vector.load %arg5[%c0_238, %c0_239] : memref<2048x128xbf16, #tpu.memory_space<vmem>>, vector<2048x128xbf16>
    %cst_240 = arith.constant dense<0.000000e+00> : vector<2x128xf32>
    %197 = tpu.matmul %195, %196, %cst_240 {dimension_numbers = #tpu.dot_dimension_numbers<[1], [0], [0], [1], [0, 0, 1, 1], [], []>} : vector<2x2048xbf16>, vector<2048x128xbf16>, vector<2x128xf32> -> vector<2x128xf32>
    %c0_241 = arith.constant 0 : index
    %c0_242 = arith.constant 0 : index
    %198 = vector.load %arg6[%c0_241, %c0_242] : memref<1x128xf32, #tpu.memory_space<vmem>>, vector<1x128xf32>
    %199 = vector.broadcast %198 : vector<1x128xf32> to vector<2x128xf32>
    %200 = arith.addf %197, %199 : vector<2x128xf32>
    %cst_243 = arith.constant 0.000000e+00 : f32
    %201 = vector.broadcast %cst_243 : f32 to vector<2x128xf32>
    %202 = arith.maximumf %200, %201 : vector<2x128xf32>
    %c0_244 = arith.constant 0 : index
    %c0_245 = arith.constant 0 : index
    %203 = vector.load %arg7[%c0_244, %c0_245] : memref<2x128xf32, #tpu.memory_space<vmem>>, vector<2x128xf32>
    tpu.vector_store %arg7[%c0_244, %c0_245], %202 {strides = array<i32>} : memref<2x128xf32, #tpu.memory_space<vmem>>, vector<2x128xf32>,
    return
  }
  func.func @transform_0(%arg0: i32) -> (i32, i32, i32) {
    %c0_i32 = arith.constant 0 : i32
    %c0_i32_0 = arith.constant 0 : i32
    %c0_i32_1 = arith.constant 0 : i32
    return %arg0, %c0_i32, %c0_i32_0 : i32, i32, i32
  }
  func.func @transform_1(%arg0: i32) -> (i32, i32) {
    %c0_i32 = arith.constant 0 : i32
    %c0_i32_0 = arith.constant 0 : i32
    %c0_i32_1 = arith.constant 0 : i32
    return %c0_i32, %c0_i32_0 : i32, i32
  }
  func.func @transform_2(%arg0: i32) -> (i32, i32, i32) {
    %c0_i32 = arith.constant 0 : i32
    %c0_i32_0 = arith.constant 0 : i32
    %c0_i32_1 = arith.constant 0 : i32
    %c0_i32_2 = arith.constant 0 : i32
    return %c0_i32, %c0_i32_0, %c0_i32_1 : i32, i32, i32
  }
  func.func @transform_3(%arg0: i32) -> (i32, i32) {
    %c0_i32 = arith.constant 0 : i32
    %c0_i32_0 = arith.constant 0 : i32
    %c0_i32_1 = arith.constant 0 : i32
    return %c0_i32, %c0_i32_0 : i32, i32
  }
  func.func @transform_4(%arg0: i32) -> (i32, i32) {
    %c0_i32 = arith.constant 0 : i32
    %c0_i32_0 = arith.constant 0 : i32
    %c0_i32_1 = arith.constant 0 : i32
    return %c0_i32, %c0_i32_0 : i32, i32
  }
  func.func @transform_5(%arg0: i32) -> (i32, i32) {
    %c0_i32 = arith.constant 0 : i32
    %c0_i32_0 = arith.constant 0 : i32
    %c0_i32_1 = arith.constant 0 : i32
    return %c0_i32, %c0_i32_0 : i32, i32
  }
  func.func @transform_6(%arg0: i32) -> (i32, i32) {
    %c0_i32 = arith.constant 0 : i32
    %c0_i32_0 = arith.constant 0 : i32
    return %arg0, %c0_i32 : i32, i32
  }
}

</mosaic_0001>

<bundles_post_ra>
// kernel: conv_feature_extractor.1
= control target key start
LH: loop header
LB: loop body
LE: loop exit
PB: predicated region body
PF: predicated region fallthrough
CT: control target
= control target key end

     0   :  { %v8619_v2 = vmov 0   ;;  %s10901_s0 = inlined_call_operand.vmem [shape: bf16[2,144,128], index: 0, kind: input, shape index: {}]   ;;  %s10902_s1 = inlined_call_operand.vmem [shape: bf16[128,512], index: 1, kind: input, shape index: {}]   ;;  %s10903_s2 = inlined_call_operand.vmem [shape: bf16[13,256,128], index: 2, kind: input, shape index: {}]   ;;  %s10904_s3 = inlined_call_operand.vmem [shape: f32[1,128], index: 3, kind: input, shape index: {}]   ;;  %s10905_s4 = inlined_call_operand.vmem [shape: bf16[2048,128], index: 4, kind: input, shape index: {}]   ;;  %s10906_s5 = inlined_call_operand.vmem [shape: f32[1,128], index: 5, kind: input, shape index: {}]   ;;  %s10907_s6 = inlined_call_operand.hbm [shape: f32[2,128], index: 6, kind: output, shape index: {}]  }
   0x1   :  { %v8195_v0 = vld [vmem:[%s10902_s1 + $0xe4] ss:$16 sps:$4 sm:$0xff]   ;;  %v8197_v1 = vld [vmem:[%s10902_s1 + $0xec] ss:$16 sps:$4 sm:$0xff]   ;;  %297 = vmatprep.mubr.bf16.mxu0 %v8619_v2  ;;  %606 = vmatprep.mubr.bf16.mxu1 %v8619_v2  ;;  %v8199_v3 = vld [vmem:[%s10902_s1 + $0xe0] ss:$16 sps:$4 sm:$0xff]  }
   0x2   :  { %265 = vmatprep.subr.bf16.mxu0 %v8195_v0  ;;  %v8200_v4 = vld [vmem:[%s10902_s1 + $0xe8] ss:$16 sps:$4 sm:$0xff]   ;;  %574 = vmatprep.subr.bf16.mxu1 %v8197_v1  ;;  %v8201_v5 = vld [vmem:[%s10902_s1 + $0xc4] ss:$16 sps:$4 sm:$0xff]   ;;  %v8203_v6 = vld [vmem:[%s10902_s1 + $0xcc] ss:$16 sps:$4 sm:$0xff]  }
   0x3   :  { %266 = vmatpush1.bf16.msra.mxu0 %v8199_v3  ;;  %575 = vmatpush1.bf16.msra.mxu1 %v8200_v4  ;;  %v8205_v7 = vld [vmem:[%s10902_s1 + $0xc0] ss:$16 sps:$4 sm:$0xff]   ;;  %v8206_v8 = vld [vmem:[%s10902_s1 + $0xc8] ss:$16 sps:$4 sm:$0xff]   ;;  %v8207_v9 = vld [vmem:[%s10902_s1 + $0xa4] ss:$16 sps:$4 sm:$0xff]  }
   0x4   :  { %267 = vmatprep.subr.bf16.mxu0 %v8201_v5  ;;  %576 = vmatprep.subr.bf16.mxu1 %v8203_v6  ;;  %v8209_v10 = vld [vmem:[%s10902_s1 + $0xac] ss:$16 sps:$4 sm:$0xff]   ;;  %v8211_v11 = vld [vmem:[%s10902_s1 + $0xa0] ss:$16 sps:$4 sm:$0xff]   ;;  %v8212_v12 = vld [vmem:[%s10902_s1 + $0xa8] ss:$16 sps:$4 sm:$0xff]  }
   0x5   :  { %v8213_v13 = vld [vmem:[%s10902_s1 + $0x84] ss:$16 sps:$4 sm:$0xff]   ;;  %v8215_v14 = vld [vmem:[%s10902_s1 + $0x8c] ss:$16 sps:$4 sm:$0xff]   ;;  %v8217_v15 = vld [vmem:[%s10902_s1 + $0x80] ss:$16 sps:$4 sm:$0xff]  }
   0x6   :  { %v8218_v16 = vld [vmem:[%s10902_s1 + $0x88] ss:$16 sps:$4 sm:$0xff]   ;;  %v8219_v17 = vld [vmem:[%s10902_s1 + $0x64] ss:$16 sps:$4 sm:$0xff]   ;;  %v8221_v18 = vld [vmem:[%s10902_s1 + $0x6c] ss:$16 sps:$4 sm:$0xff]  }
   0x7   :  { %268 = vmatpush1.bf16.msra.mxu0 %v8205_v7  ;;  %577 = vmatpush1.bf16.msra.mxu1 %v8206_v8  ;;  %v8223_v19 = vld [vmem:[%s10902_s1 + $0x60] ss:$16 sps:$4 sm:$0xff]   ;;  %v8224_v20 = vld [vmem:[%s10902_s1 + $0x68] ss:$16 sps:$4 sm:$0xff]   ;;  %v8225_v21 = vld [vmem:[%s10902_s1 + $0x44] ss:$16 sps:$4 sm:$0xff]  }
   0x8   :  { %269 = vmatprep.subr.bf16.mxu0 %v8207_v9  ;;  %578 = vmatprep.subr.bf16.mxu1 %v8209_v10  ;;  %v8227_v22 = vld [vmem:[%s10902_s1 + $0x4c] ss:$16 sps:$4 sm:$0xff]   ;;  %v8229_v23 = vld [vmem:[%s10902_s1 + $0x40] ss:$16 sps:$4 sm:$0xff]   ;;  %v8230_v24 = vld [vmem:[%s10902_s1 + $0x48] ss:$16 sps:$4 sm:$0xff]  }
   0x9   :  { %v8231_v25 = vld [vmem:[%s10902_s1 + $0x24] ss:$16 sps:$4 sm:$0xff]   ;;  %v8233_v26 = vld [vmem:[%s10902_s1 + $0x2c] ss:$16 sps:$4 sm:$0xff]   ;;  %v8235_v27 = vld [vmem:[%s10902_s1 + $0x20] ss:$16 sps:$4 sm:$0xff]  }
   0xa   :  { %v8236_v28 = vld [vmem:[%s10902_s1 + $0x28] ss:$16 sps:$4 sm:$0xff]   ;;  %v8237_v29 = vld [vmem:[%s10902_s1 + $0x4] ss:$16 sps:$4 sm:$0xff]   ;;  %v8239_v30 = vld [vmem:[%s10902_s1 + $0xc] ss:$16 sps:$4 sm:$0xff]  }
   0xb   :  { %270 = vmatpush1.bf16.msra.mxu0 %v8211_v11  ;;  %579 = vmatpush1.bf16.msra.mxu1 %v8212_v12  ;;  %v8241_v31 = vld [vmem:[%s10902_s1] ss:$16 sps:$4 sm:$0xff]   ;;  %v8242_v32 = vld [vmem:[%s10902_s1 + $0x8] ss:$16 sps:$4 sm:$0xff]  }
   0xc   :  { %271 = vmatprep.subr.bf16.mxu0 %v8213_v13  ;;  %580 = vmatprep.subr.bf16.mxu1 %v8215_v14  ;;  %v8243_v33 = vld [vmem:[%s10901_s0] sm:$0xff]   ;;  %v8244_v34 = vld [vmem:[%s10901_s0 + $0x8] sm:$0xff]   ;;  %v8260_v35 = vld [vmem:[%s10903_s2 + $0x178] sm:$0xff]  }
   0xd   :  { %v8262_v36 = vld [vmem:[%s10903_s2 + $0x138] sm:$0xff]   ;;  %v8263_v37 = vld [vmem:[%s10903_s2 + $0x170] sm:$0xff]   ;;  %v8265_v40 = vld [vmem:[%s10903_s2 + $0x168] sm:$0xff]  }
   0xe   :  { %v8245_v38 = vld [vmem:[%s10901_s0 + $0x10] sm:$0xff]   ;;  %v8266_v41 = vld [vmem:[%s10903_s2 + $0x128] sm:$0xff]   ;;  %v8267_v42 = vld [vmem:[%s10903_s2 + $0x160] sm:$0xff]  }
   0xf   :  { %272 = vmatpush1.bf16.msra.mxu0 %v8217_v15  ;;  %581 = vmatpush1.bf16.msra.mxu1 %v8218_v16  ;;  %v8264_v39 = vld [vmem:[%s10903_s2 + $0x130] sm:$0xff]   ;;  %v8269_v43 = vld [vmem:[%s10903_s2 + $0x78] sm:$0xff]   ;;  %v8268_v45 = vld [vmem:[%s10903_s2 + $0x120] sm:$0xff]  }
  0x10   :  { %273 = vmatprep.subr.bf16.mxu0 %v8219_v17  ;;  %582 = vmatprep.subr.bf16.mxu1 %v8221_v18  ;;  %v8270_v44 = vld [vmem:[%s10903_s2 + $0x38] sm:$0xff]   ;;  %v8247_v47 = vld [vmem:[%s10901_s0 + $0x20] sm:$0xff]   ;;  %v8248_v48 = vld [vmem:[%s10901_s0 + $0x28] sm:$0xff]  }
  0x11   :  { %v8246_v46 = vld [vmem:[%s10901_s0 + $0x18] sm:$0xff]   ;;  %v8249_v49 = vld [vmem:[%s10901_s0 + $0x30] sm:$0xff]   ;;  %v8251_v51 = vld [vmem:[%s10901_s0 + $0x40] sm:$0xff]  }
  0x12   :  { %v8250_v50 = vld [vmem:[%s10901_s0 + $0x38] sm:$0xff]   ;;  %v8271_v52 = vld [vmem:[%s10903_s2 + $0x70] sm:$0xff]   ;;  %v8252_v54 = vld [vmem:[%s10901_s0 + $0x48] sm:$0xff]  }
  0x13   :  { %274 = vmatpush1.bf16.msra.mxu0 %v8223_v19  ;;  %583 = vmatpush1.bf16.msra.mxu1 %v8224_v20  ;;  %v8272_v53 = vld [vmem:[%s10903_s2 + $0x30] sm:$0xff]   ;;  %v8273_v55 = vld [vmem:[%s10903_s2 + $0x68] sm:$0xff]   ;;  %v8275_v57 = vld [vmem:[%s10903_s2 + $0x60] sm:$0xff]  }
  0x14   :  { %275 = vmatprep.subr.bf16.mxu0 %v8225_v21  ;;  %584 = vmatprep.subr.bf16.mxu1 %v8227_v22  ;;  %v8274_v56 = vld [vmem:[%s10903_s2 + $0x28] sm:$0xff]   ;;  %v8276_v58 = vld [vmem:[%s10903_s2 + $0x20] sm:$0xff]   ;;  %v8253_v59 = vld [vmem:[%s10901_s0 + $0x50] sm:$0xff]  }
  0x15   :  { %v8278_v60 = vld [vmem:[%s10903_s2 + $0x158] sm:$0xff]   ;;  %v8285_v0 = vld [vmem:[%s10903_s2 + $0x150] sm:$0xff]   ;;  %v8289_v6 = vld [vmem:[%s10903_s2 + $0x148] sm:$0xff]  }
  0x16   :  { %v8277_v61 = vld [vmem:[%s10903_s2 + $0x58] sm:$0xff]   ;;  %v8281_v1 = vld [vmem:[%s10903_s2 + $0x50] sm:$0xff]   ;;  %v8283_v7 = vld [vmem:[%s10903_s2 + $0x48] sm:$0xff]  }
  0x17   :  { %276 = vmatpush1.bf16.msra.mxu0 %v8229_v23  ;;  %585 = vmatpush1.bf16.msra.mxu1 %v8230_v24  ;;  %v8280_v62 = vld [vmem:[%s10903_s2 + $0x118] sm:$0xff]   ;;  %v8286_v3 = vld [vmem:[%s10903_s2 + $0x110] sm:$0xff]   ;;  %v8290_v8 = vld [vmem:[%s10903_s2 + $0x108] sm:$0xff]  }
  0x18   :  { %277 = vmatprep.subr.bf16.mxu0 %v8231_v25  ;;  %586 = vmatprep.subr.bf16.mxu1 %v8233_v26  ;;  %v8279_v63 = vld [vmem:[%s10903_s2 + $0x18] sm:$0xff]   ;;  %v8282_v4 = vld [vmem:[%s10903_s2 + $0x10] sm:$0xff]   ;;  %v8284_v9 = vld [vmem:[%s10903_s2 + $0x8] sm:$0xff]  }
  0x19   :  { %v8254_v5 = vld [vmem:[%s10901_s0 + $0x58] sm:$0xff]   ;;  %v8291_v10 = vld [vmem:[%s10903_s2 + $0x140] sm:$0xff]   ;;  %v8256_v15 = vld [vmem:[%s10901_s0 + $0x68] sm:$0xff]  }
  0x1a   :  { %v8287_v11 = vld [vmem:[%s10903_s2 + $0x40] sm:$0xff]   ;;  %v8257_v16 = vld [vmem:[%s10901_s0 + $0x70] sm:$0xff]   ;;  %v8258_v17 = vld [vmem:[%s10901_s0 + $0x78] sm:$0xff]  }
  0x1b   :  { %278 = vmatpush1.bf16.msra.mxu0 %v8235_v27  ;;  %587 = vmatpush1.bf16.msra.mxu1 %v8236_v28  ;;  %v8292_v12 = vld [vmem:[%s10903_s2 + $0x100] sm:$0xff]   ;;  %v8261_v19 = vld [vmem:[%s10901_s0 + $0x88] sm:$0xff]   ;;  %v8293_v20 = vld [vmem:[%s10903_s2 + $0x1f8] sm:$0xff]  }
  0x1c   :  { %279 = vmatprep.subr.bf16.mxu0 %v8237_v29  ;;  %588 = vmatprep.subr.bf16.mxu1 %v8239_v30  ;;  %v8288_v13 = vld [vmem:[%s10903_s2] sm:$0xff]   ;;  %v8301_v21 = vld [vmem:[%s10903_s2 + $0xf8] sm:$0xff]  }
  0x1d   :  { %v8255_v14 = vld [vmem:[%s10901_s0 + $0x60] sm:$0xff]  }
  0x1e   :  { %v8259_v18 = vld [vmem:[%s10901_s0 + $0x80] sm:$0xff]  }
  0x1f   :  { %280 = vmatpush1.bf16.msra.mxu0 %v8241_v31  ;;  %589 = vmatpush1.bf16.msra.mxu1 %v8242_v32 }
  0x20   :  { %7185 = vmatprep.subr.bf16.mxu0 %v8260_v35  ;;  %7249 = vmatprep.subr.bf16.mxu1 %v8269_v43 }
  0x22   :  { %298 = vmatmul.mubr.bf16.vlgmr.msra.gmra.mxu0 %v8243_v33  ;;  %607 = vmatmul.mubr.bf16.vlgmr.msra.gmra.mxu1 %v8243_v33 }
  0x23   :  { %307 = vmatprep.mubr.bf16.mxu0 %v8619_v2  ;;  %616 = vmatprep.mubr.bf16.mxu1 %v8619_v2 }
  0x24   :  { %7186 = vmatpush3.bf16.msra.mxu0 %v8262_v36  ;;  %7250 = vmatpush3.bf16.msra.mxu1 %v8270_v44 }
  0x25   :  { %7187 = vmatprep.subr.bf16.mxu0 %v8263_v37  ;;  %7251 = vmatprep.subr.bf16.mxu1 %v8271_v52 }
  0x28   :  { %7188 = vmatpush3.bf16.msra.mxu0 %v8264_v39  ;;  %7252 = vmatpush3.bf16.msra.mxu1 %v8272_v53 }
  0x29   :  { %7189 = vmatprep.subr.bf16.mxu0 %v8265_v40  ;;  %7253 = vmatprep.subr.bf16.mxu1 %v8273_v55 }
  0x2a   :  { %308 = vmatmul.mubr.bf16.gmra.mxu0 %v8244_v34  ;;  %617 = vmatmul.mubr.bf16.gmra.mxu1 %v8244_v34 }
  0x2b   :  { %317 = vmatprep.mubr.bf16.mxu0 %v8619_v2  ;;  %626 = vmatprep.mubr.bf16.mxu1 %v8619_v2 }
  0x2c   :  { %7190 = vmatpush3.bf16.msra.mxu0 %v8266_v41  ;;  %7254 = vmatpush3.bf16.msra.mxu1 %v8274_v56 }
  0x2d   :  { %7191 = vmatprep.subr.bf16.mxu0 %v8267_v42  ;;  %7255 = vmatprep.subr.bf16.mxu1 %v8275_v57 }
  0x30   :  { %7192 = vmatpush3.bf16.msra.mxu0 %v8268_v45  ;;  %7256 = vmatpush3.bf16.msra.mxu1 %v8276_v58 }
  0x31   :  { %7193 = vmatprep.subr.bf16.mxu0 %v8278_v60  ;;  %7257 = vmatprep.subr.bf16.mxu1 %v8277_v61 }
  0x32   :  { %318 = vmatmul.mubr.bf16.gmra.mxu0 %v8245_v38  ;;  %627 = vmatmul.mubr.bf16.gmra.mxu1 %v8245_v38 }
  0x33   :  { %327 = vmatprep.mubr.bf16.mxu0 %v8619_v2  ;;  %636 = vmatprep.mubr.bf16.mxu1 %v8619_v2 }
  0x34   :  { %7194 = vmatpush3.bf16.msra.mxu0 %v8280_v62  ;;  %7258 = vmatpush3.bf16.msra.mxu1 %v8279_v63 }
  0x35   :  { %7259 = vmatprep.subr.bf16.mxu1 %v8281_v1  ;;  %7195 = vmatprep.subr.bf16.mxu0 %v8285_v0 }
  0x38   :  { %7260 = vmatpush3.bf16.msra.mxu1 %v8282_v4  ;;  %7196 = vmatpush3.bf16.msra.mxu0 %v8286_v3 }
  0x39   :  { %7197 = vmatprep.subr.bf16.mxu0 %v8289_v6  ;;  %7261 = vmatprep.subr.bf16.mxu1 %v8283_v7 }
  0x3a   :  { %328 = vmatmul.mubr.bf16.gmra.mxu0 %v8246_v46  ;;  %637 = vmatmul.mubr.bf16.gmra.mxu1 %v8246_v46 }
  0x3b   :  { %337 = vmatprep.mubr.bf16.mxu0 %v8619_v2  ;;  %646 = vmatprep.mubr.bf16.mxu1 %v8619_v2 }
  0x3c   :  { %7262 = vmatpush3.bf16.msra.mxu1 %v8284_v9  ;;  %7198 = vmatpush3.bf16.msra.mxu0 %v8290_v8 }
  0x3d   :  { %7263 = vmatprep.subr.bf16.mxu1 %v8287_v11  ;;  %7199 = vmatprep.subr.bf16.mxu0 %v8291_v10 }
  0x40   :  { %7264 = vmatpush3.bf16.msra.mxu1 %v8288_v13  ;;  %7200 = vmatpush3.bf16.msra.mxu0 %v8292_v12 }
  0x41   :  { %7313 = vmatprep.subr.bf16.mxu0 %v8293_v20  ;;  %7377 = vmatprep.subr.bf16.mxu1 %v8301_v21 }
  0x42   :  { %338 = vmatmul.mubr.bf16.gmra.mxu0 %v8247_v47  ;;  %647 = vmatmul.mubr.bf16.gmra.mxu1 %v8247_v47 }
  0x43   :  { %347 = vmatprep.mubr.bf16.mxu0 %v8619_v2  ;;  %656 = vmatprep.mubr.bf16.mxu1 %v8619_v2 }
  0x4a   :  { %348 = vmatmul.mubr.bf16.gmra.mxu0 %v8248_v48  ;;  %657 = vmatmul.mubr.bf16.gmra.mxu1 %v8248_v48 }
  0x4b   :  { %357 = vmatprep.mubr.bf16.mxu0 %v8619_v2  ;;  %666 = vmatprep.mubr.bf16.mxu1 %v8619_v2 }
  0x52   :  { %358 = vmatmul.mubr.bf16.gmra.mxu0 %v8249_v49  ;;  %667 = vmatmul.mubr.bf16.gmra.mxu1 %v8249_v49 }
  0x53   :  { %367 = vmatprep.mubr.bf16.mxu0 %v8619_v2  ;;  %676 = vmatprep.mubr.bf16.mxu1 %v8619_v2 }
  0x5a   :  { %368 = vmatmul.mubr.bf16.gmra.mxu0 %v8250_v50  ;;  %677 = vmatmul.mubr.bf16.gmra.mxu1 %v8250_v50 }
  0x5b   :  { %377 = vmatprep.mubr.bf16.mxu0 %v8619_v2  ;;  %686 = vmatprep.mubr.bf16.mxu1 %v8619_v2 }
  0x62   :  { %378 = vmatmul.mubr.bf16.gmra.mxu0 %v8251_v51  ;;  %687 = vmatmul.mubr.bf16.gmra.mxu1 %v8251_v51 }
  0x63   :  { %387 = vmatprep.mubr.bf16.mxu0 %v8619_v2  ;;  %696 = vmatprep.mubr.bf16.mxu1 %v8619_v2 }
  0x6a   :  { %388 = vmatmul.mubr.bf16.gmra.mxu0 %v8252_v54  ;;  %697 = vmatmul.mubr.bf16.gmra.mxu1 %v8252_v54 }
  0x6b   :  { %397 = vmatprep.mubr.bf16.mxu0 %v8619_v2  ;;  %706 = vmatprep.mubr.bf16.mxu1 %v8619_v2 }
  0x72   :  { %398 = vmatmul.mubr.bf16.gmra.mxu0 %v8253_v59  ;;  %707 = vmatmul.mubr.bf16.gmra.mxu1 %v8253_v59 }
  0x73   :  { %407 = vmatprep.mubr.bf16.mxu0 %v8619_v2  ;;  %716 = vmatprep.mubr.bf16.mxu1 %v8619_v2 }
  0x7a   :  { %408 = vmatmul.mubr.bf16.gmra.mxu0 %v8254_v5  ;;  %717 = vmatmul.mubr.bf16.gmra.mxu1 %v8254_v5 }
  0x7b   :  { %417 = vmatprep.mubr.bf16.mxu0 %v8619_v2  ;;  %726 = vmatprep.mubr.bf16.mxu1 %v8619_v2 }
  0x82   :  { %418 = vmatmul.mubr.bf16.gmra.mxu0 %v8255_v14  ;;  %727 = vmatmul.mubr.bf16.gmra.mxu1 %v8255_v14 }
  0x83   :  { %427 = vmatprep.mubr.bf16.mxu0 %v8619_v2  ;;  %736 = vmatprep.mubr.bf16.mxu1 %v8619_v2 }
  0x8a   :  { %428 = vmatmul.mubr.bf16.gmra.mxu0 %v8256_v15  ;;  %737 = vmatmul.mubr.bf16.gmra.mxu1 %v8256_v15 }
  0x8b   :  { %437 = vmatprep.mubr.bf16.mxu0 %v8619_v2  ;;  %746 = vmatprep.mubr.bf16.mxu1 %v8619_v2 }
  0x92   :  { %438 = vmatmul.mubr.bf16.gmra.mxu0 %v8257_v16  ;;  %747 = vmatmul.mubr.bf16.gmra.mxu1 %v8257_v16 }
  0x93   :  { %447 = vmatprep.mubr.bf16.mxu0 %v8619_v2  ;;  %756 = vmatprep.mubr.bf16.mxu1 %v8619_v2 }
  0x9a   :  { %448 = vmatmul.mubr.bf16.gmra.mxu0 %v8258_v17  ;;  %757 = vmatmul.mubr.bf16.gmra.mxu1 %v8258_v17 }
  0x9b   :  { %457 = vmatprep.mubr.bf16.mxu0 %v8619_v2  ;;  %766 = vmatprep.mubr.bf16.mxu1 %v8619_v2 }
  0xa2   :  { %458 = vmatmul.mubr.bf16.gmra.mxu0 %v8259_v18  ;;  %767 = vmatmul.mubr.bf16.gmra.mxu1 %v8259_v18 }
  0xa3   :  { %467 = vmatprep.mubr.bf16.mxu0 %v8619_v2  ;;  %776 = vmatprep.mubr.bf16.mxu1 %v8619_v2 }
  0xaa   :  { %468 = vmatmul.mubr.bf16.gmra.mxu0 %v8261_v19  ;;  %777 = vmatmul.mubr.bf16.gmra.mxu1 %v8261_v19 }
  0xe2   :  { %v299_v22 = vpop.f32.mrf.mxu0  ;;  %v608_v23 = vpop.f32.mrf.mxu1 }
  0xe4   :  { %v301_v24 = vpop.f32.mrf.mxu0  ;;  %v610_v2 = vpop.f32.mrf.mxu1 }
  0xe5   :  { %v787_v25 = vmax.f32 %v299_v22, %v301_v24  ;;  %v823_v26 = vmax.f32 %v608_v23, %v610_v2 }
  0xe6   :  { %v303_v27 = vpop.f32.mrf.mxu0  ;;  %v612_v28 = vpop.f32.mrf.mxu1 }
  0xe7   :  { %v859_v29 = vmax.f32 %v787_v25, %v823_v26  ;;  %v8294_v25 = vld [vmem:[%s10903_s2 + $0x1b8] sm:$0xff]  }
  0xe8   :  { %v305_v30 = vpop.f32.mrf.mxu0  ;;  %v614_v31 = vpop.f32.mrf.mxu1  ;;  %v8302_v26 = vld [vmem:[%s10903_s2 + $0xb8] sm:$0xff]  }
  0xe9   :  { %v895_v32 = vmax.f32 %v859_v29, 0.0  ;;  %v788_v33 = vmax.f32 %v303_v27, %v305_v30  ;;  %v824_v34 = vmax.f32 %v612_v28, %v614_v31  ;;  %v8295_v31 = vld [vmem:[%s10903_s2 + $0x1f0] sm:$0xff]  }
  0xea   :  { %v309_v35 = vpop.f32.mrf.mxu0  ;;  %v618_v36 = vpop.f32.mrf.mxu1 }
  0xeb   :  { %v967_v37 = vcombine.high %v895_v32, %v895_v32  ;;  %v860_v38 = vmax.f32 %v788_v33, %v824_v34 }
  0xec   :  { %v311_v39 = vpop.f32.mrf.mxu0  ;;  %v620_v40 = vpop.f32.mrf.mxu1 }
  0xed   :  { %v8944_v41 = vcombine.low %v895_v32, %v967_v37  ;;  %v896_v42 = vmax.f32 %v860_v38, 0.0  ;;  %v789_v43 = vmax.f32 %v309_v35, %v311_v39  ;;  %v825_v44 = vmax.f32 %v618_v36, %v620_v40  ;;  %v8303_v32 = vld [vmem:[%s10903_s2 + $0xf0] sm:$0xff]  }
  0xee   :  { %v313_v45 = vpop.f32.mrf.mxu0  ;;  %v622_v46 = vpop.f32.mrf.mxu1  ;;  %v8296_v36 = vld [vmem:[%s10903_s2 + $0x1b0] sm:$0xff]  }
  0xef   :  { %1063 = vst [vmem:[#allocation2] sm:$0xff] %v8944_v41  ;;  %1064 = vst [vmem:[#allocation2 + $0x8] sm:$0xf] %v896_v42  ;;  %v861_v47 = vmax.f32 %v789_v43, %v825_v44  ;;  %v968_v50 = vcombine.high %v896_v42, %v896_v42  ;;  %v8305_v42 = vld [vmem:[%s10903_s2 + $0xb0] sm:$0xff]  }
  0xf0   :  { %v315_v48 = vpop.f32.mrf.mxu0  ;;  %v624_v49 = vpop.f32.mrf.mxu1 }
  0xf1   :  { %v897_v51 = vmax.f32 %v861_v47, 0.0  ;;  %v790_v52 = vmax.f32 %v313_v45, %v315_v48  ;;  %v826_v53 = vmax.f32 %v622_v46, %v624_v49  ;;  %v8297_v45 = vld [vmem:[%s10903_s2 + $0x1e8] sm:$0xff]  }
  0xf2   :  { %v319_v54 = vpop.f32.mrf.mxu0  ;;  %v628_v55 = vpop.f32.mrf.mxu1  ;;  %v8307_v46 = vld [vmem:[%s10903_s2 + $0xe8] sm:$0xff]  }
  0xf3   :  { %v969_v56 = vcombine.high %v897_v51, %v897_v51  ;;  %v1016_v57 = vcombine.low %v968_v50, %v897_v51  ;;  %v862_v58 = vmax.f32 %v790_v52, %v826_v53  ;;  %v8298_v51 = vld [vmem:[%s10903_s2 + $0x1a8] sm:$0xff]   ;;  %v8299_v52 = vld [vmem:[%s10903_s2 + $0x1e0] sm:$0xff]  }
  0xf4   :  { %v321_v59 = vpop.f32.mrf.mxu0  ;;  %v630_v60 = vpop.f32.mrf.mxu1 }
  0xf5   :  { %1065 = vst [vmem:[#allocation2 + $0x10] sm:$0xff] %v1016_v57  ;;  %1066 = vst [vmem:[#allocation2 + $0x18] sm:$0xf] %v969_v56  ;;  %v898_v61 = vmax.f32 %v862_v58, 0.0  ;;  %v791_v62 = vmax.f32 %v319_v54, %v321_v59  ;;  %v827_v63 = vmax.f32 %v628_v55, %v630_v60  ;;  %v1143_v29 = vpack.c.bf16 %v1016_v57, %v8944_v41  ;;  %v8309_v58 = vld [vmem:[%s10903_s2 + $0xe0] sm:$0xff]  }
  0xf6   :  { %v323_v0 = vpop.f32.mrf.mxu0  ;;  %v632_v1 = vpop.f32.mrf.mxu1  ;;  %v1127_v18 = vld [vmem:[#allocation2 + $0x1] sm:$0xff] }
  0xf7   :  { %v970_v3 = vcombine.high %v898_v61, %v898_v61  ;;  %v863_v4 = vmax.f32 %v791_v62, %v827_v63  ;;  %v1272_v2 = vld [vmem:[#allocation2 + $0x4] sm:$0xff] }
  0xf8   :  { %v325_v5 = vpop.f32.mrf.mxu0  ;;  %v634_v6 = vpop.f32.mrf.mxu1 }
  0xf9   :  { %v8947_v7 = vcombine.low %v898_v61, %v970_v3  ;;  %v899_v8 = vmax.f32 %v863_v4, 0.0  ;;  %v792_v9 = vmax.f32 %v323_v0, %v325_v5  ;;  %v828_v10 = vmax.f32 %v632_v1, %v634_v6 }
  0xfa   :  { %v329_v11 = vpop.f32.mrf.mxu0  ;;  %v638_v12 = vpop.f32.mrf.mxu1 }
  0xfb   :  { %1067 = vst [vmem:[#allocation2 + $0x20] sm:$0xff] %v8947_v7  ;;  %1068 = vst [vmem:[#allocation2 + $0x28] sm:$0xf] %v899_v8  ;;  %v864_v13 = vmax.f32 %v792_v9, %v828_v10  ;;  %v1306_v14 = vpack.c.bf16 %v8947_v7, %v1016_v57  ;;  %v971_v15 = vcombine.high %v899_v8, %v899_v8  ;;  %v8308_v57 = vld [vmem:[%s10903_s2 + $0xa8] sm:$0xff]  }
  0xfc   :  { %v331_v16 = vpop.f32.mrf.mxu0  ;;  %v640_v17 = vpop.f32.mrf.mxu1  ;;  %v1128_v19 = vld [vmem:[#allocation2 + $0x11] sm:$0xff] }
  0xfd   :  { %v1273_v20 = vld [vmem:[#allocation2 + $0x14] sm:$0xff]  ;;  %v900_v21 = vmax.f32 %v864_v13, 0.0  ;;  %v793_v22 = vmax.f32 %v329_v11, %v331_v16  ;;  %v829_v23 = vmax.f32 %v638_v12, %v640_v17  ;;  %v1144_v24 = vpack.c.bf16 %v1128_v19, %v1127_v18  ;;  %1482 = vmatprep.mubr.bf16.mxu0 %v1306_v14  ;;  %v8304_v17 = vld [vmem:[%s10903_s2 + $0x1d8] sm:$0xff]  }
  0xfe   :  { %v333_v27 = vpop.f32.mrf.mxu0  ;;  %v642_v28 = vpop.f32.mrf.mxu1  ;;  %v1305_v30 = vpack.c.bf16 %v1273_v20, %v1272_v2  ;;  %v8300_v12 = vld [vmem:[%s10903_s2 + $0x1a0] sm:$0xff]  }
  0xff   :  { %v972_v33 = vcombine.high %v900_v21, %v900_v21  ;;  %v8964_v34 = vcombine.low %v971_v15, %v900_v21  ;;  %v865_v35 = vmax.f32 %v793_v22, %v829_v23  ;;  %1675 = vmatprep.mubr.bf16.mxu1 %v1144_v24  ;;  %v8311_v18 = vld [vmem:[%s10903_s2 + $0xa0] sm:$0xff]  }
 0x100   :  { %v335_v37 = vpop.f32.mrf.mxu0  ;;  %v644_v38 = vpop.f32.mrf.mxu1  ;;  %1676 = vmatmul.mubr.bf16.vlgmr.msra.gmra.mxu1 %v1143_v29  ;;  %1483 = vmatmul.mubr.bf16.vlgmr.msra.gmra.mxu0 %v1305_v30  ;;  %v8310_v29 = vld [vmem:[%s10903_s2 + $0x1d0] sm:$0xff]   ;;  %v8314_v30 = vld [vmem:[%s10903_s2 + $0x98] sm:$0xff]  }
 0x101   :  { %1069 = vst [vmem:[#allocation2 + $0x30] sm:$0xff] %v8964_v34  ;;  %1070 = vst [vmem:[#allocation2 + $0x38] sm:$0xf] %v972_v33  ;;  %v901_v39 = vmax.f32 %v865_v35, 0.0  ;;  %v794_v40 = vmax.f32 %v333_v27, %v335_v37  ;;  %v830_v41 = vmax.f32 %v642_v28, %v644_v38  ;;  %7314 = vmatpush3.bf16.msra.mxu0 %v8294_v25  ;;  %7378 = vmatpush3.bf16.msra.mxu1 %v8302_v26  ;;  %v8306_v26 = vld [vmem:[%s10903_s2 + $0x198] sm:$0xff]   ;;  %v8315_v33 = vld [vmem:[%s10903_s2 + $0xd0] sm:$0xff]  }
 0x102   :  { %v339_v43 = vpop.f32.mrf.mxu0  ;;  %v648_v44 = vpop.f32.mrf.mxu1  ;;  %7315 = vmatprep.subr.bf16.mxu0 %v8295_v31  ;;  %7379 = vmatprep.subr.bf16.mxu1 %v8303_v32  ;;  %v1129_v3 = vld [vmem:[#allocation2 + $0x21] sm:$0xff]  ;;  %v1145_v15 = vpack.c.bf16 %v8964_v34, %v8947_v7 }
 0x103   :  { %v973_v47 = vcombine.high %v901_v39, %v901_v39  ;;  %v866_v48 = vmax.f32 %v794_v40, %v830_v41  ;;  %v1274_v11 = vld [vmem:[#allocation2 + $0x24] sm:$0xff] }
 0x104   :  { %v341_v49 = vpop.f32.mrf.mxu0  ;;  %v650_v50 = vpop.f32.mrf.mxu1  ;;  %v8313_v7 = vld [vmem:[%s10903_s2 + $0xd8] sm:$0xff]   ;;  %v8312_v40 = vld [vmem:[%s10903_s2 + $0x190] sm:$0xff]  }
 0x105   :  { %v8985_v53 = vcombine.low %v901_v39, %v973_v47  ;;  %v902_v54 = vmax.f32 %v866_v48, 0.0  ;;  %v795_v55 = vmax.f32 %v339_v43, %v341_v49  ;;  %v831_v56 = vmax.f32 %v648_v44, %v650_v50  ;;  %7316 = vmatpush3.bf16.msra.mxu0 %v8296_v36  ;;  %7380 = vmatpush3.bf16.msra.mxu1 %v8305_v42  ;;  %v8316_v43 = vld [vmem:[%s10903_s2 + $0x1c8] sm:$0xff]   ;;  %v8317_v44 = vld [vmem:[%s10903_s2 + $0x90] sm:$0xff]  }
 0x106   :  { %v343_v59 = vpop.f32.mrf.mxu0  ;;  %v652_v60 = vpop.f32.mrf.mxu1  ;;  %7317 = vmatprep.subr.bf16.mxu0 %v8297_v45  ;;  %7381 = vmatprep.subr.bf16.mxu1 %v8307_v46  ;;  %v8319_v45 = vld [vmem:[%s10903_s2 + $0xc8] sm:$0xff]  }
 0x107   :  { %1071 = vst [vmem:[#allocation2 + $0x40] sm:$0xff] %v8985_v53  ;;  %1072 = vst [vmem:[#allocation2 + $0x48] sm:$0xf] %v902_v54  ;;  %v867_v61 = vmax.f32 %v795_v55, %v831_v56  ;;  %v1308_v62 = vpack.c.bf16 %v8985_v53, %v8964_v34  ;;  %v974_v63 = vcombine.high %v902_v54, %v902_v54 }
 0x108   :  { %v345_v0 = vpop.f32.mrf.mxu0  ;;  %v654_v1 = vpop.f32.mrf.mxu1  ;;  %v1130_v4 = vld [vmem:[#allocation2 + $0x31] sm:$0xff] }
 0x109   :  { %v1275_v5 = vld [vmem:[#allocation2 + $0x34] sm:$0xff]  ;;  %v903_v6 = vmax.f32 %v867_v61, 0.0  ;;  %v796_v8 = vmax.f32 %v343_v59, %v345_v0  ;;  %v832_v9 = vmax.f32 %v652_v60, %v654_v1  ;;  %v1146_v10 = vpack.c.bf16 %v1130_v4, %v1129_v3  ;;  %1490 = vmatprep.mubr.bf16.mxu0 %v1308_v62  ;;  %7318 = vmatpush3.bf16.msra.mxu0 %v8298_v51 }
 0x10a   :  { %v349_v13 = vpop.f32.mrf.mxu0  ;;  %v658_v14 = vpop.f32.mrf.mxu1  ;;  %v1307_v16 = vpack.c.bf16 %v1275_v5, %v1274_v11  ;;  %7319 = vmatprep.subr.bf16.mxu0 %v8299_v52  ;;  %7382 = vmatpush3.bf16.msra.mxu1 %v8308_v57  ;;  %v8318_v60 = vld [vmem:[%s10903_s2 + $0x188] sm:$0xff]   ;;  %v8322_v3 = vld [vmem:[%s10903_s2 + $0x1c0] sm:$0xff]  }
 0x10b   :  { %v975_v19 = vcombine.high %v903_v6, %v903_v6  ;;  %v9007_v20 = vcombine.low %v974_v63, %v903_v6  ;;  %v868_v21 = vmax.f32 %v796_v8, %v832_v9  ;;  %1683 = vmatprep.mubr.bf16.mxu1 %v1146_v10  ;;  %7383 = vmatprep.subr.bf16.mxu1 %v8309_v58  ;;  %v8320_v1 = vld [vmem:[%s10903_s2 + $0x88] sm:$0xff]  }
 0x10c   :  { %v351_v22 = vpop.f32.mrf.mxu0  ;;  %v660_v23 = vpop.f32.mrf.mxu1  ;;  %1684 = vmatmul.mubr.bf16.gmra.mxu1 %v1145_v15  ;;  %1491 = vmatmul.mubr.bf16.gmra.mxu0 %v1307_v16  ;;  %v8323_v16 = vld [vmem:[%s10903_s2 + $0x80] sm:$0xff]  }
 0x10d   :  { %1073 = vst [vmem:[#allocation2 + $0x50] sm:$0xff] %v9007_v20  ;;  %1074 = vst [vmem:[#allocation2 + $0x58] sm:$0xf] %v975_v19  ;;  %v904_v24 = vmax.f32 %v868_v21, 0.0  ;;  %v797_v2 = vmax.f32 %v349_v13, %v351_v22  ;;  %v833_v25 = vmax.f32 %v658_v14, %v660_v23  ;;  %7320 = vmatpush3.bf16.msra.mxu0 %v8300_v12  ;;  %v8324_v13 = vld [vmem:[%s10903_s2 + $0x180] sm:$0xff]  }
 0x10e   :  { %v353_v27 = vpop.f32.mrf.mxu0  ;;  %v662_v28 = vpop.f32.mrf.mxu1  ;;  %7321 = vmatprep.subr.bf16.mxu0 %v8304_v17  ;;  %7384 = vmatpush3.bf16.msra.mxu1 %v8311_v18  ;;  %v9042_v51 = vld [vmem:[#allocation2 + $0x41] sm:$0xff]  ;;  %v1147_v63 = vpack.c.bf16 %v9007_v20, %v8985_v53  ;;  %v8321_v53 = vld [vmem:[%s10903_s2 + $0xc0] sm:$0xff]  }
 0x10f   :  { %v976_v31 = vcombine.high %v904_v24, %v904_v24  ;;  %v869_v32 = vmax.f32 %v797_v2, %v833_v25  ;;  %7385 = vmatprep.subr.bf16.mxu1 %v8313_v7  ;;  %v1276_v59 = vld [vmem:[#allocation2 + $0x44] sm:$0xff] }
 0x110   :  { %v355_v34 = vpop.f32.mrf.mxu0  ;;  %v664_v35 = vpop.f32.mrf.mxu1  ;;  %v8325_v17 = vld [vmem:[%s10903_s2 + $0x278] sm:$0xff]  }
 0x111   :  { %v9025_v36 = vcombine.low %v904_v24, %v976_v31  ;;  %v905_v37 = vmax.f32 %v869_v32, 0.0  ;;  %v798_v38 = vmax.f32 %v353_v27, %v355_v34  ;;  %v834_v39 = vmax.f32 %v662_v28, %v664_v35  ;;  %7322 = vmatpush3.bf16.msra.mxu0 %v8306_v26 }
 0x112   :  { %v359_v41 = vpop.f32.mrf.mxu0  ;;  %v668_v42 = vpop.f32.mrf.mxu1  ;;  %7323 = vmatprep.subr.bf16.mxu0 %v8310_v29  ;;  %7386 = vmatpush3.bf16.msra.mxu1 %v8314_v30 }
 0x113   :  { %1075 = vst [vmem:[#allocation2 + $0x60] sm:$0xff] %v9025_v36  ;;  %1076 = vst [vmem:[#allocation2 + $0x68] sm:$0xf] %v905_v37  ;;  %v870_v46 = vmax.f32 %v798_v38, %v834_v39  ;;  %v1310_v47 = vpack.c.bf16 %v9025_v36, %v9007_v20  ;;  %7387 = vmatprep.subr.bf16.mxu1 %v8315_v33  ;;  %v977_v48 = vcombine.high %v905_v37, %v905_v37  ;;  %v8333_v20 = vld [vmem:[%s10903_s2 + $0x2f8] sm:$0xff]  }
 0x114   :  { %v361_v49 = vpop.f32.mrf.mxu0  ;;  %v670_v50 = vpop.f32.mrf.mxu1  ;;  %v1132_v52 = vld [vmem:[#allocation2 + $0x51] sm:$0xff] }
 0x115   :  { %v1277_v54 = vld [vmem:[#allocation2 + $0x54] sm:$0xff]  ;;  %v906_v55 = vmax.f32 %v870_v46, 0.0  ;;  %v799_v56 = vmax.f32 %v359_v41, %v361_v49  ;;  %v835_v57 = vmax.f32 %v668_v42, %v670_v50  ;;  %v1148_v58 = vpack.c.bf16 %v1132_v52, %v9042_v51  ;;  %1498 = vmatprep.mubr.bf16.mxu0 %v1310_v47  ;;  %7324 = vmatpush3.bf16.msra.mxu0 %v8312_v40 }
 0x116   :  { %v363_v61 = vpop.f32.mrf.mxu0  ;;  %v672_v62 = vpop.f32.mrf.mxu1  ;;  %v1309_v0 = vpack.c.bf16 %v1277_v54, %v1276_v59  ;;  %7325 = vmatprep.subr.bf16.mxu0 %v8316_v43  ;;  %7388 = vmatpush3.bf16.msra.mxu1 %v8317_v44 }
 0x117   :  { %v978_v4 = vcombine.high %v906_v55, %v906_v55  ;;  %v9056_v5 = vcombine.low %v977_v48, %v906_v55  ;;  %v871_v6 = vmax.f32 %v799_v56, %v835_v57  ;;  %1691 = vmatprep.mubr.bf16.mxu1 %v1148_v58  ;;  %7389 = vmatprep.subr.bf16.mxu1 %v8319_v45 }
 0x118   :  { %v365_v8 = vpop.f32.mrf.mxu0  ;;  %v674_v9 = vpop.f32.mrf.mxu1  ;;  %1692 = vmatmul.mubr.bf16.gmra.mxu1 %v1147_v63  ;;  %1499 = vmatmul.mubr.bf16.gmra.mxu0 %v1309_v0 }
 0x119   :  { %1077 = vst [vmem:[#allocation2 + $0x70] sm:$0xff] %v9056_v5  ;;  %1078 = vst [vmem:[#allocation2 + $0x78] sm:$0xf] %v978_v4  ;;  %v907_v10 = vmax.f32 %v871_v6, 0.0  ;;  %v800_v11 = vmax.f32 %v363_v61, %v365_v8  ;;  %v836_v12 = vmax.f32 %v672_v62, %v674_v9  ;;  %7326 = vmatpush3.bf16.msra.mxu0 %v8318_v60 }
 0x11a   :  { %v369_v14 = vpop.f32.mrf.mxu0  ;;  %v678_v15 = vpop.f32.mrf.mxu1  ;;  %7390 = vmatpush3.bf16.msra.mxu1 %v8320_v1  ;;  %7327 = vmatprep.subr.bf16.mxu0 %v8322_v3  ;;  %v9075_v32 = vld [vmem:[#allocation2 + $0x61] sm:$0xff]  ;;  %v1149_v43 = vpack.c.bf16 %v9056_v5, %v9025_v36 }
 0x11b   :  { %v979_v18 = vcombine.high %v907_v10, %v907_v10  ;;  %v872_v19 = vmax.f32 %v800_v11, %v836_v12  ;;  %7391 = vmatprep.subr.bf16.mxu1 %v8321_v53  ;;  %v1278_v40 = vld [vmem:[#allocation2 + $0x64] sm:$0xff] }
 0x11c   :  { %v371_v21 = vpop.f32.mrf.mxu0  ;;  %v680_v7 = vpop.f32.mrf.mxu1 }
 0x11d   :  { %v1023_v22 = vcombine.low %v907_v10, %v979_v18  ;;  %v908_v23 = vmax.f32 %v872_v19, 0.0  ;;  %v801_v24 = vmax.f32 %v369_v14, %v371_v21  ;;  %v837_v2 = vmax.f32 %v678_v15, %v680_v7  ;;  %7328 = vmatpush3.bf16.msra.mxu0 %v8324_v13 }
 0x11e   :  { %v373_v25 = vpop.f32.mrf.mxu0  ;;  %v682_v26 = vpop.f32.mrf.mxu1  ;;  %7392 = vmatpush3.bf16.msra.mxu1 %v8323_v16  ;;  %7441 = vmatprep.subr.bf16.mxu0 %v8325_v17 }
 0x11f   :  { %1079 = vst [vmem:[#allocation2 + $0x80] sm:$0xff] %v1023_v22  ;;  %1080 = vst [vmem:[#allocation2 + $0x88] sm:$0xf] %v908_v23  ;;  %v873_v27 = vmax.f32 %v801_v24, %v837_v2  ;;  %v1312_v28 = vpack.c.bf16 %v1023_v22, %v9056_v5  ;;  %7505 = vmatprep.subr.bf16.mxu1 %v8333_v20  ;;  %v980_v29 = vcombine.high %v908_v23, %v908_v23 }
 0x120   :  { %v375_v30 = vpop.f32.mrf.mxu0  ;;  %v684_v31 = vpop.f32.mrf.mxu1  ;;  %v9077_v33 = vld [vmem:[#allocation2 + $0x71] sm:$0xff] }
 0x121   :  { %v1279_v34 = vld [vmem:[#allocation2 + $0x74] sm:$0xff]  ;;  %v909_v35 = vmax.f32 %v873_v27, 0.0  ;;  %v802_v37 = vmax.f32 %v373_v25, %v375_v30  ;;  %v838_v38 = vmax.f32 %v682_v26, %v684_v31  ;;  %v1150_v39 = vpack.c.bf16 %v9077_v33, %v9075_v32  ;;  %1506 = vmatprep.mubr.bf16.mxu0 %v1312_v28 }
 0x122   :  { %v379_v41 = vpop.f32.mrf.mxu0  ;;  %v688_v42 = vpop.f32.mrf.mxu1  ;;  %v1311_v44 = vpack.c.bf16 %v1279_v34, %v1278_v40 }
 0x123   :  { %v981_v45 = vcombine.high %v909_v35, %v909_v35  ;;  %v1024_v46 = vcombine.low %v980_v29, %v909_v35  ;;  %v874_v47 = vmax.f32 %v802_v37, %v838_v38  ;;  %1699 = vmatprep.mubr.bf16.mxu1 %v1150_v39 }
 0x124   :  { %v381_v48 = vpop.f32.mrf.mxu0  ;;  %v690_v49 = vpop.f32.mrf.mxu1  ;;  %1700 = vmatmul.mubr.bf16.gmra.mxu1 %v1149_v43  ;;  %1507 = vmatmul.mubr.bf16.gmra.mxu0 %v1311_v44 }
 0x125   :  { %1081 = vst [vmem:[#allocation2 + $0x90] sm:$0xff] %v1024_v46  ;;  %1082 = vst [vmem:[#allocation2 + $0x98] sm:$0xf] %v981_v45  ;;  %v910_v50 = vmax.f32 %v874_v47, 0.0  ;;  %v803_v52 = vmax.f32 %v379_v41, %v381_v48  ;;  %v839_v54 = vmax.f32 %v688_v42, %v690_v49 }
 0x126   :  { %v383_v55 = vpop.f32.mrf.mxu0  ;;  %v692_v56 = vpop.f32.mrf.mxu1 }
 0x127   :  { %v982_v57 = vcombine.high %v910_v50, %v910_v50  ;;  %v875_v58 = vmax.f32 %v803_v52, %v839_v54 }
 0x128   :  { %v385_v59 = vpop.f32.mrf.mxu0  ;;  %v694_v36 = vpop.f32.mrf.mxu1 }
 0x129   :  { %v1025_v60 = vcombine.low %v910_v50, %v982_v57  ;;  %v911_v61 = vmax.f32 %v875_v58, 0.0  ;;  %v804_v62 = vmax.f32 %v383_v55, %v385_v59  ;;  %v840_v63 = vmax.f32 %v692_v56, %v694_v36 }
 0x12a   :  { %v389_v0 = vpop.f32.mrf.mxu0  ;;  %v698_v1 = vpop.f32.mrf.mxu1 }
 0x12b   :  { %1083 = vst [vmem:[#allocation2 + $0xa0] sm:$0xff] %v1025_v60  ;;  %1084 = vst [vmem:[#allocation2 + $0xa8] sm:$0xf] %v911_v61  ;;  %v876_v3 = vmax.f32 %v804_v62, %v840_v63  ;;  %v983_v6 = vcombine.high %v911_v61, %v911_v61 }
 0x12c   :  { %v391_v4 = vpop.f32.mrf.mxu0  ;;  %v700_v5 = vpop.f32.mrf.mxu1 }
 0x12d   :  { %v912_v53 = vmax.f32 %v876_v3, 0.0  ;;  %v805_v8 = vmax.f32 %v389_v0, %v391_v4  ;;  %v841_v9 = vmax.f32 %v698_v1, %v700_v5 }
 0x12e   :  { %v393_v10 = vpop.f32.mrf.mxu0  ;;  %v702_v11 = vpop.f32.mrf.mxu1 }
 0x12f   :  { %v984_v12 = vcombine.high %v912_v53, %v912_v53  ;;  %v1026_v13 = vcombine.low %v983_v6, %v912_v53  ;;  %v877_v14 = vmax.f32 %v805_v8, %v841_v9 }
 0x130   :  { %v395_v15 = vpop.f32.mrf.mxu0  ;;  %v704_v16 = vpop.f32.mrf.mxu1 }
 0x131   :  { %1085 = vst [vmem:[#allocation2 + $0xb0] sm:$0xff] %v1026_v13  ;;  %1086 = vst [vmem:[#allocation2 + $0xb8] sm:$0xf] %v984_v12  ;;  %v913_v17 = vmax.f32 %v877_v14, 0.0  ;;  %v806_v18 = vmax.f32 %v393_v10, %v395_v15  ;;  %v842_v19 = vmax.f32 %v702_v11, %v704_v16 }
 0x132   :  { %v399_v20 = vpop.f32.mrf.mxu0  ;;  %v708_v21 = vpop.f32.mrf.mxu1 }
 0x133   :  { %v985_v7 = vcombine.high %v913_v17, %v913_v17  ;;  %v878_v22 = vmax.f32 %v806_v18, %v842_v19 }
 0x134   :  { %v401_v23 = vpop.f32.mrf.mxu0  ;;  %v710_v24 = vpop.f32.mrf.mxu1 }
 0x135   :  { %v9083_v2 = vcombine.low %v913_v17, %v985_v7  ;;  %v914_v25 = vmax.f32 %v878_v22, 0.0  ;;  %v807_v26 = vmax.f32 %v399_v20, %v401_v23  ;;  %v843_v27 = vmax.f32 %v708_v21, %v710_v24 }
 0x136   :  { %v403_v28 = vpop.f32.mrf.mxu0  ;;  %v712_v29 = vpop.f32.mrf.mxu1 }
 0x137   :  { %1087 = vst [vmem:[#allocation2 + $0xc0] sm:$0xff] %v9083_v2  ;;  %1088 = vst [vmem:[#allocation2 + $0xc8] sm:$0xf] %v914_v25  ;;  %v879_v30 = vmax.f32 %v807_v26, %v843_v27  ;;  %v986_v35 = vcombine.high %v914_v25, %v914_v25 }
 0x138   :  { %v405_v31 = vpop.f32.mrf.mxu0  ;;  %v714_v34 = vpop.f32.mrf.mxu1 }
 0x139   :  { %v915_v37 = vmax.f32 %v879_v30, 0.0  ;;  %v808_v38 = vmax.f32 %v403_v28, %v405_v31  ;;  %v844_v39 = vmax.f32 %v712_v29, %v714_v34 }
 0x13a   :  { %v409_v40 = vpop.f32.mrf.mxu0  ;;  %v718_v41 = vpop.f32.mrf.mxu1 }
 0x13b   :  { %v987_v42 = vcombine.high %v915_v37, %v915_v37  ;;  %v1028_v43 = vcombine.low %v986_v35, %v915_v37  ;;  %v880_v44 = vmax.f32 %v808_v38, %v844_v39 }
 0x13c   :  { %v411_v45 = vpop.f32.mrf.mxu0  ;;  %v720_v46 = vpop.f32.mrf.mxu1 }
 0x13d   :  { %1089 = vst [vmem:[#allocation2 + $0xd0] sm:$0xff] %v1028_v43  ;;  %1090 = vst [vmem:[#allocation2 + $0xd8] sm:$0xf] %v987_v42  ;;  %v916_v47 = vmax.f32 %v880_v44, 0.0  ;;  %v809_v48 = vmax.f32 %v409_v40, %v411_v45  ;;  %v845_v49 = vmax.f32 %v718_v41, %v720_v46  ;;  %v1151_v15 = vpack.c.bf16 %v1028_v43, %v9083_v2 }
 0x13e   :  { %v413_v50 = vpop.f32.mrf.mxu0  ;;  %v722_v52 = vpop.f32.mrf.mxu1  ;;  %v1135_v5 = vld [vmem:[#allocation2 + $0xc1] sm:$0xff] }
 0x13f   :  { %v988_v54 = vcombine.high %v916_v47, %v916_v47  ;;  %v881_v55 = vmax.f32 %v809_v48, %v845_v49  ;;  %v1280_v12 = vld [vmem:[#allocation2 + $0xc4] sm:$0xff] }
 0x140   :  { %v415_v56 = vpop.f32.mrf.mxu0  ;;  %v724_v57 = vpop.f32.mrf.mxu1 }
 0x141   :  { %v9086_v58 = vcombine.low %v916_v47, %v988_v54  ;;  %v917_v59 = vmax.f32 %v881_v55, 0.0  ;;  %v810_v36 = vmax.f32 %v413_v50, %v415_v56  ;;  %v846_v60 = vmax.f32 %v722_v52, %v724_v57 }
 0x142   :  { %v419_v61 = vpop.f32.mrf.mxu0  ;;  %v728_v62 = vpop.f32.mrf.mxu1 }
 0x143   :  { %1091 = vst [vmem:[#allocation2 + $0xe0] sm:$0xff] %v9086_v58  ;;  %1092 = vst [vmem:[#allocation2 + $0xe8] sm:$0xf] %v917_v59  ;;  %v882_v63 = vmax.f32 %v810_v36, %v846_v60  ;;  %v1314_v0 = vpack.c.bf16 %v9086_v58, %v1028_v43  ;;  %v989_v1 = vcombine.high %v917_v59, %v917_v59 }
 0x144   :  { %v421_v3 = vpop.f32.mrf.mxu0  ;;  %v730_v4 = vpop.f32.mrf.mxu1  ;;  %v9090_v6 = vld [vmem:[#allocation2 + $0xd1] sm:$0xff] }
 0x145   :  { %v1281_v53 = vld [vmem:[#allocation2 + $0xd4] sm:$0xff]  ;;  %v918_v8 = vmax.f32 %v882_v63, 0.0  ;;  %v811_v9 = vmax.f32 %v419_v61, %v421_v3  ;;  %v847_v10 = vmax.f32 %v728_v62, %v730_v4  ;;  %v1152_v11 = vpack.c.bf16 %v9090_v6, %v1135_v5  ;;  %1514 = vmatprep.mubr.bf16.mxu0 %v1314_v0 }
 0x146   :  { %v423_v13 = vpop.f32.mrf.mxu0  ;;  %v732_v14 = vpop.f32.mrf.mxu1  ;;  %v1313_v16 = vpack.c.bf16 %v1281_v53, %v1280_v12 }
 0x147   :  { %v990_v17 = vcombine.high %v918_v8, %v918_v8  ;;  %v1030_v18 = vcombine.low %v989_v1, %v918_v8  ;;  %v883_v19 = vmax.f32 %v811_v9, %v847_v10  ;;  %1707 = vmatprep.mubr.bf16.mxu1 %v1152_v11 }
 0x148   :  { %v425_v20 = vpop.f32.mrf.mxu0  ;;  %v734_v21 = vpop.f32.mrf.mxu1  ;;  %1708 = vmatmul.mubr.bf16.gmra.mxu1 %v1151_v15  ;;  %1515 = vmatmul.mubr.bf16.gmra.mxu0 %v1313_v16 }
 0x149   :  { %1093 = vst [vmem:[#allocation2 + $0xf0] sm:$0xff] %v1030_v18  ;;  %1094 = vst [vmem:[#allocation2 + $0xf8] sm:$0xf] %v990_v17  ;;  %v919_v7 = vmax.f32 %v883_v19, 0.0  ;;  %v812_v22 = vmax.f32 %v423_v13, %v425_v20  ;;  %v848_v23 = vmax.f32 %v732_v14, %v734_v21  ;;  %v1153_v56 = vpack.c.bf16 %v1030_v18, %v9086_v58 }
 0x14a   :  { %v429_v24 = vpop.f32.mrf.mxu0  ;;  %v738_v25 = vpop.f32.mrf.mxu1  ;;  %v9094_v26 = vld [vmem:[#allocation2 + $0xe1] sm:$0xff] }
 0x14b   :  { %v991_v27 = vcombine.high %v919_v7, %v919_v7  ;;  %v884_v2 = vmax.f32 %v812_v22, %v848_v23  ;;  %v1780_v28 = vpack.c.bf16 %v9094_v26, %v9090_v6  ;;  %v1282_v52 = vld [vmem:[#allocation2 + $0xe4] sm:$0xff] }
 0x14c   :  { %v431_v29 = vpop.f32.mrf.mxu0  ;;  %v740_v30 = vpop.f32.mrf.mxu1 }
 0x14d   :  { %v9098_v31 = vcombine.low %v919_v7, %v991_v27  ;;  %v920_v34 = vmax.f32 %v884_v2, 0.0  ;;  %v813_v35 = vmax.f32 %v429_v24, %v431_v29  ;;  %v849_v37 = vmax.f32 %v738_v25, %v740_v30 }
 0x14e   :  { %v433_v38 = vpop.f32.mrf.mxu0  ;;  %v742_v39 = vpop.f32.mrf.mxu1 }
 0x14f   :  { %1095 = vst [vmem:[#allocation2 + $0x100] sm:$0xff] %v9098_v31  ;;  %1096 = vst [vmem:[#allocation2 + $0x108] sm:$0xf] %v920_v34  ;;  %v885_v40 = vmax.f32 %v813_v35, %v849_v37  ;;  %v1316_v41 = vpack.c.bf16 %v9098_v31, %v1030_v18  ;;  %v992_v42 = vcombine.high %v920_v34, %v920_v34 }
 0x150   :  { %v435_v43 = vpop.f32.mrf.mxu0  ;;  %v744_v44 = vpop.f32.mrf.mxu1  ;;  %v9102_v45 = vld [vmem:[#allocation2 + $0xf1] sm:$0xff] }
 0x151   :  { %v1283_v46 = vld [vmem:[#allocation2 + $0xf4] sm:$0xff]  ;;  %v921_v47 = vmax.f32 %v885_v40, 0.0  ;;  %v814_v48 = vmax.f32 %v433_v38, %v435_v43  ;;  %v850_v49 = vmax.f32 %v742_v39, %v744_v44  ;;  %v1154_v50 = vpack.c.bf16 %v9102_v45, %v9094_v26  ;;  %1522 = vmatprep.mubr.bf16.mxu0 %v1316_v41 }
 0x152   :  { %v439_v54 = vpop.f32.mrf.mxu0  ;;  %v748_v55 = vpop.f32.mrf.mxu1  ;;  %v1315_v57 = vpack.c.bf16 %v1283_v46, %v1282_v52 }
 0x153   :  { %v993_v59 = vcombine.high %v921_v47, %v921_v47  ;;  %v1032_v36 = vcombine.low %v992_v42, %v921_v47  ;;  %v886_v60 = vmax.f32 %v814_v48, %v850_v49  ;;  %1715 = vmatprep.mubr.bf16.mxu1 %v1154_v50 }
 0x154   :  { %v441_v61 = vpop.f32.mrf.mxu0  ;;  %v750_v62 = vpop.f32.mrf.mxu1  ;;  %1716 = vmatmul.mubr.bf16.gmra.mxu1 %v1153_v56  ;;  %1523 = vmatmul.mubr.bf16.gmra.mxu0 %v1315_v57 }
 0x155   :  { %1097 = vst [vmem:[#allocation2 + $0x110] sm:$0xff] %v1032_v36  ;;  %1098 = vst [vmem:[#allocation2 + $0x118] sm:$0xf] %v993_v59  ;;  %v922_v63 = vmax.f32 %v886_v60, 0.0  ;;  %v815_v0 = vmax.f32 %v439_v54, %v441_v61  ;;  %v851_v1 = vmax.f32 %v748_v55, %v750_v62  ;;  %v1155_v30 = vpack.c.bf16 %v1032_v36, %v9098_v31  ;;  %v9120_v61 = vld [vmem:[#allocation2 + $0x22] sm:$0xff] }
 0x156   :  { %v443_v3 = vpop.f32.mrf.mxu0  ;;  %v752_v4 = vpop.f32.mrf.mxu1  ;;  %v9111_v20 = vld [vmem:[#allocation2 + $0x101] sm:$0xff] }
 0x157   :  { %v994_v5 = vcombine.high %v922_v63, %v922_v63  ;;  %v887_v53 = vmax.f32 %v815_v0, %v851_v1  ;;  %v1284_v27 = vld [vmem:[#allocation2 + $0x104] sm:$0xff] }
 0x158   :  { %v445_v8 = vpop.f32.mrf.mxu0  ;;  %v754_v58 = vpop.f32.mrf.mxu1 }
 0x159   :  { %v9107_v9 = vcombine.low %v922_v63, %v994_v5  ;;  %v923_v10 = vmax.f32 %v887_v53, 0.0  ;;  %v816_v11 = vmax.f32 %v443_v3, %v445_v8  ;;  %v852_v12 = vmax.f32 %v752_v4, %v754_v58 }
 0x15a   :  { %v449_v13 = vpop.f32.mrf.mxu0  ;;  %v758_v14 = vpop.f32.mrf.mxu1 }
 0x15b   :  { %1099 = vst [vmem:[#allocation2 + $0x120] sm:$0xff] %v9107_v9  ;;  %1100 = vst [vmem:[#allocation2 + $0x128] sm:$0xf] %v923_v10  ;;  %v888_v15 = vmax.f32 %v816_v11, %v852_v12  ;;  %v1318_v16 = vpack.c.bf16 %v9107_v9, %v1032_v36  ;;  %v995_v17 = vcombine.high %v923_v10, %v923_v10  ;;  %v9118_v36 = vld [vmem:[#allocation2 + $0x13] sm:$0xff]  ;;  %v1207_v10 = vld [vmem:[#allocation2 + $0x3] sm:$0xff] }
 0x15c   :  { %v451_v18 = vpop.f32.mrf.mxu0  ;;  %v760_v19 = vpop.f32.mrf.mxu1  ;;  %v9113_v21 = vld [vmem:[#allocation2 + $0x111] sm:$0xff] }
 0x15d   :  { %v1285_v7 = vld [vmem:[#allocation2 + $0x114] sm:$0xff]  ;;  %v924_v22 = vmax.f32 %v888_v15, 0.0  ;;  %v817_v23 = vmax.f32 %v449_v13, %v451_v18  ;;  %v853_v24 = vmax.f32 %v758_v14, %v760_v19  ;;  %v1156_v25 = vpack.c.bf16 %v9113_v21, %v9111_v20  ;;  %1530 = vmatprep.mubr.bf16.mxu0 %v1318_v16 }
 0x15e   :  { %v453_v2 = vpop.f32.mrf.mxu0  ;;  %v762_v29 = vpop.f32.mrf.mxu1  ;;  %v1317_v34 = vpack.c.bf16 %v1285_v7, %v1284_v27  ;;  %v1224_v15 = vpack.c.bf16 %v9118_v36, %v1207_v10 }
 0x15f   :  { %v996_v35 = vcombine.high %v924_v22, %v924_v22  ;;  %v1034_v37 = vcombine.low %v995_v17, %v924_v22  ;;  %v889_v38 = vmax.f32 %v817_v23, %v853_v24  ;;  %1723 = vmatprep.mubr.bf16.mxu1 %v1156_v25  ;;  %v1756_v17 = vld [vmem:[#allocation2 + $0x12] sm:$0xff] }
 0x160   :  { %v455_v39 = vpop.f32.mrf.mxu0  ;;  %v764_v40 = vpop.f32.mrf.mxu1  ;;  %1724 = vmatmul.mubr.bf16.gmra.mxu1 %v1155_v30  ;;  %1531 = vmatmul.mubr.bf16.gmra.mxu0 %v1317_v34  ;;  %v1773_v22 = vpack.c.bf16 %v9120_v61, %v1756_v17 }
 0x161   :  { %1101 = vst [vmem:[#allocation2 + $0x130] sm:$0xff] %v1034_v37  ;;  %1102 = vst [vmem:[#allocation2 + $0x138] sm:$0xf] %v996_v35  ;;  %v925_v41 = vmax.f32 %v889_v38, 0.0  ;;  %v818_v42 = vmax.f32 %v453_v2, %v455_v39  ;;  %v854_v43 = vmax.f32 %v762_v29, %v764_v40  ;;  %v1157_v14 = vpack.c.bf16 %v1034_v37, %v9107_v9  ;;  %v9137_v35 = vld [vmem:[#allocation2 + $0x21] sm:$0xff] }
 0x162   :  { %v459_v44 = vpop.f32.mrf.mxu0  ;;  %v768_v46 = vpop.f32.mrf.mxu1  ;;  %v9122_v1 = vld [vmem:[#allocation2 + $0x121] sm:$0xff] }
 0x163   :  { %v997_v47 = vcombine.high %v925_v41, %v925_v41  ;;  %v890_v48 = vmax.f32 %v818_v42, %v854_v43  ;;  %v9130_v11 = vld [vmem:[#allocation2 + $0x124] sm:$0xff] }
 0x164   :  { %v461_v49 = vpop.f32.mrf.mxu0  ;;  %v770_v31 = vpop.f32.mrf.mxu1  ;;  %v8326_v38 = vld [vmem:[%s10903_s2 + $0x238] sm:$0xff]  }
 0x165   :  { %v1035_v50 = vcombine.low %v925_v41, %v997_v47  ;;  %v926_v52 = vmax.f32 %v890_v48, 0.0  ;;  %v819_v54 = vmax.f32 %v459_v44, %v461_v49  ;;  %v855_v55 = vmax.f32 %v768_v46, %v770_v31  ;;  %v1191_v43 = vld [vmem:[#allocation2 + $0x2] sm:$0xff]  ;;  %v1740_v44 = vld [vmem:[#allocation2 + $0x11] sm:$0xff] }
 0x166   :  { %v463_v56 = vpop.f32.mrf.mxu0  ;;  %v772_v57 = vpop.f32.mrf.mxu1  ;;  %v9144_v46 = vld [vmem:[#allocation2 + $0x42] sm:$0xff]  ;;  %v1223_v49 = vpack.c.bf16 %v1756_v17, %v1191_v43 }
 0x167   :  { %1103 = vst [vmem:[#allocation2 + $0x140] sm:$0xff] %v1035_v50  ;;  %1104 = vst [vmem:[#allocation2 + $0x148] sm:$0xf] %v926_v52  ;;  %v891_v59 = vmax.f32 %v819_v54, %v855_v55  ;;  %v1320_v60 = vpack.c.bf16 %v1035_v50, %v1034_v37  ;;  %v998_v62 = vcombine.high %v926_v52, %v926_v52  ;;  %v9139_v37 = vld [vmem:[#allocation2 + $0x33] sm:$0xff]  ;;  %v9146_v31 = vld [vmem:[#allocation2 + $0x23] sm:$0xff] }
 0x168   :  { %v465_v63 = vpop.f32.mrf.mxu0  ;;  %v774_v0 = vpop.f32.mrf.mxu1  ;;  %v9124_v3 = vld [vmem:[#allocation2 + $0x131] sm:$0xff]  ;;  %v1772_v50 = vpack.c.bf16 %v9137_v35, %v1740_v44  ;;  %v8327_v52 = vld [vmem:[%s10903_s2 + $0x270] sm:$0xff]   ;;  %v1226_v55 = vpack.c.bf16 %v9139_v37, %v9146_v31 }
 0x169   :  { %v1287_v4 = vld [vmem:[#allocation2 + $0x134] sm:$0xff]  ;;  %v927_v5 = vmax.f32 %v891_v59, 0.0  ;;  %v820_v53 = vmax.f32 %v463_v56, %v465_v63  ;;  %v856_v8 = vmax.f32 %v772_v57, %v774_v0  ;;  %v9128_v58 = vpack.c.bf16 %v9124_v3, %v9122_v1  ;;  %1538 = vmatprep.mubr.bf16.mxu0 %v1320_v60  ;;  %v8334_v57 = vld [vmem:[%s10903_s2 + $0x2b8] sm:$0xff]   ;;  %v8328_v63 = vld [vmem:[%s10903_s2 + $0x230] sm:$0xff]  }
 0x16a   :  { %v469_v12 = vpop.f32.mrf.mxu0  ;;  %v778_v13 = vpop.f32.mrf.mxu1  ;;  %v1319_v16 = vpack.c.bf16 %v1287_v4, %v9130_v11  ;;  %v1758_v56 = vld [vmem:[#allocation2 + $0x32] sm:$0xff]  ;;  %v9183_v17 = vld [vmem:[#allocation2 + $0x43] sm:$0xff] }
 0x16b   :  { %v999_v18 = vcombine.high %v927_v5, %v927_v5  ;;  %v1036_v19 = vcombine.low %v998_v62, %v927_v5  ;;  %v892_v7 = vmax.f32 %v820_v53, %v856_v8  ;;  %1731 = vmatprep.mubr.bf16.mxu1 %v9128_v58  ;;  %v1775_v60 = vpack.c.bf16 %v9144_v46, %v1758_v56  ;;  %v8335_v62 = vld [vmem:[%s10903_s2 + $0x2f0] sm:$0xff]   ;;  %v8329_v4 = vld [vmem:[%s10903_s2 + $0x268] sm:$0xff]  }
 0x16c   :  { %v471_v23 = vpop.f32.mrf.mxu0  ;;  %v780_v24 = vpop.f32.mrf.mxu1  ;;  %1732 = vmatmul.mubr.bf16.gmra.mxu1 %v1157_v14  ;;  %1539 = vmatmul.mubr.bf16.gmra.mxu0 %v1319_v16  ;;  %v9167_v5 = vld [vmem:[#allocation2 + $0x53] sm:$0xff]  ;;  %v8337_v8 = vld [vmem:[%s10903_s2 + $0x2b0] sm:$0xff]   ;;  %v1225_v16 = vpack.c.bf16 %v1758_v56, %v9120_v61 }
 0x16d   :  { %1105 = vst [vmem:[#allocation2 + $0x150] sm:$0xff] %v1036_v19  ;;  %1106 = vst [vmem:[#allocation2 + $0x158] sm:$0xf] %v999_v18  ;;  %v928_v25 = vmax.f32 %v892_v7, 0.0  ;;  %v821_v9 = vmax.f32 %v469_v12, %v471_v23  ;;  %v857_v27 = vmax.f32 %v778_v13, %v780_v24  ;;  %2142 = vmatprep.mubr.bf16.mxu1 %v1224_v15  ;;  %1949 = vmatprep.mubr.bf16.mxu0 %v1773_v22  ;;  %v9169_v53 = vld [vmem:[#allocation2 + $0x31] sm:$0xff]  ;;  %v9174_v13 = vld [vmem:[#allocation2 + $0x62] sm:$0xff] }
 0x16e   :  { %v782_v2 = vpop.f32.mrf.mxu1  ;;  %v473_v29 = vpop.f32.mrf.mxu0  ;;  %v8330_v14 = vld [vmem:[%s10903_s2 + $0x228] sm:$0xff]   ;;  %v8331_v15 = vld [vmem:[%s10903_s2 + $0x260] sm:$0xff]   ;;  %v1774_v18 = vpack.c.bf16 %v9042_v51, %v9169_v53  ;;  %v1228_v22 = vpack.c.bf16 %v9167_v5, %v9183_v17 }
 0x16f   :  { %v1000_v30 = vcombine.high %v928_v25, %v928_v25  ;;  %v893_v34 = vmax.f32 %v821_v9, %v857_v27  ;;  %v1760_v19 = vld [vmem:[#allocation2 + $0x52] sm:$0xff] }
 0x170   :  { %v784_v39 = vpop.f32.mrf.mxu1  ;;  %v475_v40 = vpop.f32.mrf.mxu0  ;;  %v8339_v7 = vld [vmem:[%s10903_s2 + $0x2e8] sm:$0xff]   ;;  %v1777_v23 = vpack.c.bf16 %v9174_v13, %v1760_v19  ;;  %v8341_v51 = vld [vmem:[%s10903_s2 + $0x2e0] sm:$0xff]  }
 0x171   :  { %v1037_v41 = vcombine.low %v928_v25, %v1000_v30  ;;  %v929_v42 = vmax.f32 %v893_v34, 0.0  ;;  %v858_v47 = vmax.f32 %v782_v2, %v784_v39  ;;  %v822_v48 = vmax.f32 %v473_v29, %v475_v40  ;;  %v8340_v61 = vld [vmem:[%s10903_s2 + $0x2a8] sm:$0xff]   ;;  %v8332_v24 = vld [vmem:[%s10903_s2 + $0x220] sm:$0xff]   ;;  %v8336_v25 = vld [vmem:[%s10903_s2 + $0x258] sm:$0xff]  }
 0x172   :  { %v8343_v9 = vld [vmem:[%s10903_s2 + $0x2a0] sm:$0xff]   ;;  %v1763_v2 = vld [vmem:[#allocation2 + $0x82] sm:$0xff] }
 0x173   :  { %1107 = vst [vmem:[#allocation2 + $0x160] sm:$0xff] %v1037_v41  ;;  %v1001_v54 = vcombine.high %v929_v42, %v929_v42  ;;  %1108 = vst [vmem:[#allocation2 + $0x168] sm:$0xf] %v929_v42  ;;  %v894_v59 = vmax.f32 %v822_v48, %v858_v47  ;;  %v9208_v27 = vld [vmem:[#allocation2 + $0x73] sm:$0xff]  ;;  %v9212_v30 = vld [vmem:[#allocation2 + $0x63] sm:$0xff]  ;;  %v1227_v42 = vpack.c.bf16 %v1760_v19, %v9144_v46 }
 0x174   :  { %2143 = vmatmul.mubr.bf16.vlgmr.msra.gmra.mxu1 %v1223_v49  ;;  %1950 = vmatmul.mubr.bf16.vlgmr.msra.gmra.mxu0 %v1772_v50  ;;  %v9210_v29 = vld [vmem:[#allocation2 + $0x51] sm:$0xff]  ;;  %v8345_v39 = vld [vmem:[%s10903_s2 + $0x2d8] sm:$0xff]   ;;  %v8342_v40 = vld [vmem:[%s10903_s2 + $0x250] sm:$0xff]   ;;  %v1230_v44 = vpack.c.bf16 %v9208_v27, %v9212_v30 }
 0x175   :  { %2150 = vmatprep.mubr.bf16.mxu1 %v1226_v55  ;;  %7442 = vmatpush3.bf16.msra.mxu0 %v8326_v38  ;;  %v930_v0 = vmax.f32 %v894_v59, 0.0  ;;  %v1762_v34 = vld [vmem:[#allocation2 + $0x72] sm:$0xff]  ;;  %v8338_v38 = vld [vmem:[%s10903_s2 + $0x218] sm:$0xff]   ;;  %v1776_v43 = vpack.c.bf16 %v9075_v32, %v9210_v29  ;;  %v8347_v48 = vld [vmem:[%s10903_s2 + $0x2d0] sm:$0xff]  }
 0x176   :  { %1957 = vmatprep.mubr.bf16.mxu0 %v1775_v60  ;;  %7443 = vmatprep.subr.bf16.mxu0 %v8327_v52  ;;  %v8346_v41 = vld [vmem:[%s10903_s2 + $0x298] sm:$0xff]   ;;  %v1779_v47 = vpack.c.bf16 %v1763_v2, %v1762_v34  ;;  %v8344_v32 = vld [vmem:[%s10903_s2 + $0x210] sm:$0xff]  }
 0x177   :  { %7506 = vmatpush3.bf16.msra.mxu1 %v8334_v57  ;;  %v1002_v10 = vcombine.high %v930_v0, %v930_v0  ;;  %v1038_v12 = vcombine.low %v1001_v54, %v930_v0 }
 0x178   :  { %7507 = vmatprep.subr.bf16.mxu1 %v8335_v62 }
 0x179   :  { %7444 = vmatpush3.bf16.msra.mxu0 %v8328_v63  ;;  %1109 = vst [vmem:[#allocation2 + $0x170] sm:$0xff] %v1038_v12  ;;  %1110 = vst [vmem:[#allocation2 + $0x178] sm:$0xf] %v1002_v10 }
 0x17a   :  { %7445 = vmatprep.subr.bf16.mxu0 %v8329_v4 }
 0x17b   :  { %7508 = vmatpush3.bf16.msra.mxu1 %v8337_v8 }
 0x17c   :  { %2151 = vmatmul.mubr.bf16.gmra.mxu1 %v1225_v16  ;;  %1958 = vmatmul.mubr.bf16.gmra.mxu0 %v1774_v18 }
 0x17d   :  { %2158 = vmatprep.mubr.bf16.mxu1 %v1228_v22  ;;  %1965 = vmatprep.mubr.bf16.mxu0 %v1777_v23 }
 0x17e   :  { %7446 = vmatpush3.bf16.msra.mxu0 %v8330_v14  ;;  %7509 = vmatprep.subr.bf16.mxu1 %v8339_v7 }
 0x17f   :  { %7447 = vmatprep.subr.bf16.mxu0 %v8331_v15  ;;  %7510 = vmatpush3.bf16.msra.mxu1 %v8340_v61 }
 0x180   :  { %7511 = vmatprep.subr.bf16.mxu1 %v8341_v51 }
 0x182   :  { %7448 = vmatpush3.bf16.msra.mxu0 %v8332_v24 }
 0x183   :  { %7449 = vmatprep.subr.bf16.mxu0 %v8336_v25  ;;  %7512 = vmatpush3.bf16.msra.mxu1 %v8343_v9 }
 0x184   :  { %2159 = vmatmul.mubr.bf16.gmra.mxu1 %v1227_v42  ;;  %1966 = vmatmul.mubr.bf16.gmra.mxu0 %v1776_v43 }
 0x185   :  { %2166 = vmatprep.mubr.bf16.mxu1 %v1230_v44  ;;  %1973 = vmatprep.mubr.bf16.mxu0 %v1779_v47 }
 0x186   :  { %7450 = vmatpush3.bf16.msra.mxu0 %v8338_v38  ;;  %7513 = vmatprep.subr.bf16.mxu1 %v8345_v39 }
 0x187   :  { %11 = vsyncpa [#allocation6], 0  ;;  %v9237_v46 = vld [vmem:[#allocation2 + $0x81] sm:$0xff]  ;;  %7451 = vmatprep.subr.bf16.mxu0 %v8342_v40  ;;  %7514 = vmatpush3.bf16.msra.mxu1 %v8346_v41  ;;  %v8348_v49 = vld [vmem:[%s10903_s2 + $0x248] sm:$0xff]   ;;  %v1229_v56 = vpack.c.bf16 %v1762_v34, %v9174_v13  ;;  %v1782_v2 = vpack.c.bf16 %v9111_v20, %v9102_v45  ;;  %v1784_v41 = vpack.c.bf16 %v9122_v1, %v9113_v21  ;;  %vm4952_vm0 = vcmask 1041409  }
 0x188   :  { %v8349_v50 = vld [vmem:[%s10903_s2 + $0x290] sm:$0xff]   ;;  %v9245_v52 = vld [vmem:[#allocation2 + $0xd3] sm:$0xff]  ;;  %7515 = vmatprep.subr.bf16.mxu1 %v8347_v48  ;;  %v1778_v59 = vpack.c.bf16 %v9237_v46, %v9077_v33  ;;  %v8357_v13 = vld [vmem:[%s10903_s2 + $0x378] sm:$0xff]   ;;  %v2531_v21 = vpack.c.bf16 %v9169_v53, %v9137_v35  ;;  %v2239_v35 = vpack.c.bf16 %v9146_v31, %v9118_v36 }
 0x189   :  { %v1765_v54 = vld [vmem:[#allocation2 + $0xe2] sm:$0xff]  ;;  %v8350_v55 = vld [vmem:[%s10903_s2 + $0x208] sm:$0xff]   ;;  %v8354_v8 = vld [vmem:[%s10903_s2 + $0x240] sm:$0xff]  }
 0x18a   :  { %v1215_v57 = vld [vmem:[#allocation2 + $0xc3] sm:$0xff]  ;;  %v1764_v60 = vld [vmem:[#allocation2 + $0xd2] sm:$0xff]  ;;  %7452 = vmatpush3.bf16.msra.mxu0 %v8344_v32 }
 0x18b   :  { %v8351_v62 = vld [vmem:[%s10903_s2 + $0x2c8] sm:$0xff]   ;;  %v1232_v63 = vpack.c.bf16 %v9245_v52, %v1215_v57  ;;  %v1781_v0 = vpack.c.bf16 %v1765_v54, %v1764_v60  ;;  %7453 = vmatprep.subr.bf16.mxu0 %v8348_v49  ;;  %7516 = vmatpush3.bf16.msra.mxu1 %v8349_v50  ;;  %v8353_v33 = vld [vmem:[%s10903_s2 + $0x2c0] sm:$0xff]   ;;  %v1767_v15 = vld [vmem:[#allocation2 + $0x102] sm:$0xff] }
 0x18c   :  { %v8352_v4 = vld [vmem:[%s10903_s2 + $0x288] sm:$0xff]   ;;  %2167 = vmatmul.mubr.bf16.gmra.mxu1 %v1229_v56  ;;  %1974 = vmatmul.mubr.bf16.gmra.mxu0 %v1778_v59  ;;  %v8356_v10 = vld [vmem:[%s10903_s2 + $0x200] sm:$0xff]   ;;  %v1199_v16 = vld [vmem:[#allocation2 + $0xc2] sm:$0xff] }
 0x18d   :  { %2174 = vmatprep.mubr.bf16.mxu1 %v1232_v63  ;;  %1981 = vmatprep.mubr.bf16.mxu0 %v1781_v0  ;;  %v8355_v12 = vld [vmem:[%s10903_s2 + $0x280] sm:$0xff]   ;;  %v1231_v18 = vpack.c.bf16 %v1764_v60, %v1199_v16  ;;  %v9277_v19 = vld [vmem:[#allocation2 + $0xe3] sm:$0xff]  ;;  %v8362_v16 = vld [vmem:[%s10903_s2 + $0x328] sm:$0xff]  }
 0x18e   :  { %7454 = vmatpush3.bf16.msra.mxu0 %v8350_v55  ;;  %7517 = vmatprep.subr.bf16.mxu1 %v8351_v62  ;;  %v9275_v14 = vld [vmem:[#allocation2 + $0xf3] sm:$0xff]  ;;  %v8365_v22 = vld [vmem:[%s10903_s2 + $0x3f8] sm:$0xff]   ;;  %v2498_v50 = vld [vmem:[#allocation2 + $0x20] sm:$0xff] }
 0x18f   :  { %7518 = vmatpush3.bf16.msra.mxu1 %v8352_v4  ;;  %7455 = vmatprep.subr.bf16.mxu0 %v8354_v8  ;;  %v1766_v7 = vld [vmem:[#allocation2 + $0xf2] sm:$0xff]  ;;  %v1234_v23 = vpack.c.bf16 %v9275_v14, %v9277_v19  ;;  %v1769_v24 = vld [vmem:[#allocation2 + $0x122] sm:$0xff] }
 0x190   :  { %7519 = vmatprep.subr.bf16.mxu1 %v8353_v33  ;;  %v1783_v61 = vpack.c.bf16 %v1767_v15, %v1766_v7  ;;  %v9287_v51 = vld [vmem:[#allocation2 + $0x113] sm:$0xff]  ;;  %v1233_v25 = vpack.c.bf16 %v1766_v7, %v1765_v54  ;;  %v9289_v9 = vld [vmem:[#allocation2 + $0x103] sm:$0xff] }
 0x191   :  { %v1768_v34 = vld [vmem:[#allocation2 + $0x112] sm:$0xff]  ;;  %v1236_v38 = vpack.c.bf16 %v9287_v51, %v9289_v9  ;;  %v1771_v26 = vld [vmem:[#allocation2 + $0x142] sm:$0xff] }
 0x192   :  { %7456 = vmatpush3.bf16.msra.mxu0 %v8356_v10  ;;  %v1785_v39 = vpack.c.bf16 %v1769_v24, %v1768_v34  ;;  %v9295_v6 = vld [vmem:[#allocation2 + $0x133] sm:$0xff]  ;;  %v9297_v40 = vld [vmem:[#allocation2 + $0x123] sm:$0xff] }
 0x193   :  { %7520 = vmatpush3.bf16.msra.mxu1 %v8355_v12  ;;  %7569 = vmatprep.subr.bf16.mxu0 %v8357_v13  ;;  %v1770_v42 = vld [vmem:[#allocation2 + $0x132] sm:$0xff]  ;;  %v1238_v45 = vpack.c.bf16 %v9295_v6, %v9297_v40  ;;  %v9303_v43 = vld [vmem:[#allocation2 + $0x141] sm:$0xff] }
 0x194   :  { %2175 = vmatmul.mubr.bf16.gmra.mxu1 %v1231_v18  ;;  %1982 = vmatmul.mubr.bf16.gmra.mxu0 %v1780_v28  ;;  %v1235_v28 = vpack.c.bf16 %v1768_v34, %v1767_v15  ;;  %v1787_v20 = vpack.c.bf16 %v1771_v26, %v1770_v42  ;;  %v9305_v44 = vld [vmem:[#allocation2 + $0x24] sm:$0xff]  ;;  %v1237_v47 = vpack.c.bf16 %v1770_v42, %v1769_v24  ;;  %v2223_v32 = vld [vmem:[#allocation2 + $0x14] sm:$0xff] }
 0x195   :  { %2182 = vmatprep.mubr.bf16.mxu1 %v1234_v23  ;;  %1989 = vmatprep.mubr.bf16.mxu0 %v1783_v61  ;;  %v1786_v48 = vpack.c.bf16 %v9303_v43, %v9124_v3  ;;  %v2240_v1 = vpack.c.bf16 %v9305_v44, %v2223_v32  ;;  %v9312_v49 = vld [vmem:[#allocation2 + $0x30] sm:$0xff]  ;;  %v8358_v54 = vld [vmem:[%s10903_s2 + $0x338] sm:$0xff]   ;;  %v8359_v53 = vld [vmem:[%s10903_s2 + $0x370] sm:$0xff]   ;;  %v2241_v15 = vpack.c.bf16 %v9183_v17, %v9139_v37 }
 0x196   :  { %7633 = vmatprep.subr.bf16.mxu1 %v8365_v22  ;;  %v9317_v55 = vld [vmem:[#allocation2 + $0x44] sm:$0xff]  ;;  %v2530_v3 = vpack.c.bf16 %v9312_v49, %v2498_v50  ;;  %v9326_v59 = vld [vmem:[#allocation2 + $0x34] sm:$0xff] }
 0x197   :  { %v2516_v56 = vld [vmem:[#allocation2 + $0x41] sm:$0xff]  ;;  %v2242_v62 = vpack.c.bf16 %v9317_v55, %v9326_v59  ;;  %v9342_v63 = vld [vmem:[#allocation2 + $0x50] sm:$0xff]  ;;  %v8371_v18 = vld [vmem:[%s10903_s2 + $0x3e8] sm:$0xff]  }
 0x198   :  { %v2533_v57 = vpack.c.bf16 %v9210_v29, %v2516_v56  ;;  %v8366_v60 = vld [vmem:[%s10903_s2 + $0x3b8] sm:$0xff]   ;;  %v8367_v36 = vld [vmem:[%s10903_s2 + $0x3f0] sm:$0xff]   ;;  %v8361_v29 = vld [vmem:[%s10903_s2 + $0x368] sm:$0xff]  }
 0x199   :  { %v8360_v31 = vld [vmem:[%s10903_s2 + $0x330] sm:$0xff]   ;;  %v2519_v4 = vld [vmem:[#allocation2 + $0x71] sm:$0xff]  ;;  %v8370_v32 = vld [vmem:[%s10903_s2 + $0x318] sm:$0xff]  }
 0x19a   :  { %v8369_v0 = vld [vmem:[%s10903_s2 + $0x3b0] sm:$0xff]   ;;  %v9351_v10 = vld [vmem:[#allocation2 + $0x54] sm:$0xff] }
 0x19b   :  { %v9347_v8 = vld [vmem:[#allocation2 + $0x64] sm:$0xff]  ;;  %v8363_v23 = vld [vmem:[%s10903_s2 + $0x360] sm:$0xff]   ;;  %v8372_v37 = vld [vmem:[%s10903_s2 + $0x3a8] sm:$0xff]  }
 0x19c   :  { %2183 = vmatmul.mubr.bf16.gmra.mxu1 %v1233_v25  ;;  %1990 = vmatmul.mubr.bf16.gmra.mxu0 %v1782_v2  ;;  %v9349_v33 = vld [vmem:[#allocation2 + $0x40] sm:$0xff]  ;;  %v2244_v22 = vpack.c.bf16 %v9347_v8, %v9351_v10  ;;  %v8373_v17 = vld [vmem:[%s10903_s2 + $0x3e0] sm:$0xff]   ;;  %v8368_v2 = vld [vmem:[%s10903_s2 + $0x358] sm:$0xff]  }
 0x19d   :  { %2190 = vmatprep.mubr.bf16.mxu1 %v1236_v38  ;;  %1997 = vmatprep.mubr.bf16.mxu0 %v1785_v39  ;;  %v2532_v12 = vpack.c.bf16 %v9342_v63, %v9349_v33  ;;  %v2518_v13 = vld [vmem:[#allocation2 + $0x61] sm:$0xff]  ;;  %v9374_v61 = vld [vmem:[#allocation2 + $0x70] sm:$0xff] }
 0x19e   :  { %v2535_v7 = vpack.c.bf16 %v2519_v4, %v2518_v13  ;;  %v8364_v24 = vld [vmem:[%s10903_s2 + $0x320] sm:$0xff]   ;;  %v9379_v25 = vld [vmem:[#allocation2 + $0x84] sm:$0xff] }
 0x19f   :  { %v8375_v34 = vld [vmem:[%s10903_s2 + $0x3a0] sm:$0xff]   ;;  %v8381_v4 = vld [vmem:[%s10903_s2 + $0x390] sm:$0xff]  }
 0x1a0   :  { %v2521_v39 = vld [vmem:[#allocation2 + $0x91] sm:$0xff]  ;;  %v9428_v13 = vld [vmem:[#allocation2 + $0xe4] sm:$0xff] }
 0x1a1   :  { %v2537_v50 = vpack.c.bf16 %v2521_v39, %v9237_v46 }
 0x1a4   :  { %2191 = vmatmul.mubr.bf16.gmra.mxu1 %v1235_v28  ;;  %1998 = vmatmul.mubr.bf16.gmra.mxu0 %v1784_v41  ;;  %v9387_v28 = vld [vmem:[#allocation2 + $0x60] sm:$0xff]  ;;  %v9389_v41 = vld [vmem:[#allocation2 + $0x74] sm:$0xff] }
 0x1a5   :  { %2198 = vmatprep.mubr.bf16.mxu1 %v1238_v45  ;;  %2005 = vmatprep.mubr.bf16.mxu0 %v1787_v20  ;;  %v2534_v45 = vpack.c.bf16 %v9374_v61, %v9387_v28 }
 0x1ac   :  { %2199 = vmatmul.mubr.bf16.gmra.mxu1 %v1237_v47  ;;  %2006 = vmatmul.mubr.bf16.gmra.mxu0 %v1786_v48  ;;  %v2243_v47 = vpack.c.bf16 %v9212_v30, %v9167_v5  ;;  %v2246_v48 = vpack.c.bf16 %v9379_v25, %v9389_v41  ;;  %v8374_v5 = vld [vmem:[%s10903_s2 + $0x350] sm:$0xff]   ;;  %v8378_v30 = vld [vmem:[%s10903_s2 + $0x398] sm:$0xff]  }
 0x1ad   :  { %2707 = vmatprep.mubr.bf16.mxu1 %v2531_v21  ;;  %2416 = vmatprep.mubr.bf16.mxu0 %v2240_v1  ;;  %v8377_v21 = vld [vmem:[%s10903_s2 + $0x3d8] sm:$0xff]  }
 0x1b4   :  { %2708 = vmatmul.mubr.bf16.vlgmr.msra.gmra.mxu1 %v2530_v3  ;;  %2417 = vmatmul.mubr.bf16.vlgmr.msra.gmra.mxu0 %v2239_v35  ;;  %v8379_v35 = vld [vmem:[%s10903_s2 + $0x3d0] sm:$0xff]  }
 0x1b5   :  { %2715 = vmatprep.mubr.bf16.mxu1 %v2533_v57  ;;  %7570 = vmatpush3.bf16.msra.mxu0 %v8358_v54 }
 0x1b6   :  { %2424 = vmatprep.mubr.bf16.mxu0 %v2242_v62  ;;  %7571 = vmatprep.subr.bf16.mxu0 %v8359_v53  ;;  %v8376_v62 = vld [vmem:[%s10903_s2 + $0x310] sm:$0xff]  }
 0x1b7   :  { %7634 = vmatpush3.bf16.msra.mxu1 %v8366_v60  ;;  %v9415_v60 = vld [vmem:[#allocation2 + $0x83] sm:$0xff] }
 0x1b8   :  { %7635 = vmatprep.subr.bf16.mxu1 %v8367_v36 }
 0x1b9   :  { %7572 = vmatpush3.bf16.msra.mxu0 %v8360_v31 }
 0x1ba   :  { %7573 = vmatprep.subr.bf16.mxu0 %v8361_v29  ;;  %v9420_v29 = vld [vmem:[#allocation2 + $0x90] sm:$0xff] }
 0x1bb   :  { %7636 = vmatpush3.bf16.msra.mxu1 %v8369_v0  ;;  %v8380_v0 = vld [vmem:[%s10903_s2 + $0x348] sm:$0xff]  }
 0x1bc   :  { %2716 = vmatmul.mubr.bf16.gmra.mxu1 %v2532_v12  ;;  %2425 = vmatmul.mubr.bf16.gmra.mxu0 %v2241_v15  ;;  %v2523_v12 = vld [vmem:[#allocation2 + $0xf1] sm:$0xff] }
 0x1bd   :  { %2723 = vmatprep.mubr.bf16.mxu1 %v2535_v7  ;;  %2432 = vmatprep.mubr.bf16.mxu0 %v2244_v22  ;;  %v2522_v22 = vld [vmem:[#allocation2 + $0xe1] sm:$0xff] }
 0x1be   :  { %7574 = vmatpush3.bf16.msra.mxu0 %v8362_v16  ;;  %7637 = vmatprep.subr.bf16.mxu1 %v8371_v18  ;;  %v9432_v16 = vld [vmem:[#allocation2 + $0x80] sm:$0xff]  ;;  %v2231_v18 = vld [vmem:[#allocation2 + $0xd4] sm:$0xff] }
 0x1bf   :  { %7575 = vmatprep.subr.bf16.mxu0 %v8363_v23  ;;  %7638 = vmatpush3.bf16.msra.mxu1 %v8372_v37  ;;  %v2536_v7 = vpack.c.bf16 %v9420_v29, %v9432_v16  ;;  %v2245_v23 = vpack.c.bf16 %v9415_v60, %v9208_v27  ;;  %v8382_v37 = vld [vmem:[%s10903_s2 + $0x308] sm:$0xff]   ;;  %v8386_v27 = vld [vmem:[%s10903_s2 + $0x340] sm:$0xff]  }
 0x1c0   :  { %v7265_v38 = vpop.f32.mrf.mxu1  ;;  %v7201_v26 = vpop.f32.mrf.mxu0  ;;  %7639 = vmatprep.subr.bf16.mxu1 %v8373_v17  ;;  %v8383_v17 = vld [vmem:[%s10903_s2 + $0x3c8] sm:$0xff]  }
 0x1c2   :  { %v7266_v42 = vpop.f32.mrf.mxu1  ;;  %v7202_v20 = vpop.f32.mrf.mxu0  ;;  %7576 = vmatpush3.bf16.msra.mxu0 %v8364_v24  ;;  %v2539_v24 = vpack.c.bf16 %v2523_v12, %v2522_v22 }
 0x1c3   :  { %v7267_v1 = vadd.f32 %v7266_v42, %v7265_v38  ;;  %v7203_v54 = vadd.f32 %v7202_v20, %v7201_v26  ;;  %7577 = vmatprep.subr.bf16.mxu0 %v8368_v2  ;;  %7640 = vmatpush3.bf16.msra.mxu1 %v8375_v34  ;;  %v2248_v2 = vpack.c.bf16 %v9428_v13, %v2231_v18  ;;  %v8384_v34 = vld [vmem:[%s10903_s2 + $0x388] sm:$0xff]   ;;  %v8385_v26 = vld [vmem:[%s10903_s2 + $0x3c0] sm:$0xff]  }
 0x1c4   :  { %v7268_v3 = vpop.f32.mrf.mxu1  ;;  %2724 = vmatmul.mubr.bf16.gmra.mxu1 %v2534_v45  ;;  %v7204_v56 = vpop.f32.mrf.mxu0  ;;  %2433 = vmatmul.mubr.bf16.gmra.mxu0 %v2243_v47  ;;  %v9454_v20 = vld [vmem:[#allocation2 + $0xf0] sm:$0xff] }
 0x1c5   :  { %2731 = vmatprep.mubr.bf16.mxu1 %v2537_v50  ;;  %v9413_v46 = vadd.f32 %v7267_v1, %v7203_v54  ;;  %2440 = vmatprep.mubr.bf16.mxu0 %v2246_v48  ;;  %v8388_v47 = vld [vmem:[%s10903_s2 + $0x300] sm:$0xff]   ;;  %v8389_v50 = vld [vmem:[%s10903_s2 + $0x478] sm:$0xff]  }
 0x1c6   :  { %v7269_v53 = vpop.f32.mrf.mxu1  ;;  %v7205_v57 = vpop.f32.mrf.mxu0  ;;  %7578 = vmatpush3.bf16.msra.mxu0 %v8370_v32  ;;  %7641 = vmatprep.subr.bf16.mxu1 %v8377_v21  ;;  %v9459_v21 = vld [vmem:[#allocation2 + $0x104] sm:$0xff]  ;;  %v8387_v1 = vld [vmem:[%s10903_s2 + $0x380] sm:$0xff]  }
 0x1c7   :  { %v7270_v36 = vadd.f32 %v7269_v53, %v7268_v3  ;;  %v7206_v31 = vadd.f32 %v7205_v57, %v7204_v56  ;;  %7579 = vmatprep.subr.bf16.mxu0 %v8374_v5  ;;  %7642 = vmatpush3.bf16.msra.mxu1 %v8378_v30  ;;  %v2525_v5 = vld [vmem:[#allocation2 + $0x111] sm:$0xff]  ;;  %v2506_v56 = vld [vmem:[#allocation2 + $0xe0] sm:$0xff] }
 0x1c8   :  { %7643 = vmatprep.subr.bf16.mxu1 %v8379_v35  ;;  %v9469_v35 = vld [vmem:[#allocation2 + $0xf4] sm:$0xff]  ;;  %v2538_v57 = vpack.c.bf16 %v9454_v20, %v2506_v56 }
 0x1c9   :  { %v9430_v15 = vadd.f32 %v7270_v36, %v7206_v31  ;;  %v2247_v31 = vpack.c.bf16 %v9277_v19, %v9245_v52  ;;  %v9481_v52 = vld [vmem:[#allocation2 + $0x110] sm:$0xff] }
 0x1ca   :  { %7580 = vmatpush3.bf16.msra.mxu0 %v8376_v62  ;;  %v2524_v62 = vld [vmem:[#allocation2 + $0x101] sm:$0xff]  ;;  %v9508_v56 = vld [vmem:[#allocation2 + $0x134] sm:$0xff] }
 0x1cb   :  { %7581 = vmatprep.subr.bf16.mxu0 %v8380_v0  ;;  %7644 = vmatpush3.bf16.msra.mxu1 %v8381_v4  ;;  %v2250_v0 = vpack.c.bf16 %v9459_v21, %v9469_v35  ;;  %v8397_v4 = vld [vmem:[%s10903_s2 + $0x4f8] sm:$0xff]   ;;  %v2541_v18 = vpack.c.bf16 %v2525_v5, %v2524_v62 }
 0x1cc   :  { %v7271_v38 = vpop.f32.mrf.mxu1  ;;  %2732 = vmatmul.mubr.bf16.gmra.mxu1 %v2536_v7  ;;  %v7207_v39 = vpop.f32.mrf.mxu0  ;;  %2441 = vmatmul.mubr.bf16.gmra.mxu0 %v2245_v23 }
 0x1cd   :  { %2739 = vmatprep.mubr.bf16.mxu1 %v2539_v24  ;;  %2448 = vmatprep.mubr.bf16.mxu0 %v2248_v2 }
 0x1ce   :  { %v7272_v42 = vpop.f32.mrf.mxu1  ;;  %v7208_v45 = vpop.f32.mrf.mxu0  ;;  %7582 = vmatpush3.bf16.msra.mxu0 %v8382_v37  ;;  %7645 = vmatprep.subr.bf16.mxu1 %v8383_v17  ;;  %v9483_v37 = vld [vmem:[#allocation2 + $0x100] sm:$0xff] }
 0x1cf   :  { %v7273_v48 = vadd.f32 %v7272_v42, %v7271_v38  ;;  %v7209_v32 = vadd.f32 %v7208_v45, %v7207_v39  ;;  %7646 = vmatpush3.bf16.msra.mxu1 %v8384_v34  ;;  %7583 = vmatprep.subr.bf16.mxu0 %v8386_v27  ;;  %v2540_v24 = vpack.c.bf16 %v9481_v52, %v9483_v37  ;;  %v9489_v27 = vld [vmem:[#allocation2 + $0x114] sm:$0xff] }
 0x1d0   :  { %v7274_v54 = vpop.f32.mrf.mxu1  ;;  %v7210_v30 = vpop.f32.mrf.mxu0  ;;  %7647 = vmatprep.subr.bf16.mxu1 %v8385_v26  ;;  %v2249_v34 = vpack.c.bf16 %v9289_v9, %v9275_v14  ;;  %v2252_v26 = vpack.c.bf16 %v9130_v11, %v9489_v27  ;;  %v9496_v9 = vld [vmem:[#allocation2 + $0x130] sm:$0xff]  ;;  %v9502_v11 = vld [vmem:[#allocation2 + $0x120] sm:$0xff] }
 0x1d1   :  { %v9467_v3 = vadd.f32 %v7273_v48, %v7209_v32 }
 0x1d2   :  { %v7275_v53 = vpop.f32.mrf.mxu1  ;;  %v7211_v36 = vpop.f32.mrf.mxu0  ;;  %7584 = vmatpush3.bf16.msra.mxu0 %v8388_v47 }
 0x1d3   :  { %v7276_v12 = vadd.f32 %v7275_v53, %v7274_v54  ;;  %v7212_v7 = vadd.f32 %v7211_v36, %v7210_v30  ;;  %7648 = vmatpush3.bf16.msra.mxu1 %v8387_v1  ;;  %7697 = vmatprep.subr.bf16.mxu0 %v8389_v50  ;;  %v2529_v50 = vld [vmem:[#allocation2 + $0x151] sm:$0xff]  ;;  %v9498_v54 = vld [vmem:[#allocation2 + $0x144] sm:$0xff]  ;;  %v2542_v30 = vpack.c.bf16 %v9496_v9, %v9502_v11 }
 0x1d4   :  { %2740 = vmatmul.mubr.bf16.gmra.mxu1 %v2538_v57  ;;  %2449 = vmatmul.mubr.bf16.gmra.mxu0 %v2247_v31  ;;  %v2545_v53 = vpack.c.bf16 %v2529_v50, %v9303_v43  ;;  %v2254_v57 = vpack.c.bf16 %v9498_v54, %v9508_v56  ;;  %v9517_v43 = vld [vmem:[#allocation2 + $0x33] sm:$0xff]  ;;  %v8391_v50 = vld [vmem:[%s10903_s2 + $0x470] sm:$0xff]  }
 0x1d5   :  { %2747 = vmatprep.mubr.bf16.mxu1 %v2541_v18  ;;  %v9479_v22 = vadd.f32 %v7276_v12, %v7212_v7  ;;  %2456 = vmatprep.mubr.bf16.mxu0 %v2250_v0  ;;  %v9513_v18 = vld [vmem:[#allocation2 + $0x150] sm:$0xff] }
 0x1d6   :  { %7761 = vmatprep.subr.bf16.mxu1 %v8397_v4 }
 0x1d8   :  { %v7277_v19 = vpop.f32.mrf.mxu1  ;;  %v7213_v23 = vpop.f32.mrf.mxu0 }
 0x1da   :  { %v7278_v17 = vpop.f32.mrf.mxu1  ;;  %v7214_v2 = vpop.f32.mrf.mxu0 }
 0x1db   :  { %v7279_v38 = vadd.f32 %v7278_v17, %v7277_v19  ;;  %v7215_v39 = vadd.f32 %v7214_v2, %v7213_v23  ;;  %v9521_v23 = vld [vmem:[#allocation2 + $0x140] sm:$0xff] }
 0x1dc   :  { %v7280_v42 = vpop.f32.mrf.mxu1  ;;  %2748 = vmatmul.mubr.bf16.gmra.mxu1 %v2540_v24  ;;  %v7216_v45 = vpop.f32.mrf.mxu0  ;;  %2457 = vmatmul.mubr.bf16.gmra.mxu0 %v2249_v34  ;;  %v2544_v24 = vpack.c.bf16 %v9513_v18, %v9521_v23 }
 0x1dd   :  { %2755 = vmatprep.mubr.bf16.mxu1 %v9128_v58  ;;  %v9494_v47 = vadd.f32 %v7279_v38, %v7215_v39  ;;  %2464 = vmatprep.mubr.bf16.mxu0 %v2252_v26  ;;  %v2251_v58 = vpack.c.bf16 %v9297_v40, %v9287_v51  ;;  %v9515_v51 = vld [vmem:[#allocation2 + $0x143] sm:$0xff]  ;;  %v3112_v26 = vpack.c.bf16 %v9349_v33, %v9312_v49 }
 0x1de   :  { %v7281_v48 = vpop.f32.mrf.mxu1  ;;  %v7217_v32 = vpop.f32.mrf.mxu0  ;;  %v2253_v34 = vpack.c.bf16 %v9515_v51, %v9295_v6  ;;  %v2804_v38 = vld [vmem:[#allocation2 + $0x23] sm:$0xff]  ;;  %v3111_v49 = vpack.c.bf16 %v9326_v59, %v9305_v44 }
 0x1df   :  { %v7282_v1 = vadd.f32 %v7281_v48, %v7280_v42  ;;  %v7218_v14 = vadd.f32 %v7217_v32, %v7216_v45  ;;  %v2821_v45 = vpack.c.bf16 %v9517_v43, %v2804_v38  ;;  %v9532_v32 = vld [vmem:[#allocation2 + $0x32] sm:$0xff]  ;;  %v8390_v6 = vld [vmem:[%s10903_s2 + $0x438] sm:$0xff]   ;;  %v8399_v59 = vld [vmem:[%s10903_s2 + $0x4f0] sm:$0xff]  }
 0x1e0   :  { %v8407_v38 = vld [vmem:[%s10903_s2 + $0x4a0] sm:$0xff]  }
 0x1e1   :  { %v9500_v5 = vadd.f32 %v7282_v1, %v7218_v14  ;;  %v2788_v1 = vld [vmem:[#allocation2 + $0x22] sm:$0xff]  ;;  %v9537_v14 = vld [vmem:[#allocation2 + $0x53] sm:$0xff] }
 0x1e2   :  { %v2820_v33 = vpack.c.bf16 %v9532_v32, %v2788_v1 }
 0x1e4   :  { %v7283_v62 = vpop.f32.mrf.mxu1  ;;  %2756 = vmatmul.mubr.bf16.gmra.mxu1 %v2542_v30  ;;  %v7219_v36 = vpop.f32.mrf.mxu0  ;;  %2465 = vmatmul.mubr.bf16.gmra.mxu0 %v2251_v58  ;;  %v3114_v30 = vpack.c.bf16 %v9387_v28, %v9342_v63  ;;  %v9547_v58 = vld [vmem:[#allocation2 + $0x43] sm:$0xff]  ;;  %v8393_v28 = vld [vmem:[%s10903_s2 + $0x468] sm:$0xff]  }
 0x1e5   :  { %2763 = vmatprep.mubr.bf16.mxu1 %v2545_v53  ;;  %2472 = vmatprep.mubr.bf16.mxu0 %v2254_v57  ;;  %v8398_v53 = vld [vmem:[%s10903_s2 + $0x4b8] sm:$0xff]   ;;  %v2823_v44 = vpack.c.bf16 %v9537_v14, %v9547_v58  ;;  %v8392_v63 = vld [vmem:[%s10903_s2 + $0x430] sm:$0xff]   ;;  %v9563_v57 = vld [vmem:[#allocation2 + $0x52] sm:$0xff] }
 0x1e6   :  { %v7284_v31 = vpop.f32.mrf.mxu1  ;;  %v7220_v0 = vpop.f32.mrf.mxu0 }
 0x1e7   :  { %v7285_v4 = vadd.f32 %v7284_v31, %v7283_v62  ;;  %v7221_v12 = vadd.f32 %v7220_v0, %v7219_v36  ;;  %v8401_v62 = vld [vmem:[%s10903_s2 + $0x4b0] sm:$0xff]   ;;  %v9568_v36 = vld [vmem:[#allocation2 + $0x73] sm:$0xff]  ;;  %v3113_v0 = vpack.c.bf16 %v9351_v10, %v9317_v55 }
 0x1e8   :  { %v7286_v40 = vpop.f32.mrf.mxu1  ;;  %v7222_v7 = vpop.f32.mrf.mxu0  ;;  %v9570_v31 = vld [vmem:[#allocation2 + $0x42] sm:$0xff]  ;;  %v8395_v10 = vld [vmem:[%s10903_s2 + $0x460] sm:$0xff]  }
 0x1e9   :  { %v9519_v19 = vadd.f32 %v7285_v4, %v7221_v12  ;;  %v2822_v4 = vpack.c.bf16 %v9563_v57, %v9570_v31  ;;  %v9576_v12 = vld [vmem:[#allocation2 + $0x63] sm:$0xff] }
 0x1ea   :  { %v7287_v17 = vpop.f32.mrf.mxu1  ;;  %v7223_v2 = vpop.f32.mrf.mxu0  ;;  %v2825_v55 = vpack.c.bf16 %v9568_v36, %v9576_v12 }
 0x1eb   :  { %v7288_v39 = vadd.f32 %v7287_v17, %v7286_v40  ;;  %v7224_v42 = vadd.f32 %v7223_v2, %v7222_v7  ;;  %v8394_v40 = vld [vmem:[%s10903_s2 + $0x428] sm:$0xff]   ;;  %v3116_v17 = vpack.c.bf16 %v9432_v16, %v9374_v61  ;;  %v8405_v2 = vld [vmem:[%s10903_s2 + $0x4e0] sm:$0xff]  }
 0x1ec   :  { %2764 = vmatmul.mubr.bf16.gmra.mxu1 %v2544_v24  ;;  %2473 = vmatmul.mubr.bf16.gmra.mxu0 %v2253_v34  ;;  %v8403_v7 = vld [vmem:[%s10903_s2 + $0x4e8] sm:$0xff]   ;;  %v8396_v61 = vld [vmem:[%s10903_s2 + $0x420] sm:$0xff]   ;;  %v8400_v34 = vld [vmem:[%s10903_s2 + $0x458] sm:$0xff]  }
 0x1ed   :  { %3288 = vmatprep.mubr.bf16.mxu1 %v3112_v26  ;;  %v9530_v48 = vadd.f32 %v7288_v39, %v7224_v42  ;;  %2997 = vmatprep.mubr.bf16.mxu0 %v2821_v45  ;;  %v8404_v24 = vld [vmem:[%s10903_s2 + $0x4a8] sm:$0xff]   ;;  %v3102_v39 = vld [vmem:[#allocation2 + $0xa0] sm:$0xff]  ;;  %v3115_v45 = vpack.c.bf16 %v9389_v41, %v9347_v8  ;;  %v8410_v41 = vld [vmem:[%s10903_s2 + $0x498] sm:$0xff]  }
 0x1ee   :  { %v9600_v16 = vld [vmem:[#allocation2 + $0x72] sm:$0xff]  ;;  %v9610_v42 = vld [vmem:[#allocation2 + $0x62] sm:$0xff] }
 0x1ef   :  { %v9608_v26 = vld [vmem:[#allocation2 + $0x93] sm:$0xff]  ;;  %v2824_v1 = vpack.c.bf16 %v9600_v16, %v9610_v42  ;;  %v8406_v8 = vld [vmem:[%s10903_s2 + $0x450] sm:$0xff]  }
 0x1f4   :  { %3289 = vmatmul.mubr.bf16.vlgmr.msra.gmra.mxu1 %v3111_v49  ;;  %2998 = vmatmul.mubr.bf16.vlgmr.msra.gmra.mxu0 %v2820_v33  ;;  %v8409_v49 = vld [vmem:[%s10903_s2 + $0x4d8] sm:$0xff]   ;;  %v3118_v33 = vpack.c.bf16 %v3102_v39, %v9420_v29  ;;  %v9634_v29 = vld [vmem:[#allocation2 + $0x94] sm:$0xff] }
 0x1f5   :  { %3296 = vmatprep.mubr.bf16.mxu1 %v3114_v30  ;;  %7698 = vmatpush3.bf16.msra.mxu0 %v8390_v6  ;;  %v8402_v6 = vld [vmem:[%s10903_s2 + $0x418] sm:$0xff]   ;;  %v8411_v30 = vld [vmem:[%s10903_s2 + $0x4d0] sm:$0xff]   ;;  %v8418_v39 = vld [vmem:[%s10903_s2 + $0x440] sm:$0xff]  }
 0x1f6   :  { %3005 = vmatprep.mubr.bf16.mxu0 %v2823_v44  ;;  %7699 = vmatprep.subr.bf16.mxu0 %v8391_v50  ;;  %v2827_v50 = vpack.c.bf16 %v9608_v26, %v9415_v60  ;;  %v9636_v60 = vld [vmem:[#allocation2 + $0x92] sm:$0xff] }
 0x1f7   :  { %7762 = vmatpush3.bf16.msra.mxu1 %v8398_v53  ;;  %v8408_v53 = vld [vmem:[%s10903_s2 + $0x410] sm:$0xff]   ;;  %v9641_v44 = vld [vmem:[#allocation2 + $0xf3] sm:$0xff] }
 0x1f8   :  { %7763 = vmatprep.subr.bf16.mxu1 %v8399_v59  ;;  %v8412_v59 = vld [vmem:[%s10903_s2 + $0x448] sm:$0xff]  }
 0x1f9   :  { %7700 = vmatpush3.bf16.msra.mxu0 %v8392_v63  ;;  %v8413_v63 = vld [vmem:[%s10903_s2 + $0x490] sm:$0xff]  }
 0x1fa   :  { %7701 = vmatprep.subr.bf16.mxu0 %v8393_v28 }
 0x1fb   :  { %7764 = vmatpush3.bf16.msra.mxu1 %v8401_v62 }
 0x1fc   :  { %3297 = vmatmul.mubr.bf16.gmra.mxu1 %v3113_v0  ;;  %3006 = vmatmul.mubr.bf16.gmra.mxu0 %v2822_v4  ;;  %v9649_v0 = vld [vmem:[#allocation2 + $0x82] sm:$0xff] }
 0x1fd   :  { %3304 = vmatprep.mubr.bf16.mxu1 %v3116_v17  ;;  %3013 = vmatprep.mubr.bf16.mxu0 %v2825_v55  ;;  %v2812_v4 = vld [vmem:[#allocation2 + $0xe3] sm:$0xff]  ;;  %v2826_v55 = vpack.c.bf16 %v9636_v60, %v9649_v0 }
 0x1fe   :  { %7702 = vmatpush3.bf16.msra.mxu0 %v8394_v40  ;;  %7765 = vmatprep.subr.bf16.mxu1 %v8403_v7  ;;  %v3117_v7 = vpack.c.bf16 %v9634_v29, %v9379_v25 }
 0x1ff   :  { %7703 = vmatprep.subr.bf16.mxu0 %v8395_v10  ;;  %7766 = vmatpush3.bf16.msra.mxu1 %v8404_v24  ;;  %v2829_v10 = vpack.c.bf16 %v9641_v44, %v2812_v4  ;;  %v8414_v24 = vld [vmem:[%s10903_s2 + $0x408] sm:$0xff]  }
 0x200   :  { %7767 = vmatprep.subr.bf16.mxu1 %v8405_v2  ;;  %v8415_v2 = vld [vmem:[%s10903_s2 + $0x4c8] sm:$0xff]  }
 0x202   :  { %7704 = vmatpush3.bf16.msra.mxu0 %v8396_v61 }
 0x203   :  { %7705 = vmatprep.subr.bf16.mxu0 %v8400_v34  ;;  %7768 = vmatpush3.bf16.msra.mxu1 %v8407_v38  ;;  %v3120_v34 = vpack.c.bf16 %v9483_v37, %v9454_v20  ;;  %v8416_v38 = vld [vmem:[%s10903_s2 + $0x488] sm:$0xff]  }
 0x204   :  { %3305 = vmatmul.mubr.bf16.gmra.mxu1 %v3115_v45  ;;  %3014 = vmatmul.mubr.bf16.gmra.mxu0 %v2824_v1 }
 0x205   :  { %3312 = vmatprep.mubr.bf16.mxu1 %v3118_v33  ;;  %3021 = vmatprep.mubr.bf16.mxu0 %v2827_v50  ;;  %v8420_v33 = vld [vmem:[%s10903_s2 + $0x400] sm:$0xff]  }
 0x206   :  { %7706 = vmatpush3.bf16.msra.mxu0 %v8402_v6  ;;  %7769 = vmatprep.subr.bf16.mxu1 %v8409_v49  ;;  %v8417_v6 = vld [vmem:[%s10903_s2 + $0x4c0] sm:$0xff]  }
 0x207   :  { %7707 = vmatprep.subr.bf16.mxu0 %v8406_v8  ;;  %7770 = vmatpush3.bf16.msra.mxu1 %v8410_v41  ;;  %v9678_v41 = vld [vmem:[#allocation2 + $0xf2] sm:$0xff] }
 0x208   :  { %v7289_v28 = vpop.f32.mrf.mxu1  ;;  %v7225_v62 = vpop.f32.mrf.mxu0  ;;  %7771 = vmatprep.subr.bf16.mxu1 %v8411_v30  ;;  %v8419_v30 = vld [vmem:[%s10903_s2 + $0x480] sm:$0xff]  }
 0x20a   :  { %v7290_v40 = vpop.f32.mrf.mxu1  ;;  %v7226_v17 = vpop.f32.mrf.mxu0  ;;  %7708 = vmatpush3.bf16.msra.mxu0 %v8408_v53  ;;  %v8421_v53 = vld [vmem:[%s10903_s2 + $0x578] sm:$0xff]  }
 0x20b   :  { %v7291_v61 = vadd.f32 %v7290_v40, %v7289_v28  ;;  %v7227_v25 = vadd.f32 %v7226_v17, %v7225_v62  ;;  %7709 = vmatprep.subr.bf16.mxu0 %v8412_v59  ;;  %7772 = vmatpush3.bf16.msra.mxu1 %v8413_v63  ;;  %v9686_v59 = vld [vmem:[#allocation2 + $0x113] sm:$0xff]  ;;  %v2796_v28 = vld [vmem:[#allocation2 + $0xe2] sm:$0xff]  ;;  %v3119_v62 = vpack.c.bf16 %v9469_v35, %v9428_v13 }
 0x20c   :  { %v7292_v45 = vpop.f32.mrf.mxu1  ;;  %3313 = vmatmul.mubr.bf16.gmra.mxu1 %v3117_v7  ;;  %v7228_v1 = vpop.f32.mrf.mxu0  ;;  %3022 = vmatmul.mubr.bf16.gmra.mxu0 %v2826_v55  ;;  %v2828_v4 = vpack.c.bf16 %v9678_v41, %v2796_v28  ;;  %v9693_v40 = vld [vmem:[#allocation2 + $0x103] sm:$0xff]  ;;  %v3122_v17 = vpack.c.bf16 %v9502_v11, %v9481_v52  ;;  %v9704_v11 = vld [vmem:[#allocation2 + $0x133] sm:$0xff] }
 0x20d   :  { %3320 = vmatprep.mubr.bf16.mxu1 %v3120_v34  ;;  %v9673_v20 = vadd.f32 %v7291_v61, %v7227_v25  ;;  %3029 = vmatprep.mubr.bf16.mxu0 %v2829_v10  ;;  %v8429_v7 = vld [vmem:[%s10903_s2 + $0x5f8] sm:$0xff]   ;;  %v2831_v55 = vpack.c.bf16 %v9686_v59, %v9693_v40  ;;  %v9702_v34 = vld [vmem:[#allocation2 + $0x112] sm:$0xff]  ;;  %v3110_v28 = vld [vmem:[#allocation2 + $0x160] sm:$0xff] }
 0x20e   :  { %v7293_v37 = vpop.f32.mrf.mxu1  ;;  %v7229_v49 = vpop.f32.mrf.mxu0  ;;  %7710 = vmatpush3.bf16.msra.mxu0 %v8414_v24  ;;  %7773 = vmatprep.subr.bf16.mxu1 %v8415_v2 }
 0x20f   :  { %v7294_v50 = vadd.f32 %v7293_v37, %v7292_v45  ;;  %v7230_v8 = vadd.f32 %v7229_v49, %v7228_v1  ;;  %7774 = vmatpush3.bf16.msra.mxu1 %v8416_v38  ;;  %7711 = vmatprep.subr.bf16.mxu0 %v8418_v39  ;;  %v9708_v39 = vld [vmem:[#allocation2 + $0x102] sm:$0xff]  ;;  %v3121_v1 = vpack.c.bf16 %v9489_v27, %v9459_v21  ;;  %v9722_v21 = vld [vmem:[#allocation2 + $0x132] sm:$0xff] }
 0x210   :  { %7775 = vmatprep.subr.bf16.mxu1 %v8417_v6  ;;  %v2830_v37 = vpack.c.bf16 %v9702_v34, %v9708_v39  ;;  %v9714_v49 = vld [vmem:[#allocation2 + $0x123] sm:$0xff] }
 0x211   :  { %v9688_v63 = vadd.f32 %v7294_v50, %v7230_v8  ;;  %v3124_v50 = vpack.c.bf16 %v9521_v23, %v9496_v9  ;;  %v9728_v9 = vld [vmem:[#allocation2 + $0x122] sm:$0xff] }
 0x212   :  { %7712 = vmatpush3.bf16.msra.mxu0 %v8420_v33 }
 0x213   :  { %7776 = vmatpush3.bf16.msra.mxu1 %v8419_v30  ;;  %7825 = vmatprep.subr.bf16.mxu0 %v8421_v53  ;;  %v2833_v30 = vpack.c.bf16 %v9704_v11, %v9714_v49 }
 0x214   :  { %v7295_v10 = vpop.f32.mrf.mxu1  ;;  %3321 = vmatmul.mubr.bf16.gmra.mxu1 %v3119_v62  ;;  %v7231_v13 = vpop.f32.mrf.mxu0  ;;  %3030 = vmatmul.mubr.bf16.gmra.mxu0 %v2828_v4  ;;  %v9724_v4 = vld [vmem:[#allocation2 + $0x153] sm:$0xff] }
 0x215   :  { %3328 = vmatprep.mubr.bf16.mxu1 %v3122_v17  ;;  %3037 = vmatprep.mubr.bf16.mxu0 %v2831_v55 }
 0x216   :  { %v7296_v35 = vpop.f32.mrf.mxu1  ;;  %v7232_v24 = vpop.f32.mrf.mxu0  ;;  %7889 = vmatprep.subr.bf16.mxu1 %v8429_v7  ;;  %v9726_v7 = vld [vmem:[#allocation2 + $0x124] sm:$0xff] }
 0x217   :  { %v7297_v2 = vadd.f32 %v7296_v35, %v7295_v10  ;;  %v7233_v61 = vadd.f32 %v7232_v24, %v7231_v13  ;;  %v3123_v17 = vpack.c.bf16 %v9508_v56, %v9726_v7  ;;  %v2832_v10 = vpack.c.bf16 %v9722_v21, %v9728_v9 }
 0x218   :  { %v7298_v25 = vpop.f32.mrf.mxu1  ;;  %v7234_v52 = vpop.f32.mrf.mxu0  ;;  %v3126_v35 = vpack.c.bf16 %v3110_v28, %v9513_v18  ;;  %v3676_v18 = vld [vmem:[#allocation2 + $0x44] sm:$0xff] }
 0x219   :  { %v9706_v38 = vadd.f32 %v7297_v2, %v7233_v61  ;;  %v2835_v2 = vpack.c.bf16 %v9724_v4, %v9515_v51  ;;  %v9745_v51 = vld [vmem:[#allocation2 + $0x142] sm:$0xff] }
 0x21a   :  { %v7299_v45 = vpop.f32.mrf.mxu1  ;;  %v7235_v6 = vpop.f32.mrf.mxu0 }
 0x21b   :  { %v7300_v33 = vadd.f32 %v7299_v45, %v7298_v25  ;;  %v7236_v8 = vadd.f32 %v7235_v6, %v7234_v52 }
 0x21c   :  { %3329 = vmatmul.mubr.bf16.gmra.mxu1 %v3121_v1  ;;  %3038 = vmatmul.mubr.bf16.gmra.mxu0 %v2830_v37  ;;  %v9739_v37 = vld [vmem:[#allocation2 + $0x154] sm:$0xff] }
 0x21d   :  { %3336 = vmatprep.mubr.bf16.mxu1 %v3124_v50  ;;  %v9720_v53 = vadd.f32 %v7300_v33, %v7236_v8  ;;  %3045 = vmatprep.mubr.bf16.mxu0 %v2833_v30  ;;  %v9741_v33 = vld [vmem:[#allocation2 + $0x152] sm:$0xff]  ;;  %v3125_v8 = vpack.c.bf16 %v9739_v37, %v9498_v54 }
 0x21e   :  { %v3675_v30 = vld [vmem:[#allocation2 + $0x34] sm:$0xff] }
 0x21f   :  { %v3692_v28 = vpack.c.bf16 %v3676_v18, %v3675_v30 }
 0x220   :  { %v7301_v27 = vpop.f32.mrf.mxu1  ;;  %v7237_v62 = vpop.f32.mrf.mxu0 }
 0x222   :  { %v7302_v23 = vpop.f32.mrf.mxu1  ;;  %v7238_v55 = vpop.f32.mrf.mxu0 }
 0x223   :  { %v7303_v13 = vadd.f32 %v7302_v23, %v7301_v27  ;;  %v7239_v24 = vadd.f32 %v7238_v55, %v7237_v62  ;;  %v2834_v27 = vpack.c.bf16 %v9741_v33, %v9745_v51  ;;  %v3402_v62 = vpack.c.bf16 %v9570_v31, %v9532_v32  ;;  %v8422_v32 = vld [vmem:[%s10903_s2 + $0x538] sm:$0xff]  }
 0x224   :  { %v7304_v61 = vpop.f32.mrf.mxu1  ;;  %3337 = vmatmul.mubr.bf16.gmra.mxu1 %v3123_v17  ;;  %v7240_v25 = vpop.f32.mrf.mxu0  ;;  %3046 = vmatmul.mubr.bf16.gmra.mxu0 %v2832_v10 }
 0x225   :  { %3344 = vmatprep.mubr.bf16.mxu1 %v3126_v35  ;;  %v9737_v52 = vadd.f32 %v7303_v13, %v7239_v24  ;;  %3053 = vmatprep.mubr.bf16.mxu0 %v2835_v2  ;;  %v9753_v24 = vld [vmem:[#allocation2 + $0x41] sm:$0xff] }
 0x226   :  { %v7305_v56 = vpop.f32.mrf.mxu1  ;;  %v7241_v45 = vpop.f32.mrf.mxu0  ;;  %v3678_v2 = vld [vmem:[#allocation2 + $0x64] sm:$0xff] }
 0x227   :  { %10909 = vst [vmem:[#allocation8_spill] sm:$0xff] %v9737_v52  ;;  %v7306_v1 = vadd.f32 %v7305_v56, %v7304_v61  ;;  %v7242_v6 = vadd.f32 %v7241_v45, %v7240_v25  ;;  %v3369_v56 = vld [vmem:[#allocation2 + $0x31] sm:$0xff]  ;;  %v3691_v45 = vpack.c.bf16 %v9547_v58, %v9517_v43  ;;  %v3404_v43 = vpack.c.bf16 %v9610_v42, %v9563_v57  ;;  %v8431_v58 = vld [vmem:[%s10903_s2 + $0x5f0] sm:$0xff]  }
 0x228   :  { %v3401_v18 = vpack.c.bf16 %v9753_v24, %v3369_v56  ;;  %v8425_v57 = vld [vmem:[%s10903_s2 + $0x568] sm:$0xff]  }
 0x229   :  { %v9743_v50 = vadd.f32 %v7306_v1, %v7242_v6  ;;  %v3677_v1 = vld [vmem:[#allocation2 + $0x54] sm:$0xff] }
 0x22a   :  { %v4241_v52 = vld [vmem:[#allocation2 + $0x52] sm:$0xff] }
 0x22b   :  { %10910 = vst [vmem:[#allocation9_spill] sm:$0xff] %v9743_v50 }
 0x22c   :  { %v7307_v23 = vpop.f32.mrf.mxu1  ;;  %3345 = vmatmul.mubr.bf16.gmra.mxu1 %v3125_v8  ;;  %v7243_v17 = vpop.f32.mrf.mxu0  ;;  %3054 = vmatmul.mubr.bf16.gmra.mxu0 %v2834_v27  ;;  %v8423_v8 = vld [vmem:[%s10903_s2 + $0x570] sm:$0xff]   ;;  %v3694_v27 = vpack.c.bf16 %v3678_v2, %v3677_v1  ;;  %v9789_v1 = vld [vmem:[#allocation2 + $0x51] sm:$0xff] }
 0x22d   :  { %3868 = vmatprep.mubr.bf16.mxu1 %v3692_v28  ;;  %3578 = vmatprep.mubr.bf16.mxu0 %v3402_v62  ;;  %v8430_v62 = vld [vmem:[%s10903_s2 + $0x5b8] sm:$0xff]  }
 0x22e   :  { %v7308_v55 = vpop.f32.mrf.mxu1  ;;  %v7244_v10 = vpop.f32.mrf.mxu0  ;;  %v9782_v2 = vld [vmem:[#allocation2 + $0x61] sm:$0xff] }
 0x22f   :  { %v7309_v13 = vadd.f32 %v7308_v55, %v7307_v23  ;;  %v7245_v35 = vadd.f32 %v7244_v10, %v7243_v17  ;;  %v8424_v10 = vld [vmem:[%s10903_s2 + $0x530] sm:$0xff]  }
 0x230   :  { %v7310_v54 = vpop.f32.mrf.mxu1  ;;  %v7246_v61 = vpop.f32.mrf.mxu0 }
 0x231   :  { %v9755_v25 = vadd.f32 %v7309_v13, %v7245_v35 }
 0x232   :  { %v7311_v31 = vpop.f32.mrf.mxu1  ;;  %v7247_v6 = vpop.f32.mrf.mxu0 }
 0x233   :  { %10911 = vst [vmem:[#allocation10_spill] sm:$0xff] %v9755_v25  ;;  %v7312_v30 = vadd.f32 %v7311_v31, %v7310_v54  ;;  %v7248_v28 = vadd.f32 %v7247_v6, %v7246_v61  ;;  %v8433_v61 = vld [vmem:[%s10903_s2 + $0x5b0] sm:$0xff]  }
 0x234   :  { %v7393_v23 = vpop.f32.mrf.mxu1  ;;  %3869 = vmatmul.mubr.bf16.vlgmr.msra.gmra.mxu1 %v3691_v45  ;;  %v7329_v17 = vpop.f32.mrf.mxu0  ;;  %3579 = vmatmul.mubr.bf16.vlgmr.msra.gmra.mxu0 %v3401_v18  ;;  %v3693_v18 = vpack.c.bf16 %v9576_v12, %v9537_v14  ;;  %v3406_v14 = vpack.c.bf16 %v9649_v0, %v9600_v16  ;;  %v8427_v12 = vld [vmem:[%s10903_s2 + $0x560] sm:$0xff]   ;;  %v9951_v25 = vld [vmem:[#allocation2 + $0x163] sm:$0xff] }
 0x235   :  { %3876 = vmatprep.mubr.bf16.mxu1 %v3694_v27  ;;  %v9774_v55 = vadd.f32 %v7312_v30, %v7248_v28  ;;  %7826 = vmatpush3.bf16.msra.mxu0 %v8422_v32  ;;  %v3680_v32 = vld [vmem:[#allocation2 + $0x84] sm:$0xff]  ;;  %v3403_v27 = vpack.c.bf16 %v9782_v2, %v9789_v1  ;;  %v8426_v28 = vld [vmem:[%s10903_s2 + $0x528] sm:$0xff]  }
 0x236   :  { %v7394_v13 = vpop.f32.mrf.mxu1  ;;  %3586 = vmatprep.mubr.bf16.mxu0 %v3404_v43  ;;  %v7330_v35 = vpop.f32.mrf.mxu0  ;;  %7827 = vmatprep.subr.bf16.mxu0 %v8423_v8  ;;  %v3679_v8 = vld [vmem:[#allocation2 + $0x74] sm:$0xff] }
 0x237   :  { %10912 = vst [vmem:[#allocation11_spill] sm:$0xff] %v9774_v55  ;;  %v7395_v42 = vadd.f32 %v7394_v13, %v7393_v23  ;;  %v7331_v54 = vadd.f32 %v7330_v35, %v7329_v17  ;;  %7890 = vmatpush3.bf16.msra.mxu1 %v8430_v62  ;;  %v8435_v62 = vld [vmem:[%s10903_s2 + $0x5e8] sm:$0xff]   ;;  %v3696_v17 = vpack.c.bf16 %v3680_v32, %v3679_v8  ;;  %v8437_v35 = vld [vmem:[%s10903_s2 + $0x5e0] sm:$0xff]  }
 0x238   :  { %v7396_v56 = vpop.f32.mrf.mxu1  ;;  %v7332_v31 = vpop.f32.mrf.mxu0  ;;  %7891 = vmatprep.subr.bf16.mxu1 %v8431_v58  ;;  %v8436_v58 = vld [vmem:[%s10903_s2 + $0x5a8] sm:$0xff]   ;;  %v3412_v55 = vpack.c.bf16 %v9728_v9, %v9702_v34 }
 0x239   :  { %v9787_v45 = vadd.f32 %v7395_v42, %v7331_v54  ;;  %7828 = vmatpush3.bf16.msra.mxu0 %v8424_v10  ;;  %v9814_v42 = vld [vmem:[#allocation2 + $0x83] sm:$0xff]  ;;  %v9922_v9 = vld [vmem:[#allocation2 + $0x111] sm:$0xff] }
 0x23a   :  { %v7397_v6 = vpop.f32.mrf.mxu1  ;;  %v7333_v30 = vpop.f32.mrf.mxu0  ;;  %7829 = vmatprep.subr.bf16.mxu0 %v8425_v57  ;;  %v9816_v54 = vld [vmem:[#allocation2 + $0x81] sm:$0xff] }
 0x23b   :  { %v7398_v23 = vadd.f32 %v7397_v6, %v7396_v56  ;;  %v7334_v43 = vadd.f32 %v7333_v30, %v7332_v31  ;;  %7892 = vmatpush3.bf16.msra.mxu1 %v8433_v61  ;;  %v8428_v61 = vld [vmem:[%s10903_s2 + $0x520] sm:$0xff]   ;;  %v3682_v31 = vld [vmem:[#allocation2 + $0xa4] sm:$0xff] }
 0x23c   :  { %v7399_v10 = vpop.f32.mrf.mxu1  ;;  %3877 = vmatmul.mubr.bf16.gmra.mxu1 %v3693_v18  ;;  %v7335_v13 = vpop.f32.mrf.mxu0  ;;  %3587 = vmatmul.mubr.bf16.gmra.mxu0 %v3403_v27  ;;  %v8432_v6 = vld [vmem:[%s10903_s2 + $0x558] sm:$0xff]   ;;  %v8439_v18 = vld [vmem:[%s10903_s2 + $0x5a0] sm:$0xff]  }
 0x23d   :  { %3884 = vmatprep.mubr.bf16.mxu1 %v3696_v17  ;;  %v9812_v57 = vadd.f32 %v7398_v23, %v7334_v43  ;;  %3594 = vmatprep.mubr.bf16.mxu0 %v3406_v14  ;;  %v9827_v27 = vld [vmem:[#allocation2 + $0xa2] sm:$0xff]  ;;  %v3695_v17 = vpack.c.bf16 %v9814_v42, %v9568_v36  ;;  %v3698_v43 = vpack.c.bf16 %v3682_v31, %v9634_v29 }
 0x23e   :  { %v7400_v16 = vpop.f32.mrf.mxu1  ;;  %v7336_v0 = vpop.f32.mrf.mxu0  ;;  %7830 = vmatpush3.bf16.msra.mxu0 %v8426_v28  ;;  %7893 = vmatprep.subr.bf16.mxu1 %v8435_v62  ;;  %v9831_v62 = vld [vmem:[#allocation2 + $0x71] sm:$0xff]  ;;  %v3408_v36 = vpack.c.bf16 %v9827_v27, %v9636_v60  ;;  %v8438_v29 = vld [vmem:[%s10903_s2 + $0x550] sm:$0xff]  }
 0x23f   :  { %v7401_v56 = vadd.f32 %v7400_v16, %v7399_v10  ;;  %v7337_v32 = vadd.f32 %v7336_v0, %v7335_v13  ;;  %7831 = vmatprep.subr.bf16.mxu0 %v8427_v12  ;;  %7894 = vmatpush3.bf16.msra.mxu1 %v8436_v58  ;;  %v3405_v12 = vpack.c.bf16 %v9816_v54, %v9831_v62  ;;  %v8434_v58 = vld [vmem:[%s10903_s2 + $0x518] sm:$0xff]  }
 0x240   :  { %v7402_v8 = vpop.f32.mrf.mxu1  ;;  %v7338_v30 = vpop.f32.mrf.mxu0  ;;  %7895 = vmatprep.subr.bf16.mxu1 %v8437_v35  ;;  %v8441_v10 = vld [vmem:[%s10903_s2 + $0x5d8] sm:$0xff]  }
 0x241   :  { %v9829_v28 = vadd.f32 %v7401_v56, %v7337_v32  ;;  %v8442_v16 = vld [vmem:[%s10903_s2 + $0x598] sm:$0xff]   ;;  %v8443_v56 = vld [vmem:[%s10903_s2 + $0x5d0] sm:$0xff]  }
 0x242   :  { %v7403_v23 = vpop.f32.mrf.mxu1  ;;  %v7339_v14 = vpop.f32.mrf.mxu0  ;;  %7832 = vmatpush3.bf16.msra.mxu0 %v8428_v61 }
 0x243   :  { %v7404_v13 = vadd.f32 %v7403_v23, %v7402_v8  ;;  %v7340_v35 = vadd.f32 %v7339_v14, %v7338_v30  ;;  %7833 = vmatprep.subr.bf16.mxu0 %v8432_v6  ;;  %7896 = vmatpush3.bf16.msra.mxu1 %v8439_v18  ;;  %v9857_v6 = vld [vmem:[#allocation2 + $0xa3] sm:$0xff] }
 0x244   :  { %v7405_v0 = vpop.f32.mrf.mxu1  ;;  %3885 = vmatmul.mubr.bf16.gmra.mxu1 %v3695_v17  ;;  %v7341_v61 = vpop.f32.mrf.mxu0  ;;  %3595 = vmatmul.mubr.bf16.gmra.mxu0 %v3405_v12  ;;  %v8440_v18 = vld [vmem:[%s10903_s2 + $0x510] sm:$0xff]   ;;  %v8444_v17 = vld [vmem:[%s10903_s2 + $0x548] sm:$0xff]  }
 0x245   :  { %3892 = vmatprep.mubr.bf16.mxu1 %v3698_v43  ;;  %v9855_v60 = vadd.f32 %v7404_v13, %v7340_v35  ;;  %3602 = vmatprep.mubr.bf16.mxu0 %v3408_v36  ;;  %v9862_v23 = vld [vmem:[#allocation2 + $0xa1] sm:$0xff]  ;;  %v3697_v36 = vpack.c.bf16 %v9857_v6, %v9608_v26 }
 0x246   :  { %v7406_v32 = vpop.f32.mrf.mxu1  ;;  %v7342_v31 = vpop.f32.mrf.mxu0  ;;  %7834 = vmatpush3.bf16.msra.mxu0 %v8434_v58  ;;  %7897 = vmatprep.subr.bf16.mxu1 %v8441_v10  ;;  %v8445_v43 = vld [vmem:[%s10903_s2 + $0x590] sm:$0xff]   ;;  %v9872_v10 = vld [vmem:[#allocation2 + $0x91] sm:$0xff] }
 0x247   :  { %v7407_v8 = vadd.f32 %v7406_v32, %v7405_v0  ;;  %v7343_v30 = vadd.f32 %v7342_v31, %v7341_v61  ;;  %7835 = vmatprep.subr.bf16.mxu0 %v8438_v29  ;;  %7898 = vmatpush3.bf16.msra.mxu1 %v8442_v16  ;;  %v3684_v12 = vld [vmem:[#allocation2 + $0x104] sm:$0xff]  ;;  %v3683_v29 = vld [vmem:[#allocation2 + $0xf4] sm:$0xff]  ;;  %v3407_v0 = vpack.c.bf16 %v9862_v23, %v9872_v10 }
 0x248   :  { %v7408_v14 = vpop.f32.mrf.mxu1  ;;  %v7344_v58 = vpop.f32.mrf.mxu0  ;;  %7899 = vmatprep.subr.bf16.mxu1 %v8443_v56  ;;  %v3410_v61 = vpack.c.bf16 %v9708_v39, %v9678_v41  ;;  %v8446_v56 = vld [vmem:[%s10903_s2 + $0x508] sm:$0xff]   ;;  %v8450_v41 = vld [vmem:[%s10903_s2 + $0x540] sm:$0xff]  }
 0x249   :  { %v9870_v13 = vadd.f32 %v7407_v8, %v7343_v30  ;;  %v8447_v32 = vld [vmem:[%s10903_s2 + $0x5c8] sm:$0xff]   ;;  %v3700_v8 = vpack.c.bf16 %v3684_v12, %v3683_v29  ;;  %v9900_v29 = vld [vmem:[#allocation2 + $0x101] sm:$0xff] }
 0x24a   :  { %v7409_v35 = vpop.f32.mrf.mxu1  ;;  %v7345_v16 = vpop.f32.mrf.mxu0  ;;  %7836 = vmatpush3.bf16.msra.mxu0 %v8440_v18  ;;  %v8448_v30 = vld [vmem:[%s10903_s2 + $0x588] sm:$0xff]  }
 0x24b   :  { %v7410_v31 = vadd.f32 %v7409_v35, %v7408_v14  ;;  %v7346_v26 = vadd.f32 %v7345_v16, %v7344_v58  ;;  %7837 = vmatprep.subr.bf16.mxu0 %v8444_v17  ;;  %7900 = vmatpush3.bf16.msra.mxu1 %v8445_v43  ;;  %v8449_v14 = vld [vmem:[%s10903_s2 + $0x5c0] sm:$0xff]  }
 0x24c   :  { %v7411_v39 = vpop.f32.mrf.mxu1  ;;  %3893 = vmatmul.mubr.bf16.gmra.mxu1 %v3697_v36  ;;  %v7347_v18 = vpop.f32.mrf.mxu0  ;;  %3603 = vmatmul.mubr.bf16.gmra.mxu0 %v3407_v0  ;;  %v8452_v58 = vld [vmem:[%s10903_s2 + $0x500] sm:$0xff]   ;;  %v8453_v0 = vld [vmem:[%s10903_s2 + $0x678] sm:$0xff]  }
 0x24d   :  { %3900 = vmatprep.mubr.bf16.mxu1 %v3700_v8  ;;  %v9895_v12 = vadd.f32 %v7410_v31, %v7346_v26  ;;  %3610 = vmatprep.mubr.bf16.mxu0 %v3410_v61  ;;  %v8451_v16 = vld [vmem:[%s10903_s2 + $0x580] sm:$0xff]  }
 0x24e   :  { %v7412_v17 = vpop.f32.mrf.mxu1  ;;  %v7348_v43 = vpop.f32.mrf.mxu0  ;;  %7838 = vmatpush3.bf16.msra.mxu0 %v8446_v56  ;;  %7901 = vmatprep.subr.bf16.mxu1 %v8447_v32  ;;  %v3685_v31 = vld [vmem:[#allocation2 + $0x114] sm:$0xff] }
 0x24f   :  { %v7413_v35 = vadd.f32 %v7412_v17, %v7411_v39  ;;  %v7349_v36 = vadd.f32 %v7348_v43, %v7347_v18  ;;  %7902 = vmatpush3.bf16.msra.mxu1 %v8448_v30  ;;  %7839 = vmatprep.subr.bf16.mxu0 %v8450_v41  ;;  %v3377_v8 = vld [vmem:[#allocation2 + $0xf1] sm:$0xff]  ;;  %v3699_v30 = vpack.c.bf16 %v9693_v40, %v9641_v44 }
 0x250   :  { %v7414_v61 = vpop.f32.mrf.mxu1  ;;  %v7350_v56 = vpop.f32.mrf.mxu0  ;;  %7903 = vmatprep.subr.bf16.mxu1 %v8449_v14  ;;  %v3702_v41 = vpack.c.bf16 %v9726_v7, %v3685_v31  ;;  %v3409_v18 = vpack.c.bf16 %v9900_v29, %v3377_v8 }
 0x251   :  { %v9908_v32 = vadd.f32 %v7413_v35, %v7349_v36 }
 0x252   :  { %v7415_v26 = vpop.f32.mrf.mxu1  ;;  %v7351_v39 = vpop.f32.mrf.mxu0  ;;  %7840 = vmatpush3.bf16.msra.mxu0 %v8452_v58  ;;  %v9918_v58 = vld [vmem:[#allocation2 + $0x121] sm:$0xff] }
 0x253   :  { %v7416_v17 = vadd.f32 %v7415_v26, %v7414_v61  ;;  %v7352_v43 = vadd.f32 %v7351_v39, %v7350_v56  ;;  %7904 = vmatpush3.bf16.msra.mxu1 %v8451_v16  ;;  %7953 = vmatprep.subr.bf16.mxu0 %v8453_v0  ;;  %v3688_v56 = vld [vmem:[#allocation2 + $0x144] sm:$0xff]  ;;  %v3701_v0 = vpack.c.bf16 %v9714_v49, %v9686_v59  ;;  %v3687_v26 = vld [vmem:[#allocation2 + $0x134] sm:$0xff] }
 0x254   :  { %v7417_v14 = vpop.f32.mrf.mxu1  ;;  %3901 = vmatmul.mubr.bf16.gmra.mxu1 %v3699_v30  ;;  %v7353_v35 = vpop.f32.mrf.mxu0  ;;  %3611 = vmatmul.mubr.bf16.gmra.mxu0 %v3409_v18  ;;  %v3704_v39 = vpack.c.bf16 %v3688_v56, %v3687_v26  ;;  %v3690_v56 = vld [vmem:[#allocation2 + $0x164] sm:$0xff] }
 0x255   :  { %3908 = vmatprep.mubr.bf16.mxu1 %v3702_v41  ;;  %v9916_v36 = vadd.f32 %v7416_v17, %v7352_v43  ;;  %3618 = vmatprep.mubr.bf16.mxu0 %v3412_v55  ;;  %v3411_v55 = vpack.c.bf16 %v9918_v58, %v9922_v9  ;;  %v3414_v17 = vpack.c.bf16 %v9745_v51, %v9722_v21  ;;  %v9936_v21 = vld [vmem:[#allocation2 + $0x162] sm:$0xff] }
 0x256   :  { %v7418_v44 = vpop.f32.mrf.mxu1  ;;  %v7354_v40 = vpop.f32.mrf.mxu0  ;;  %10913 = vst [vmem:[#allocation12_spill] sm:$0xff] %v9936_v21 }
 0x257   :  { %v7419_v7 = vadd.f32 %v7418_v44, %v7417_v14  ;;  %v7355_v31 = vadd.f32 %v7354_v40, %v7353_v35 }
 0x258   :  { %v7420_v61 = vpop.f32.mrf.mxu1  ;;  %v7356_v8 = vpop.f32.mrf.mxu0 }
 0x259   :  { %v9920_v34 = vadd.f32 %v7419_v7, %v7355_v31  ;;  %v9932_v7 = vld [vmem:[#allocation2 + $0x143] sm:$0xff] }
 0x25a   :  { %v7421_v16 = vpop.f32.mrf.mxu1  ;;  %v7357_v30 = vpop.f32.mrf.mxu0  ;;  %v9934_v31 = vld [vmem:[#allocation2 + $0x141] sm:$0xff]  ;;  %v3703_v26 = vpack.c.bf16 %v9932_v7, %v9704_v11 }
 0x25b   :  { %v7422_v41 = vadd.f32 %v7421_v16, %v7420_v61  ;;  %v7358_v18 = vadd.f32 %v7357_v30, %v7356_v8  ;;  %v9940_v16 = vld [vmem:[#allocation2 + $0x131] sm:$0xff] }
 0x25c   :  { %v7423_v43 = vpop.f32.mrf.mxu1  ;;  %3909 = vmatmul.mubr.bf16.gmra.mxu1 %v3701_v0  ;;  %v7359_v14 = vpop.f32.mrf.mxu0  ;;  %3619 = vmatmul.mubr.bf16.gmra.mxu0 %v3411_v55  ;;  %v3413_v55 = vpack.c.bf16 %v9934_v31, %v9940_v16 }
 0x25d   :  { %3916 = vmatprep.mubr.bf16.mxu1 %v3704_v39  ;;  %v9930_v35 = vadd.f32 %v7422_v41, %v7358_v18  ;;  %3626 = vmatprep.mubr.bf16.mxu0 %v3414_v17  ;;  %v3706_v39 = vpack.c.bf16 %v3690_v56, %v9739_v37  ;;  %v3416_v17 = vpack.c.bf16 %v9936_v21, %v9741_v33  ;;  %v4257_v56 = vld [vmem:[#allocation2 + $0x53] sm:$0xff] }
 0x25e   :  { %v7424_v59 = vpop.f32.mrf.mxu1  ;;  %v7360_v49 = vpop.f32.mrf.mxu0 }
 0x25f   :  { %v7425_v44 = vadd.f32 %v7424_v59, %v7423_v43  ;;  %v7361_v40 = vadd.f32 %v7360_v49, %v7359_v14 }
 0x260   :  { %v7426_v61 = vpop.f32.mrf.mxu1  ;;  %v7362_v8 = vpop.f32.mrf.mxu0 }
 0x261   :  { %v9938_v51 = vadd.f32 %v7425_v44, %v7361_v40 }
 0x262   :  { %v7427_v0 = vpop.f32.mrf.mxu1  ;;  %v7363_v30 = vpop.f32.mrf.mxu0 }
 0x263   :  { %v7428_v41 = vadd.f32 %v7427_v0, %v7426_v61  ;;  %v7364_v18 = vadd.f32 %v7363_v30, %v7362_v8  ;;  %v9953_v61 = vld [vmem:[#allocation2 + $0x161] sm:$0xff]  ;;  %v9957_v0 = vld [vmem:[#allocation2 + $0x151] sm:$0xff]  ;;  %v3705_v30 = vpack.c.bf16 %v9951_v25, %v9724_v4 }
 0x264   :  { %v7429_v43 = vpop.f32.mrf.mxu1  ;;  %3917 = vmatmul.mubr.bf16.gmra.mxu1 %v3703_v26  ;;  %v7365_v14 = vpop.f32.mrf.mxu0  ;;  %3627 = vmatmul.mubr.bf16.gmra.mxu0 %v3413_v55  ;;  %v4256_v55 = vld [vmem:[#allocation2 + $0x43] sm:$0xff] }
 0x265   :  { %3924 = vmatprep.mubr.bf16.mxu1 %v3706_v39  ;;  %v9949_v59 = vadd.f32 %v7428_v41, %v7364_v18  ;;  %3634 = vmatprep.mubr.bf16.mxu0 %v3416_v17  ;;  %v3415_v39 = vpack.c.bf16 %v9953_v61, %v9957_v0  ;;  %v4273_v17 = vpack.c.bf16 %v4257_v56, %v4256_v55  ;;  %v4259_v56 = vld [vmem:[#allocation2 + $0x73] sm:$0xff] }
 0x266   :  { %v7430_v11 = vpop.f32.mrf.mxu1  ;;  %v7366_v49 = vpop.f32.mrf.mxu0 }
 0x267   :  { %v7431_v44 = vadd.f32 %v7430_v11, %v7429_v43  ;;  %v7367_v40 = vadd.f32 %v7366_v49, %v7365_v14  ;;  %v3983_v14 = vpack.c.bf16 %v9789_v1, %v9753_v24  ;;  %v4240_v24 = vld [vmem:[#allocation2 + $0x42] sm:$0xff] }
 0x268   :  { %v7432_v37 = vpop.f32.mrf.mxu1  ;;  %v7368_v8 = vpop.f32.mrf.mxu0  ;;  %v3950_v1 = vld [vmem:[#allocation2 + $0x40] sm:$0xff] }
 0x269   :  { %v9955_v33 = vadd.f32 %v7431_v44, %v7367_v40 }
 0x26a   :  { %v7433_v26 = vpop.f32.mrf.mxu1  ;;  %v7369_v41 = vpop.f32.mrf.mxu0 }
 0x26b   :  { %10914 = vst [vmem:[#allocation13_spill] sm:$0xff] %v9955_v33  ;;  %v7434_v18 = vadd.f32 %v7433_v26, %v7432_v37  ;;  %v7370_v43 = vadd.f32 %v7369_v41, %v7368_v8  ;;  %v3951_v33 = vld [vmem:[#allocation2 + $0x50] sm:$0xff]  ;;  %v4272_v41 = vpack.c.bf16 %v4241_v52, %v4240_v24  ;;  %v8456_v52 = vld [vmem:[%s10903_s2 + $0x630] sm:$0xff]  }
 0x26c   :  { %v7435_v11 = vpop.f32.mrf.mxu1  ;;  %3925 = vmatmul.mubr.bf16.gmra.mxu1 %v3705_v30  ;;  %v7371_v49 = vpop.f32.mrf.mxu0  ;;  %3635 = vmatmul.mubr.bf16.gmra.mxu0 %v3415_v39  ;;  %v8454_v30 = vld [vmem:[%s10903_s2 + $0x638] sm:$0xff]  }
 0x26d   :  { %4449 = vmatprep.mubr.bf16.mxu1 %v4273_v17  ;;  %v9965_v44 = vadd.f32 %v7434_v18, %v7370_v43  ;;  %4159 = vmatprep.mubr.bf16.mxu0 %v3983_v14  ;;  %v4258_v39 = vld [vmem:[#allocation2 + $0x63] sm:$0xff]  ;;  %v3982_v17 = vpack.c.bf16 %v3951_v33, %v3950_v1  ;;  %v4243_v1 = vld [vmem:[#allocation2 + $0x72] sm:$0xff] }
 0x26e   :  { %v7436_v4 = vpop.f32.mrf.mxu1  ;;  %v7372_v40 = vpop.f32.mrf.mxu0  ;;  %v8455_v43 = vld [vmem:[%s10903_s2 + $0x670] sm:$0xff]  }
 0x26f   :  { %v7437_v50 = vadd.f32 %v7436_v4, %v7435_v11  ;;  %v7373_v21 = vadd.f32 %v7372_v40, %v7371_v49  ;;  %v4275_v11 = vpack.c.bf16 %v4259_v56, %v4258_v39  ;;  %v3985_v4 = vpack.c.bf16 %v9831_v62, %v9782_v2  ;;  %v8457_v56 = vld [vmem:[%s10903_s2 + $0x668] sm:$0xff]   ;;  %v3953_v2 = vld [vmem:[#allocation2 + $0x70] sm:$0xff] }
 0x270   :  { %v7438_v37 = vpop.f32.mrf.mxu1  ;;  %v7374_v8 = vpop.f32.mrf.mxu0 }
 0x271   :  { %v9967_v26 = vadd.f32 %v7437_v50, %v7373_v21 }
 0x272   :  { %v7439_v55 = vpop.f32.mrf.mxu1  ;;  %v7375_v18 = vpop.f32.mrf.mxu0 }
 0x273   :  { %v7440_v14 = vadd.f32 %v7439_v55, %v7438_v37  ;;  %v7376_v49 = vadd.f32 %v7375_v18, %v7374_v8  ;;  %v4261_v55 = vld [vmem:[#allocation2 + $0x93] sm:$0xff]  ;;  %v4242_v18 = vld [vmem:[#allocation2 + $0x62] sm:$0xff] }
 0x274   :  { %v7521_v50 = vpop.f32.mrf.mxu1  ;;  %4450 = vmatmul.mubr.bf16.vlgmr.msra.gmra.mxu1 %v4272_v41  ;;  %v7457_v21 = vpop.f32.mrf.mxu0  ;;  %4160 = vmatmul.mubr.bf16.vlgmr.msra.gmra.mxu0 %v3982_v17  ;;  %v3952_v17 = vld [vmem:[#allocation2 + $0x60] sm:$0xff] }
 0x275   :  { %4457 = vmatprep.mubr.bf16.mxu1 %v4275_v11  ;;  %v9977_v40 = vadd.f32 %v7440_v14, %v7376_v49  ;;  %7954 = vmatpush3.bf16.msra.mxu0 %v8454_v30  ;;  %v4274_v14 = vpack.c.bf16 %v4243_v1, %v4242_v18  ;;  %v3984_v49 = vpack.c.bf16 %v3953_v2, %v3952_v17  ;;  %v4245_v2 = vld [vmem:[#allocation2 + $0x92] sm:$0xff] }
 0x276   :  { %v7522_v33 = vpop.f32.mrf.mxu1  ;;  %4167 = vmatprep.mubr.bf16.mxu0 %v3985_v4  ;;  %v7458_v37 = vpop.f32.mrf.mxu0  ;;  %7955 = vmatprep.subr.bf16.mxu0 %v8455_v43  ;;  %v4277_v4 = vpack.c.bf16 %v4261_v55, %v9814_v42  ;;  %v3973_v18 = vld [vmem:[#allocation2 + $0xb1] sm:$0xff] }
 0x277   :  { %v7523_v8 = vadd.f32 %v7522_v33, %v7521_v50  ;;  %v7459_v24 = vadd.f32 %v7458_v37, %v7457_v21  ;;  %v8458_v50 = vld [vmem:[%s10903_s2 + $0x628] sm:$0xff]  }
 0x278   :  { %v7524_v62 = vpop.f32.mrf.mxu1  ;;  %v7460_v41 = vpop.f32.mrf.mxu0 }
 0x279   :  { %v9986_v30 = vadd.f32 %v7523_v8, %v9787_v45  ;;  %v9989_v39 = vadd.f32 %v7459_v24, %v9413_v46  ;;  %7956 = vmatpush3.bf16.msra.mxu0 %v8456_v52  ;;  %v3987_v46 = vpack.c.bf16 %v9872_v10, %v9816_v54  ;;  %v8459_v52 = vld [vmem:[%s10903_s2 + $0x660] sm:$0xff]  }
 0x27a   :  { %v7525_v43 = vpop.f32.mrf.mxu1  ;;  %v7461_v11 = vpop.f32.mrf.mxu0  ;;  %7957 = vmatprep.subr.bf16.mxu0 %v8457_v56  ;;  %v8460_v54 = vld [vmem:[%s10903_s2 + $0x620] sm:$0xff]  }
 0x27b   :  { %v7526_v21 = vadd.f32 %v7525_v43, %v7524_v62  ;;  %v7462_v45 = vadd.f32 %v7461_v11, %v7460_v41  ;;  %v3955_v62 = vld [vmem:[#allocation2 + $0x90] sm:$0xff]  ;;  %v3954_v11 = vld [vmem:[#allocation2 + $0x80] sm:$0xff] }
 0x27c   :  { %v7527_v33 = vpop.f32.mrf.mxu1  ;;  %4458 = vmatmul.mubr.bf16.gmra.mxu1 %v4274_v14  ;;  %v7463_v37 = vpop.f32.mrf.mxu0  ;;  %4168 = vmatmul.mubr.bf16.gmra.mxu0 %v3984_v49  ;;  %v4244_v14 = vld [vmem:[#allocation2 + $0x82] sm:$0xff] }
 0x27d   :  { %v10001_v56 = vadd.f32 %v7526_v21, %v9812_v57  ;;  %4465 = vmatprep.mubr.bf16.mxu1 %v4277_v4  ;;  %v10004_v8 = vadd.f32 %v7462_v45, %v9430_v15  ;;  %4175 = vmatprep.mubr.bf16.mxu0 %v3987_v46  ;;  %v8461_v57 = vld [vmem:[%s10903_s2 + $0x658] sm:$0xff]   ;;  %v4263_v15 = vld [vmem:[#allocation2 + $0xb3] sm:$0xff]  ;;  %v3986_v4 = vpack.c.bf16 %v3955_v62, %v3954_v11 }
 0x27e   :  { %v7528_v42 = vpop.f32.mrf.mxu1  ;;  %v7464_v24 = vpop.f32.mrf.mxu0  ;;  %7958 = vmatpush3.bf16.msra.mxu0 %v8458_v50  ;;  %v4276_v50 = vpack.c.bf16 %v4245_v2, %v4244_v14  ;;  %v8462_v45 = vld [vmem:[%s10903_s2 + $0x618] sm:$0xff]   ;;  %v4247_v62 = vld [vmem:[#allocation2 + $0xb2] sm:$0xff]  ;;  %v3956_v14 = vld [vmem:[#allocation2 + $0xa0] sm:$0xff] }
 0x27f   :  { %v7529_v10 = vadd.f32 %v7528_v42, %v7527_v33  ;;  %v7465_v1 = vadd.f32 %v7464_v24, %v7463_v37  ;;  %7959 = vmatprep.subr.bf16.mxu0 %v8459_v52  ;;  %v4279_v52 = vpack.c.bf16 %v4263_v15, %v9857_v6 }
 0x280   :  { %v7530_v55 = vpop.f32.mrf.mxu1  ;;  %v7466_v41 = vpop.f32.mrf.mxu0 }
 0x281   :  { %v10013_v17 = vadd.f32 %v7529_v10, %v9829_v28  ;;  %v10016_v43 = vadd.f32 %v7465_v1, %v9467_v3  ;;  %v3989_v28 = vpack.c.bf16 %v3973_v18, %v9862_v23  ;;  %v8463_v3 = vld [vmem:[%s10903_s2 + $0x650] sm:$0xff]  }
 0x282   :  { %v7531_v49 = vpop.f32.mrf.mxu1  ;;  %v7467_v21 = vpop.f32.mrf.mxu0  ;;  %7960 = vmatpush3.bf16.msra.mxu0 %v8460_v54  ;;  %v8464_v23 = vld [vmem:[%s10903_s2 + $0x610] sm:$0xff]  }
 0x283   :  { %v7532_v46 = vadd.f32 %v7531_v49, %v7530_v55  ;;  %v7468_v33 = vadd.f32 %v7467_v21, %v7466_v41  ;;  %7961 = vmatprep.subr.bf16.mxu0 %v8461_v57  ;;  %v3957_v57 = vld [vmem:[#allocation2 + $0xb0] sm:$0xff]  ;;  %v4278_v49 = vpack.c.bf16 %v4247_v62, %v9827_v27 }
 0x284   :  { %v7533_v37 = vpop.f32.mrf.mxu1  ;;  %4466 = vmatmul.mubr.bf16.gmra.mxu1 %v4276_v50  ;;  %v7469_v42 = vpop.f32.mrf.mxu0  ;;  %4176 = vmatmul.mubr.bf16.gmra.mxu0 %v3986_v4  ;;  %v4264_v50 = vld [vmem:[#allocation2 + $0x103] sm:$0xff]  ;;  %v3988_v4 = vpack.c.bf16 %v3957_v57, %v3956_v14 }
 0x285   :  { %v10027_v24 = vadd.f32 %v7532_v46, %v9855_v60  ;;  %4473 = vmatprep.mubr.bf16.mxu1 %v4279_v52  ;;  %v10030_v54 = vadd.f32 %v7468_v33, %v9479_v22  ;;  %4183 = vmatprep.mubr.bf16.mxu0 %v3989_v28  ;;  %v8465_v60 = vld [vmem:[%s10903_s2 + $0x648] sm:$0xff]   ;;  %v4266_v14 = vld [vmem:[#allocation2 + $0x123] sm:$0xff] }
 0x286   :  { %v7534_v6 = vpop.f32.mrf.mxu1  ;;  %v7470_v10 = vpop.f32.mrf.mxu0  ;;  %7962 = vmatpush3.bf16.msra.mxu0 %v8462_v45  ;;  %v4265_v22 = vld [vmem:[#allocation2 + $0x113] sm:$0xff] }
 0x287   :  { %v7535_v1 = vadd.f32 %v7534_v6, %v7533_v37  ;;  %v7471_v2 = vadd.f32 %v7470_v10, %v7469_v42  ;;  %7963 = vmatprep.subr.bf16.mxu0 %v8463_v3  ;;  %v8466_v45 = vld [vmem:[%s10903_s2 + $0x608] sm:$0xff]   ;;  %v4281_v52 = vpack.c.bf16 %v4265_v22, %v4264_v50 }
 0x288   :  { %v7536_v55 = vpop.f32.mrf.mxu1  ;;  %v7472_v15 = vpop.f32.mrf.mxu0 }
 0x289   :  { %v10039_v41 = vadd.f32 %v7535_v1, %v9870_v13  ;;  %v10042_v18 = vadd.f32 %v7471_v2, %v9494_v47  ;;  %v3991_v13 = vpack.c.bf16 %v9922_v9, %v9900_v29  ;;  %v8467_v47 = vld [vmem:[%s10903_s2 + $0x640] sm:$0xff]  }
 0x28a   :  { %v7537_v11 = vpop.f32.mrf.mxu1  ;;  %v7473_v21 = vpop.f32.mrf.mxu0  ;;  %7964 = vmatpush3.bf16.msra.mxu0 %v8464_v23  ;;  %v8468_v29 = vld [vmem:[%s10903_s2 + $0x600] sm:$0xff]  }
 0x28b   :  { %v7538_v46 = vadd.f32 %v7537_v11, %v7536_v55  ;;  %v7474_v33 = vadd.f32 %v7473_v21, %v7472_v15  ;;  %7965 = vmatprep.subr.bf16.mxu0 %v8465_v60  ;;  %v4249_v23 = vld [vmem:[#allocation2 + $0x112] sm:$0xff]  ;;  %v4248_v60 = vld [vmem:[#allocation2 + $0x102] sm:$0xff] }
 0x28c   :  { %v7539_v27 = vpop.f32.mrf.mxu1  ;;  %4474 = vmatmul.mubr.bf16.gmra.mxu1 %v4278_v49  ;;  %v7475_v28 = vpop.f32.mrf.mxu0  ;;  %4184 = vmatmul.mubr.bf16.gmra.mxu0 %v3988_v4  ;;  %v3959_v1 = vld [vmem:[#allocation2 + $0x110] sm:$0xff]  ;;  %v3958_v55 = vld [vmem:[#allocation2 + $0x100] sm:$0xff]  ;;  %v4280_v15 = vpack.c.bf16 %v4249_v23, %v4248_v60 }
 0x28d   :  { %v10054_v3 = vadd.f32 %v7538_v46, %v9895_v12  ;;  %4481 = vmatprep.mubr.bf16.mxu1 %v4281_v52  ;;  %v10057_v37 = vadd.f32 %v7474_v33, %v9500_v5  ;;  %4191 = vmatprep.mubr.bf16.mxu0 %v3991_v13  ;;  %v4267_v12 = vld [vmem:[#allocation2 + $0x133] sm:$0xff]  ;;  %v3990_v49 = vpack.c.bf16 %v3959_v1, %v3958_v55 }
 0x28e   :  { %v7540_v42 = vpop.f32.mrf.mxu1  ;;  %v7476_v6 = vpop.f32.mrf.mxu0  ;;  %7966 = vmatpush3.bf16.msra.mxu0 %v8466_v45  ;;  %v4283_v21 = vpack.c.bf16 %v4267_v12, %v4266_v14  ;;  %v3993_v45 = vpack.c.bf16 %v9940_v16, %v9918_v58  ;;  %v4269_v58 = vld [vmem:[#allocation2 + $0x153] sm:$0xff]  ;;  %v3995_v55 = vpack.c.bf16 %v9957_v0, %v9934_v31 }
 0x28f   :  { %v7541_v9 = vadd.f32 %v7540_v42, %v7539_v27  ;;  %v7477_v10 = vadd.f32 %v7476_v6, %v7475_v28  ;;  %7967 = vmatprep.subr.bf16.mxu0 %v8467_v47  ;;  %v4251_v28 = vld [vmem:[#allocation2 + $0x132] sm:$0xff] }
 0x290   :  { %v7542_v2 = vpop.f32.mrf.mxu1  ;;  %v7478_v62 = vpop.f32.mrf.mxu0  ;;  %v3961_v42 = vld [vmem:[#allocation2 + $0x130] sm:$0xff] }
 0x291   :  { %v10063_v57 = vadd.f32 %v7541_v9, %v9908_v32  ;;  %v10066_v5 = vadd.f32 %v7477_v10, %v9519_v19  ;;  %v4250_v9 = vld [vmem:[#allocation2 + $0x122] sm:$0xff]  ;;  %v4271_v31 = vld [vmem:[#allocation2 + $0x173] sm:$0xff] }
 0x292   :  { %v7543_v22 = vpop.f32.mrf.mxu1  ;;  %v7479_v11 = vpop.f32.mrf.mxu0  ;;  %7968 = vmatpush3.bf16.msra.mxu0 %v8468_v29  ;;  %v3960_v10 = vld [vmem:[#allocation2 + $0x120] sm:$0xff]  ;;  %v4282_v23 = vpack.c.bf16 %v4251_v28, %v4250_v9 }
 0x293   :  { %v7544_v50 = vadd.f32 %v7543_v22, %v7542_v2  ;;  %v7480_v4 = vadd.f32 %v7479_v11, %v7478_v62  ;;  %v3992_v2 = vpack.c.bf16 %v3961_v42, %v3960_v10  ;;  %v4285_v62 = vpack.c.bf16 %v4269_v58, %v9932_v7 }
 0x294   :  { %v7545_v46 = vpop.f32.mrf.mxu1  ;;  %4482 = vmatmul.mubr.bf16.gmra.mxu1 %v4280_v15  ;;  %v7481_v32 = vpop.f32.mrf.mxu0  ;;  %4192 = vmatmul.mubr.bf16.gmra.mxu0 %v3990_v49  ;;  %v4287_v42 = vpack.c.bf16 %v4271_v31, %v9951_v25  ;;  %v4255_v25 = vld [vmem:[#allocation2 + $0x172] sm:$0xff] }
 0x295   :  { %v10071_v19 = vadd.f32 %v7544_v50, %v9916_v36  ;;  %4489 = vmatprep.mubr.bf16.mxu1 %v4283_v21  ;;  %v10074_v52 = vadd.f32 %v7480_v4, %v9530_v48  ;;  %4199 = vmatprep.mubr.bf16.mxu0 %v3993_v45  ;;  %v4253_v50 = vld [vmem:[#allocation2 + $0x152] sm:$0xff] }
 0x296   :  { %v7546_v33 = vpop.f32.mrf.mxu1  ;;  %v7482_v13 = vpop.f32.mrf.mxu0  ;;  %v3963_v21 = vld [vmem:[#allocation2 + $0x150] sm:$0xff] }
 0x297   :  { %v7547_v47 = vadd.f32 %v7546_v33, %v7545_v46  ;;  %v7483_v27 = vadd.f32 %v7482_v13, %v7481_v32  ;;  %v3981_v45 = vld [vmem:[#allocation2 + $0x171] sm:$0xff]  ;;  %v4252_v32 = vld [vmem:[#allocation2 + $0x142] sm:$0xff] }
 0x298   :  { %v7548_v6 = vpop.f32.mrf.mxu1  ;;  %v7484_v16 = vpop.f32.mrf.mxu0  ;;  %v4284_v13 = vpack.c.bf16 %v4253_v50, %v4252_v32  ;;  %v3997_v58 = vpack.c.bf16 %v3981_v45, %v9953_v61  ;;  %v4530_v50 = vld [vmem:[#allocation2 + $0x44] sm:$0xff] }
 0x299   :  { %v10077_v29 = vadd.f32 %v7547_v47, %v9920_v34  ;;  %v10080_v36 = vadd.f32 %v7483_v27, %v9673_v20 }
 0x29a   :  { %v7549_v48 = vpop.f32.mrf.mxu1  ;;  %v7485_v1 = vpop.f32.mrf.mxu0 }
 0x29b   :  { %v7550_v12 = vadd.f32 %v7549_v48, %v7548_v6  ;;  %v7486_v60 = vadd.f32 %v7485_v1, %v7484_v16 }
 0x29c   :  { %v7551_v22 = vpop.f32.mrf.mxu1  ;;  %4490 = vmatmul.mubr.bf16.gmra.mxu1 %v4282_v23  ;;  %v7487_v34 = vpop.f32.mrf.mxu0  ;;  %4200 = vmatmul.mubr.bf16.gmra.mxu0 %v3992_v2  ;;  %v3964_v2 = vld [vmem:[#allocation2 + $0x160] sm:$0xff] }
 0x29d   :  { %v10086_v20 = vadd.f32 %v7550_v12, %v9930_v35  ;;  %4497 = vmatprep.mubr.bf16.mxu1 %v4285_v62  ;;  %v10089_v15 = vadd.f32 %v7486_v60, %v9688_v63  ;;  %4207 = vmatprep.mubr.bf16.mxu0 %v3995_v55  ;;  %v3962_v63 = vld [vmem:[#allocation2 + $0x140] sm:$0xff]  ;;  %v3965_v12 = vld [vmem:[#allocation2 + $0x170] sm:$0xff] }
 0x29e   :  { %v7552_v14 = vpop.f32.mrf.mxu1  ;;  %v7488_v11 = vpop.f32.mrf.mxu0  ;;  %v3994_v27 = vpack.c.bf16 %v3963_v21, %v3962_v63  ;;  %v4531_v60 = vld [vmem:[#allocation2 + $0x54] sm:$0xff]  ;;  %v10915_v55 = vld [vmem:[#allocation13_spill] sm:$0xff] }
 0x29f   :  { %v7553_v49 = vadd.f32 %v7552_v14, %v7551_v22  ;;  %v7489_v7 = vadd.f32 %v7488_v11, %v7487_v34  ;;  %v4546_v31 = vpack.c.bf16 %v4531_v60, %v4530_v50  ;;  %v10918_v63 = vld [vmem:[#allocation9_spill] sm:$0xff]  ;;  %v10920_v60 = vld [vmem:[#allocation11_spill] sm:$0xff] }
 0x2a0   :  { %v7554_v4 = vpop.f32.mrf.mxu1  ;;  %v7490_v0 = vpop.f32.mrf.mxu0 }
 0x2a1   :  { %v10092_v46 = vadd.f32 %v7553_v49, %v9938_v51  ;;  %v10095_v35 = vadd.f32 %v7489_v7, %v9706_v38  ;;  %v3996_v7 = vpack.c.bf16 %v3965_v12, %v3964_v2 }
 0x2a2   :  { %v7555_v33 = vpop.f32.mrf.mxu1  ;;  %v7491_v47 = vpop.f32.mrf.mxu0 }
 0x2a3   :  { %v7556_v28 = vadd.f32 %v7555_v33, %v7554_v4  ;;  %v7492_v6 = vadd.f32 %v7491_v47, %v7490_v0 }
 0x2a4   :  { %v7557_v16 = vpop.f32.mrf.mxu1  ;;  %4498 = vmatmul.mubr.bf16.gmra.mxu1 %v4284_v13  ;;  %v7493_v9 = vpop.f32.mrf.mxu0  ;;  %4208 = vmatmul.mubr.bf16.gmra.mxu0 %v3994_v27 }
 0x2a5   :  { %v10100_v51 = vadd.f32 %v7556_v28, %v9949_v59  ;;  %4505 = vmatprep.mubr.bf16.mxu1 %v4287_v42  ;;  %v10103_v38 = vadd.f32 %v7492_v6, %v9720_v53  ;;  %4215 = vmatprep.mubr.bf16.mxu0 %v3997_v58  ;;  %v10916_v59 = vld [vmem:[#allocation8_spill] sm:$0xff]  ;;  %v4533_v58 = vld [vmem:[#allocation2 + $0x74] sm:$0xff] }
 0x2a6   :  { %v7558_v10 = vpop.f32.mrf.mxu1  ;;  %v7494_v48 = vpop.f32.mrf.mxu0  ;;  %v10917_v53 = vld [vmem:[#allocation12_spill] sm:$0xff] }
 0x2a7   :  { %v7559_v23 = vadd.f32 %v7558_v10, %v7557_v16  ;;  %v7495_v1 = vadd.f32 %v7494_v48, %v7493_v9  ;;  %v4286_v11 = vpack.c.bf16 %v4255_v25, %v10917_v53  ;;  %v10919_v9 = vld [vmem:[#allocation10_spill] sm:$0xff] }
 0x2a8   :  { %v7560_v61 = vpop.f32.mrf.mxu1  ;;  %v7496_v62 = vpop.f32.mrf.mxu0 }
 0x2a9   :  { %v10106_v22 = vadd.f32 %v7559_v23, %v10915_v55  ;;  %v10109_v34 = vadd.f32 %v7495_v1, %v10916_v59  ;;  %v4532_v23 = vld [vmem:[#allocation2 + $0x64] sm:$0xff] }
 0x2aa   :  { %v7561_v14 = vpop.f32.mrf.mxu1  ;;  %v7497_v49 = vpop.f32.mrf.mxu0  ;;  %v4547_v2 = vpack.c.bf16 %v4533_v58, %v4532_v23 }
 0x2ab   :  { %v7562_v21 = vadd.f32 %v7561_v14, %v7560_v61  ;;  %v7498_v4 = vadd.f32 %v7497_v49, %v7496_v62 }
 0x2ac   :  { %v7563_v0 = vpop.f32.mrf.mxu1  ;;  %4506 = vmatmul.mubr.bf16.gmra.mxu1 %v4286_v11  ;;  %v7499_v45 = vpop.f32.mrf.mxu0  ;;  %4216 = vmatmul.mubr.bf16.gmra.mxu0 %v3996_v7  ;;  %v4535_v7 = vld [vmem:[#allocation2 + $0x94] sm:$0xff] }
 0x2ad   :  { %v10113_v32 = vadd.f32 %v7562_v21, %v9965_v44  ;;  %v10116_v33 = vadd.f32 %v7498_v4, %v10918_v63  ;;  %4715 = vmatprep.mubr.bf16.mxu0 %v4546_v31 }
 0x2ae   :  { %v7564_v13 = vpop.f32.mrf.mxu1  ;;  %v7500_v47 = vpop.f32.mrf.mxu0 }
 0x2af   :  { %v7565_v27 = vadd.f32 %v7564_v13, %v7563_v0  ;;  %v7501_v28 = vadd.f32 %v7500_v47, %v7499_v45 }
 0x2b0   :  { %v7566_v42 = vpop.f32.mrf.mxu1  ;;  %v7502_v6 = vpop.f32.mrf.mxu0 }
 0x2b1   :  { %v10119_v16 = vadd.f32 %v7565_v27, %v9967_v26  ;;  %v10122_v10 = vadd.f32 %v7501_v28, %v10919_v9 }
 0x2b2   :  { %v7567_v48 = vpop.f32.mrf.mxu1  ;;  %v7503_v44 = vpop.f32.mrf.mxu0 }
 0x2b3   :  { %v7568_v1 = vadd.f32 %v7567_v48, %v7566_v42  ;;  %v7504_v25 = vadd.f32 %v7503_v44, %v7502_v6  ;;  %v4537_v48 = vld [vmem:[#allocation2 + $0xb4] sm:$0xff] }
 0x2b4   :  { %v7649_v12 = vpop.f32.mrf.mxu1  ;;  %v7585_v61 = vpop.f32.mrf.mxu0  ;;  %4716 = vmatmul.mubr.bf16.vlgmr.msra.gmra.mxu0 %v4546_v31  ;;  %v4534_v31 = vld [vmem:[#allocation2 + $0x84] sm:$0xff] }
 0x2b5   :  { %v10125_v62 = vadd.f32 %v7568_v1, %v9977_v40  ;;  %v10128_v55 = vadd.f32 %v7504_v25, %v10920_v60  ;;  %4723 = vmatprep.mubr.bf16.mxu0 %v4547_v2  ;;  %v4548_v63 = vpack.c.bf16 %v4535_v7, %v4534_v31  ;;  %v4536_v25 = vld [vmem:[#allocation2 + $0xa4] sm:$0xff]  ;;  %v4539_v7 = vld [vmem:[#allocation2 + $0x114] sm:$0xff] }
 0x2b6   :  { %v7650_v26 = vpop.f32.mrf.mxu1  ;;  %v7586_v59 = vpop.f32.mrf.mxu0 }
 0x2b7   :  { %v7651_v14 = vadd.f32 %v7650_v26, %v7649_v12  ;;  %v7587_v53 = vadd.f32 %v7586_v59, %v7585_v61  ;;  %v4549_v12 = vpack.c.bf16 %v4537_v48, %v4536_v25  ;;  %v4541_v48 = vld [vmem:[#allocation2 + $0x134] sm:$0xff] }
 0x2b8   :  { %v7652_v11 = vpop.f32.mrf.mxu1  ;;  %v7588_v49 = vpop.f32.mrf.mxu0 }
 0x2b9   :  { %v10131_v50 = vadd.f32 %v7651_v14, %v9986_v30  ;;  %v10134_v21 = vadd.f32 %v7587_v53, %v9989_v39 }
 0x2ba   :  { %v7653_v4 = vpop.f32.mrf.mxu1  ;;  %v7589_v40 = vpop.f32.mrf.mxu0 }
 0x2bb   :  { %v7654_v0 = vadd.f32 %v7653_v4, %v7652_v11  ;;  %v7590_v45 = vadd.f32 %v7589_v40, %v7588_v49 }
 0x2bc   :  { %v7655_v13 = vpop.f32.mrf.mxu1  ;;  %v7591_v47 = vpop.f32.mrf.mxu0  ;;  %4724 = vmatmul.mubr.bf16.gmra.mxu0 %v4547_v2 }
 0x2bd   :  { %v10137_v27 = vadd.f32 %v7654_v0, %v10001_v56  ;;  %v10140_v28 = vadd.f32 %v7590_v45, %v10004_v8  ;;  %4731 = vmatprep.mubr.bf16.mxu0 %v4548_v63  ;;  %v4538_v0 = vld [vmem:[#allocation2 + $0x104] sm:$0xff] }
 0x2be   :  { %v7656_v30 = vpop.f32.mrf.mxu1  ;;  %v7592_v42 = vpop.f32.mrf.mxu0 }
 0x2bf   :  { %v7657_v39 = vadd.f32 %v7656_v30, %v7655_v13  ;;  %v7593_v6 = vadd.f32 %v7592_v42, %v7591_v47 }
 0x2c0   :  { %v7658_v58 = vpop.f32.mrf.mxu1  ;;  %v7594_v9 = vpop.f32.mrf.mxu0 }
 0x2c1   :  { %v10143_v44 = vadd.f32 %v7657_v39, %v10013_v17  ;;  %v10146_v23 = vadd.f32 %v7593_v6, %v10016_v43 }
 0x2c2   :  { %v7659_v1 = vpop.f32.mrf.mxu1  ;;  %v7595_v56 = vpop.f32.mrf.mxu0 }
 0x2c3   :  { %v7660_v2 = vadd.f32 %v7659_v1, %v7658_v58  ;;  %v7596_v8 = vadd.f32 %v7595_v56, %v7594_v9 }
 0x2c4   :  { %v7661_v61 = vpop.f32.mrf.mxu1  ;;  %v7597_v60 = vpop.f32.mrf.mxu0  ;;  %4732 = vmatmul.mubr.bf16.gmra.mxu0 %v4548_v63  ;;  %v4550_v63 = vpack.c.bf16 %v4539_v7, %v4538_v0  ;;  %v4543_v7 = vld [vmem:[#allocation2 + $0x154] sm:$0xff] }
 0x2c5   :  { %v10149_v26 = vadd.f32 %v7660_v2, %v10027_v24  ;;  %v10152_v59 = vadd.f32 %v7596_v8, %v10030_v54  ;;  %4739 = vmatprep.mubr.bf16.mxu0 %v4549_v12  ;;  %v4540_v2 = vld [vmem:[#allocation2 + $0x124] sm:$0xff] }
 0x2c6   :  { %v7662_v17 = vpop.f32.mrf.mxu1  ;;  %v7598_v14 = vpop.f32.mrf.mxu0 }
 0x2c7   :  { %v7663_v43 = vadd.f32 %v7662_v17, %v7661_v61  ;;  %v7599_v53 = vadd.f32 %v7598_v14, %v7597_v60 }
 0x2c8   :  { %v7664_v11 = vpop.f32.mrf.mxu1  ;;  %v7600_v49 = vpop.f32.mrf.mxu0 }
 0x2c9   :  { %v10155_v4 = vadd.f32 %v7663_v43, %v10039_v41  ;;  %v10158_v40 = vadd.f32 %v7599_v53, %v10042_v18 }
 0x2ca   :  { %v7665_v31 = vpop.f32.mrf.mxu1  ;;  %v7601_v24 = vpop.f32.mrf.mxu0 }
 0x2cb   :  { %v7666_v45 = vadd.f32 %v7665_v31, %v7664_v11  ;;  %v7602_v54 = vadd.f32 %v7601_v24, %v7600_v49 }
 0x2cc   :  { %v7667_v13 = vpop.f32.mrf.mxu1  ;;  %v7603_v47 = vpop.f32.mrf.mxu0  ;;  %4740 = vmatmul.mubr.bf16.gmra.mxu0 %v4549_v12  ;;  %v4551_v12 = vpack.c.bf16 %v4541_v48, %v4540_v2  ;;  %v4544_v48 = vld [vmem:[#allocation2 + $0x164] sm:$0xff] }
 0x2cd   :  { %v10161_v30 = vadd.f32 %v7666_v45, %v10054_v3  ;;  %v10164_v42 = vadd.f32 %v7602_v54, %v10057_v37  ;;  %4747 = vmatprep.mubr.bf16.mxu0 %v4550_v63  ;;  %v4542_v45 = vld [vmem:[#allocation2 + $0x144] sm:$0xff] }
 0x2ce   :  { %v7668_v41 = vpop.f32.mrf.mxu1  ;;  %v7604_v39 = vpop.f32.mrf.mxu0 }
 0x2cf   :  { %v7669_v18 = vadd.f32 %v7668_v41, %v7667_v13  ;;  %v7605_v6 = vadd.f32 %v7604_v39, %v7603_v47 }
 0x2d0   :  { %v7670_v58 = vpop.f32.mrf.mxu1  ;;  %v7606_v9 = vpop.f32.mrf.mxu0 }
 0x2d1   :  { %v10167_v1 = vadd.f32 %v7669_v18, %v10063_v57  ;;  %v10170_v56 = vadd.f32 %v7605_v6, %v10066_v5 }
 0x2d2   :  { %v7671_v25 = vpop.f32.mrf.mxu1  ;;  %v7607_v3 = vpop.f32.mrf.mxu0 }
 0x2d3   :  { %v7672_v8 = vadd.f32 %v7671_v25, %v7670_v58  ;;  %v7608_v37 = vadd.f32 %v7607_v3, %v7606_v9  ;;  %v4545_v25 = vld [vmem:[#allocation2 + $0x174] sm:$0xff] }
 0x2d4   :  { %v7673_v61 = vpop.f32.mrf.mxu1  ;;  %v7609_v60 = vpop.f32.mrf.mxu0  ;;  %4748 = vmatmul.mubr.bf16.gmra.mxu0 %v4550_v63  ;;  %v4552_v63 = vpack.c.bf16 %v4543_v7, %v4542_v45 }
 0x2d5   :  { %v10173_v17 = vadd.f32 %v7672_v8, %v10071_v19  ;;  %v10176_v14 = vadd.f32 %v7608_v37, %v10074_v52  ;;  %4755 = vmatprep.mubr.bf16.mxu0 %v4551_v12 }
 0x2d6   :  { %v7674_v57 = vpop.f32.mrf.mxu1  ;;  %v7610_v43 = vpop.f32.mrf.mxu0 }
 0x2d7   :  { %v7675_v5 = vadd.f32 %v7674_v57, %v7673_v61  ;;  %v7611_v53 = vadd.f32 %v7610_v43, %v7609_v60 }
 0x2d8   :  { %v7676_v11 = vpop.f32.mrf.mxu1  ;;  %v7612_v49 = vpop.f32.mrf.mxu0 }
 0x2d9   :  { %v10179_v31 = vadd.f32 %v7675_v5, %v10077_v29  ;;  %v10182_v24 = vadd.f32 %v7611_v53, %v10080_v36 }
 0x2da   :  { %v7677_v0 = vpop.f32.mrf.mxu1  ;;  %v7613_v19 = vpop.f32.mrf.mxu0 }
 0x2db   :  { %v7678_v54 = vadd.f32 %v7677_v0, %v7676_v11  ;;  %v7614_v52 = vadd.f32 %v7613_v19, %v7612_v49 }
 0x2dc   :  { %v7679_v13 = vpop.f32.mrf.mxu1  ;;  %v7615_v47 = vpop.f32.mrf.mxu0  ;;  %4756 = vmatmul.mubr.bf16.gmra.mxu0 %v4551_v12  ;;  %v4553_v12 = vpack.c.bf16 %v4545_v25, %v4544_v48 }
 0x2dd   :  { %v10185_v41 = vadd.f32 %v7678_v54, %v10086_v20  ;;  %v10188_v39 = vadd.f32 %v7614_v52, %v10089_v15  ;;  %4763 = vmatprep.mubr.bf16.mxu0 %v4552_v63 }
 0x2de   :  { %v7680_v29 = vpop.f32.mrf.mxu1  ;;  %v7616_v18 = vpop.f32.mrf.mxu0 }
 0x2df   :  { %v7681_v36 = vadd.f32 %v7680_v29, %v7679_v13  ;;  %v7617_v6 = vadd.f32 %v7616_v18, %v7615_v47 }
 0x2e0   :  { %v7682_v58 = vpop.f32.mrf.mxu1  ;;  %v7618_v9 = vpop.f32.mrf.mxu0 }
 0x2e1   :  { %v10191_v3 = vadd.f32 %v7681_v36, %v10092_v46  ;;  %v10194_v2 = vadd.f32 %v7617_v6, %v10095_v35 }
 0x2e2   :  { %v7683_v20 = vpop.f32.mrf.mxu1  ;;  %v7619_v8 = vpop.f32.mrf.mxu0 }
 0x2e3   :  { %v7684_v37 = vadd.f32 %v7683_v20, %v7682_v58  ;;  %v7620_v15 = vadd.f32 %v7619_v8, %v7618_v9 }
 0x2e4   :  { %v7685_v61 = vpop.f32.mrf.mxu1  ;;  %v7621_v60 = vpop.f32.mrf.mxu0  ;;  %4764 = vmatmul.mubr.bf16.gmra.mxu0 %v4552_v63 }
 0x2e5   :  { %v10197_v57 = vadd.f32 %v7684_v37, %v10100_v51  ;;  %v10200_v43 = vadd.f32 %v7620_v15, %v10103_v38  ;;  %4771 = vmatprep.mubr.bf16.mxu0 %v4553_v12 }
 0x2e6   :  { %v7686_v46 = vpop.f32.mrf.mxu1  ;;  %v7622_v5 = vpop.f32.mrf.mxu0 }
 0x2e7   :  { %v7687_v53 = vadd.f32 %v7686_v46, %v7685_v61  ;;  %v7623_v35 = vadd.f32 %v7622_v5, %v7621_v60 }
 0x2e8   :  { %v7688_v11 = vpop.f32.mrf.mxu1  ;;  %v7624_v49 = vpop.f32.mrf.mxu0 }
 0x2e9   :  { %v10203_v7 = vadd.f32 %v7687_v53, %v10106_v22  ;;  %v10206_v0 = vadd.f32 %v7623_v35, %v10109_v34 }
 0x2ea   :  { %v7689_v19 = vpop.f32.mrf.mxu1  ;;  %v7625_v45 = vpop.f32.mrf.mxu0 }
 0x2eb   :  { %v7690_v51 = vadd.f32 %v7689_v19, %v7688_v11  ;;  %v7626_v54 = vadd.f32 %v7625_v45, %v7624_v49 }
 0x2ec   :  { %v7691_v52 = vpop.f32.mrf.mxu1  ;;  %v7627_v38 = vpop.f32.mrf.mxu0  ;;  %4772 = vmatmul.mubr.bf16.gmra.mxu0 %v4553_v12 }
 0x2ed   :  { %v10209_v63 = vadd.f32 %v7690_v51, %v10113_v32  ;;  %v10212_v13 = vadd.f32 %v7626_v54, %v10116_v33 }
 0x2ee   :  { %v7692_v47 = vpop.f32.mrf.mxu1  ;;  %v7628_v29 = vpop.f32.mrf.mxu0 }
 0x2ef   :  { %v7693_v22 = vadd.f32 %v7692_v47, %v7691_v52  ;;  %v7629_v18 = vadd.f32 %v7628_v29, %v7627_v38 }
 0x2f0   :  { %v7694_v36 = vpop.f32.mrf.mxu1  ;;  %v7630_v34 = vpop.f32.mrf.mxu0 }
 0x2f1   :  { %v10215_v6 = vadd.f32 %v7693_v22, %v10119_v16  ;;  %v10218_v58 = vadd.f32 %v7629_v18, %v10122_v10 }
 0x2f2   :  { %v7695_v9 = vpop.f32.mrf.mxu1  ;;  %v7631_v48 = vpop.f32.mrf.mxu0 }
 0x2f3   :  { %v7696_v25 = vadd.f32 %v7695_v9, %v7694_v36  ;;  %v7632_v32 = vadd.f32 %v7631_v48, %v7630_v34 }
 0x2f4   :  { %v7777_v20 = vpop.f32.mrf.mxu1  ;;  %v7713_v8 = vpop.f32.mrf.mxu0 }
 0x2f5   :  { %v10221_v33 = vadd.f32 %v7696_v25, %v10125_v62  ;;  %v10224_v37 = vadd.f32 %v7632_v32, %v10128_v55 }
 0x2f6   :  { %v7778_v15 = vpop.f32.mrf.mxu1  ;;  %v7714_v12 = vpop.f32.mrf.mxu0 }
 0x2f7   :  { %v7779_v61 = vadd.f32 %v7778_v15, %v7777_v20  ;;  %v7715_v16 = vadd.f32 %v7714_v12, %v7713_v8  ;;  %v8470_v8 = vld [vmem:[%s10905_s4 + $0x38] sm:$0xff]  }
 0x2f8   :  { %v7780_v60 = vpop.f32.mrf.mxu1  ;;  %v7716_v46 = vpop.f32.mrf.mxu0 }
 0x2f9   :  { %v10227_v10 = vadd.f32 %v7779_v61, %v10131_v50  ;;  %v10230_v5 = vadd.f32 %v7715_v16, %v10134_v21 }
 0x2fa   :  { %v7781_v53 = vpop.f32.mrf.mxu1  ;;  %v7717_v35 = vpop.f32.mrf.mxu0 }
 0x2fb   :  { %v7782_v11 = vadd.f32 %v7781_v53, %v7780_v60  ;;  %v7718_v62 = vadd.f32 %v7717_v35, %v7716_v46 }
 0x2fc   :  { %v7783_v49 = vpop.f32.mrf.mxu1  ;;  %v7719_v19 = vpop.f32.mrf.mxu0 }
 0x2fd   :  { %v10233_v55 = vadd.f32 %v7782_v11, %v10137_v27  ;;  %v10236_v45 = vadd.f32 %v7718_v62, %v10140_v28 }
 0x2fe   :  { %v7784_v51 = vpop.f32.mrf.mxu1  ;;  %v7720_v54 = vpop.f32.mrf.mxu0 }
 0x2ff   :  { %v7785_v52 = vadd.f32 %v7784_v51, %v7783_v49  ;;  %v7721_v50 = vadd.f32 %v7720_v54, %v7719_v19  ;;  %v8472_v54 = vld [vmem:[%s10905_s4 + $0x30] sm:$0xff]  }
 0x300   :  { %v7786_v38 = vpop.f32.mrf.mxu1  ;;  %v7722_v47 = vpop.f32.mrf.mxu0 }
 0x301   :  { %v10239_v21 = vadd.f32 %v7785_v52, %v10143_v44  ;;  %v10242_v29 = vadd.f32 %v7721_v50, %v10146_v23  ;;  %v8469_v23 = vld [vmem:[%s10905_s4 + $0x78] sm:$0xff]  }
 0x302   :  { %v7787_v22 = vpop.f32.mrf.mxu1  ;;  %v7723_v18 = vpop.f32.mrf.mxu0  ;;  %8017 = vmatprep.subr.bf16.mxu1 %v8469_v23 }
 0x303   :  { %v7788_v36 = vadd.f32 %v7787_v22, %v7786_v38  ;;  %v7724_v27 = vadd.f32 %v7723_v18, %v7722_v47  ;;  %8018 = vmatpush3.bf16.msra.mxu1 %v8470_v8 }
 0x304   :  { %v7789_v34 = vpop.f32.mrf.mxu1  ;;  %v7725_v9 = vpop.f32.mrf.mxu0 }
 0x305   :  { %v10245_v28 = vadd.f32 %v7788_v36, %v10149_v26  ;;  %v10248_v48 = vadd.f32 %v7724_v27, %v10152_v59 }
 0x306   :  { %v7790_v25 = vpop.f32.mrf.mxu1  ;;  %v7726_v32 = vpop.f32.mrf.mxu0 }
 0x307   :  { %v7791_v20 = vadd.f32 %v7790_v25, %v7789_v34  ;;  %v7727_v44 = vadd.f32 %v7726_v32, %v7725_v9 }
 0x308   :  { %v7792_v15 = vpop.f32.mrf.mxu1  ;;  %v7728_v12 = vpop.f32.mrf.mxu0 }
 0x309   :  { %v10257_v26 = vadd.f32 %v7791_v20, %v10155_v4  ;;  %v10260_v59 = vadd.f32 %v7727_v44, %v10158_v40  ;;  %v8471_v40 = vld [vmem:[%s10905_s4 + $0x70] sm:$0xff]   ;;  %v8474_v44 = vld [vmem:[%s10905_s4 + $0x28] sm:$0xff]  }
 0x30a   :  { %v7793_v61 = vpop.f32.mrf.mxu1  ;;  %v7729_v16 = vpop.f32.mrf.mxu0  ;;  %8019 = vmatprep.subr.bf16.mxu1 %v8471_v40 }
 0x30b   :  { %v7794_v60 = vadd.f32 %v7793_v61, %v7792_v15  ;;  %v7730_v46 = vadd.f32 %v7729_v16, %v7728_v12  ;;  %8020 = vmatpush3.bf16.msra.mxu1 %v8472_v54 }
 0x30c   :  { %v7795_v53 = vpop.f32.mrf.mxu1  ;;  %v7731_v35 = vpop.f32.mrf.mxu0 }
 0x30d   :  { %v10263_v11 = vadd.f32 %v7794_v60, %v10161_v30  ;;  %v10266_v62 = vadd.f32 %v7730_v46, %v10164_v42 }
 0x30e   :  { %v7796_v49 = vpop.f32.mrf.mxu1  ;;  %v7732_v4 = vpop.f32.mrf.mxu0 }
 0x30f   :  { %v7797_v19 = vadd.f32 %v7796_v49, %v7795_v53  ;;  %v7733_v51 = vadd.f32 %v7732_v4, %v7731_v35 }
 0x310   :  { %v7798_v52 = vpop.f32.mrf.mxu1  ;;  %v7734_v50 = vpop.f32.mrf.mxu0 }
 0x311   :  { %v10275_v30 = vadd.f32 %v7797_v19, %v10167_v1  ;;  %v10278_v42 = vadd.f32 %v7733_v51, %v10170_v56  ;;  %v8473_v56 = vld [vmem:[%s10905_s4 + $0x68] sm:$0xff]   ;;  %v8476_v51 = vld [vmem:[%s10905_s4 + $0x20] sm:$0xff]  }
 0x312   :  { %v7799_v38 = vpop.f32.mrf.mxu1  ;;  %v7735_v47 = vpop.f32.mrf.mxu0  ;;  %8021 = vmatprep.subr.bf16.mxu1 %v8473_v56 }
 0x313   :  { %v7800_v22 = vadd.f32 %v7799_v38, %v7798_v52  ;;  %v7736_v18 = vadd.f32 %v7735_v47, %v7734_v50  ;;  %8022 = vmatpush3.bf16.msra.mxu1 %v8474_v44 }
 0x314   :  { %v7801_v36 = vpop.f32.mrf.mxu1  ;;  %v7737_v27 = vpop.f32.mrf.mxu0 }
 0x315   :  { %v10281_v34 = vadd.f32 %v7800_v22, %v10173_v17  ;;  %v10284_v9 = vadd.f32 %v7736_v18, %v10176_v14 }
 0x316   :  { %v7802_v25 = vpop.f32.mrf.mxu1  ;;  %v7738_v1 = vpop.f32.mrf.mxu0 }
 0x317   :  { %v7803_v32 = vadd.f32 %v7802_v25, %v7801_v36  ;;  %v7739_v20 = vadd.f32 %v7738_v1, %v7737_v27 }
 0x318   :  { %v7804_v23 = vpop.f32.mrf.mxu1  ;;  %v7740_v8 = vpop.f32.mrf.mxu0 }
 0x319   :  { %v10293_v17 = vadd.f32 %v7803_v32, %v10179_v31  ;;  %v10296_v14 = vadd.f32 %v7739_v20, %v10182_v24  ;;  %v8475_v24 = vld [vmem:[%s10905_s4 + $0x60] sm:$0xff]  }
 0x31a   :  { %v7805_v15 = vpop.f32.mrf.mxu1  ;;  %v7741_v12 = vpop.f32.mrf.mxu0  ;;  %8023 = vmatprep.subr.bf16.mxu1 %v8475_v24 }
 0x31b   :  { %v7806_v61 = vadd.f32 %v7805_v15, %v7804_v23  ;;  %v7742_v16 = vadd.f32 %v7741_v12, %v7740_v8  ;;  %8024 = vmatpush3.bf16.msra.mxu1 %v8476_v51 }
 0x31c   :  { %v7807_v60 = vpop.f32.mrf.mxu1  ;;  %v7743_v46 = vpop.f32.mrf.mxu0 }
 0x31d   :  { %v10299_v53 = vadd.f32 %v7806_v61, %v10185_v41  ;;  %v10302_v35 = vadd.f32 %v7742_v16, %v10188_v39 }
 0x31e   :  { %v7808_v49 = vpop.f32.mrf.mxu1  ;;  %v7744_v31 = vpop.f32.mrf.mxu0 }
 0x31f   :  { %v7809_v4 = vadd.f32 %v7808_v49, %v7807_v60  ;;  %v7745_v19 = vadd.f32 %v7744_v31, %v7743_v46 }
 0x320   :  { %v7810_v40 = vpop.f32.mrf.mxu1  ;;  %v7746_v54 = vpop.f32.mrf.mxu0 }
 0x321   :  { %v10311_v41 = vadd.f32 %v7809_v4, %v10191_v3  ;;  %v10314_v39 = vadd.f32 %v7745_v19, %v10194_v2 }
 0x322   :  { %v7811_v52 = vpop.f32.mrf.mxu1  ;;  %v7747_v50 = vpop.f32.mrf.mxu0 }
 0x323   :  { %v7812_v38 = vadd.f32 %v7811_v52, %v7810_v40  ;;  %v7748_v47 = vadd.f32 %v7747_v50, %v7746_v54 }
 0x324   :  { %v7813_v22 = vpop.f32.mrf.mxu1  ;;  %v7749_v18 = vpop.f32.mrf.mxu0 }
 0x325   :  { %v10317_v36 = vadd.f32 %v7812_v38, %v10197_v57  ;;  %v10320_v27 = vadd.f32 %v7748_v47, %v10200_v43 }
 0x326   :  { %v7814_v25 = vpop.f32.mrf.mxu1  ;;  %v7750_v3 = vpop.f32.mrf.mxu0 }
 0x327   :  { %v7815_v1 = vadd.f32 %v7814_v25, %v7813_v22  ;;  %v7751_v32 = vadd.f32 %v7750_v3, %v7749_v18  ;;  %v8480_v18 = vld [vmem:[%s10905_s4 + $0x178] sm:$0xff]   ;;  %v8481_v25 = vld [vmem:[%s10905_s4 + $0x10] sm:$0xff]  }
 0x328   :  { %v7816_v2 = vpop.f32.mrf.mxu1  ;;  %v7752_v20 = vpop.f32.mrf.mxu0  ;;  %8061 = vmatprep.subr.bf16.mxu0 %v8480_v18  ;;  %v8493_v18 = vld [vmem:[%s10905_s4] sm:$0xff]  }
 0x329   :  { %v10323_v56 = vadd.f32 %v7815_v1, %v10203_v7  ;;  %v10326_v44 = vadd.f32 %v7751_v32, %v10206_v0  ;;  %v8477_v7 = vld [vmem:[%s10905_s4 + $0x58] sm:$0xff]  }
 0x32a   :  { %v7817_v23 = vpop.f32.mrf.mxu1  ;;  %v7753_v8 = vpop.f32.mrf.mxu0  ;;  %v8478_v0 = vld [vmem:[%s10905_s4 + $0x18] sm:$0xff]   ;;  %8025 = vmatprep.subr.bf16.mxu1 %v8477_v7 }
 0x32b   :  { %v7818_v15 = vadd.f32 %v7817_v23, %v7816_v2  ;;  %v7754_v57 = vadd.f32 %v7753_v8, %v7752_v20  ;;  %8026 = vmatpush3.bf16.msra.mxu1 %v8478_v0 }
 0x32c   :  { %v7819_v12 = vpop.f32.mrf.mxu1  ;;  %v7755_v61 = vpop.f32.mrf.mxu0 }
 0x32d   :  { %v10329_v43 = vadd.f32 %v7818_v15, %v10209_v63  ;;  %v10332_v16 = vadd.f32 %v7754_v57, %v10212_v13 }
 0x32e   :  { %v7820_v60 = vpop.f32.mrf.mxu1  ;;  %v7756_v46 = vpop.f32.mrf.mxu0 }
 0x32f   :  { %v7821_v49 = vadd.f32 %v7820_v60, %v7819_v12  ;;  %v7757_v31 = vadd.f32 %v7756_v46, %v7755_v61  ;;  %v8483_v12 = vld [vmem:[%s10905_s4 + $0x170] sm:$0xff]   ;;  %v8485_v61 = vld [vmem:[%s10905_s4 + $0x48] sm:$0xff]  }
 0x330   :  { %v7822_v4 = vpop.f32.mrf.mxu1  ;;  %v7758_v19 = vpop.f32.mrf.mxu0  ;;  %v8487_v46 = vld [vmem:[%s10905_s4 + $0x8] sm:$0xff]  }
 0x331   :  { %v10341_v63 = vadd.f32 %v7821_v49, %v10215_v6  ;;  %v10344_v13 = vadd.f32 %v7757_v31, %v10218_v58  ;;  %v8479_v58 = vld [vmem:[%s10905_s4 + $0x50] sm:$0xff]   ;;  %v8488_v49 = vld [vmem:[%s10905_s4 + $0x128] sm:$0xff]  }
 0x332   :  { %v7823_v24 = vpop.f32.mrf.mxu1  ;;  %v7759_v51 = vpop.f32.mrf.mxu0  ;;  %8027 = vmatprep.subr.bf16.mxu1 %v8479_v58 }
 0x333   :  { %v7824_v40 = vadd.f32 %v7823_v24, %v7822_v4  ;;  %v7760_v54 = vadd.f32 %v7759_v51, %v7758_v19  ;;  %8028 = vmatpush3.bf16.msra.mxu1 %v8481_v25 }
 0x334   :  { %v10346_v52 = vpop.f32.mrf.mxu1  ;;  %v7841_v50 = vpop.f32.mrf.mxu0  ;;  %8029 = vmatprep.subr.bf16.mxu1 %v8485_v61 }
 0x335   :  { %v10349_v38 = vadd.f32 %v7824_v40, %v10221_v33  ;;  %v10352_v47 = vadd.f32 %v7760_v54, %v10224_v37  ;;  %v8482_v37 = vld [vmem:[%s10905_s4 + $0x138] sm:$0xff]   ;;  %v8489_v54 = vld [vmem:[%s10905_s4 + $0x160] sm:$0xff]  }
 0x336   :  { %v10354_v22 = vpop.f32.mrf.mxu1  ;;  %v7842_v6 = vpop.f32.mrf.mxu0  ;;  %8062 = vmatpush3.bf16.msra.mxu0 %v8482_v37 }
 0x337   :  { %v7843_v33 = vadd.f32 %v7842_v6, %v7841_v50  ;;  %8063 = vmatprep.subr.bf16.mxu0 %v8483_v12  ;;  %8030 = vmatpush3.bf16.msra.mxu1 %v8487_v46  ;;  %v8490_v50 = vld [vmem:[%s10905_s4 + $0x120] sm:$0xff]  }
 0x338   :  { %v7844_v3 = vpop.f32.mrf.mxu0  ;;  %v10371_v32 = vpop.f32.mrf.mxu1  ;;  %v8491_v6 = vld [vmem:[%s10905_s4 + $0x40] sm:$0xff]  }
 0x339   :  { %v10369_v1 = vadd.f32 %v7843_v33, %v10230_v5  ;;  %v8484_v5 = vld [vmem:[%s10905_s4 + $0x130] sm:$0xff]   ;;  %8031 = vmatprep.subr.bf16.mxu1 %v8491_v6  ;;  %v8497_v33 = vld [vmem:[%s10905_s4 + $0xf8] sm:$0xff]  }
 0x33a   :  { %v7845_v2 = vpop.f32.mrf.mxu0  ;;  %v10376_v15 = vpop.f32.mrf.mxu1  ;;  %8064 = vmatpush3.bf16.msra.mxu0 %v8484_v5  ;;  %v8496_v5 = vld [vmem:[%s10905_s4 + $0x110] sm:$0xff]  }
 0x33b   :  { %v7846_v20 = vadd.f32 %v7845_v2, %v7844_v3  ;;  %8032 = vmatpush3.bf16.msra.mxu1 %v8493_v18  ;;  %v8494_v3 = vld [vmem:[%s10905_s4 + $0x118] sm:$0xff]  }
 0x33c   :  { %v7847_v23 = vpop.f32.mrf.mxu0  ;;  %v10399_v31 = vpop.f32.mrf.mxu1  ;;  %8039 = vmatprep.subr.bf16.mxu1 %v8497_v33 }
 0x33d   :  { %v10374_v8 = vadd.f32 %v7846_v20, %v10236_v45  ;;  %v8486_v45 = vld [vmem:[%s10905_s4 + $0x168] sm:$0xff]  }
 0x33e   :  { %v7848_v57 = vpop.f32.mrf.mxu0  ;;  %8065 = vmatprep.subr.bf16.mxu0 %v8486_v45  ;;  %v10404_v40 = vpop.f32.mrf.mxu1  ;;  %v8498_v45 = vld [vmem:[%s10905_s4 + $0x148] sm:$0xff]  }
 0x33f   :  { %v7849_v60 = vadd.f32 %v7848_v57, %v7847_v23  ;;  %8066 = vmatpush3.bf16.msra.mxu0 %v8488_v49  ;;  %v8495_v23 = vld [vmem:[%s10905_s4 + $0x150] sm:$0xff]  }
 0x340   :  { %v7850_v7 = vpop.f32.mrf.mxu0  ;;  %8067 = vmatprep.subr.bf16.mxu0 %v8489_v54  ;;  %v10430_v2 = vpop.f32.mrf.mxu1 }
 0x341   :  { %v10394_v0 = vadd.f32 %v7849_v60, %v10242_v29 }
 0x342   :  { %v7851_v4 = vpop.f32.mrf.mxu0  ;;  %v10441_v61 = vpop.f32.mrf.mxu1 }
 0x343   :  { %v7852_v19 = vadd.f32 %v7851_v4, %v7850_v7  ;;  %8068 = vmatpush3.bf16.msra.mxu0 %v8490_v50 }
 0x344   :  { %v7853_v24 = vpop.f32.mrf.mxu0  ;;  %v10452_v4 = vpop.f32.mrf.mxu1 }
 0x345   :  { %v10402_v51 = vadd.f32 %v7852_v19, %v10248_v48  ;;  %v8492_v48 = vld [vmem:[%s10905_s4 + $0x158] sm:$0xff]  }
 0x346   :  { %v7854_v29 = vpop.f32.mrf.mxu0  ;;  %8069 = vmatprep.subr.bf16.mxu0 %v8492_v48  ;;  %v10463_v6 = vpop.f32.mrf.mxu1  ;;  %v8506_v48 = vld [vmem:[%s10905_s4 + $0x278] sm:$0xff]  }
 0x347   :  { %v7855_v58 = vadd.f32 %v7854_v29, %v7853_v24  ;;  %8070 = vmatpush3.bf16.msra.mxu0 %v8494_v3  ;;  %v8502_v24 = vld [vmem:[%s10905_s4 + $0x140] sm:$0xff]  }
 0x348   :  { %v7856_v25 = vpop.f32.mrf.mxu0  ;;  %8071 = vmatprep.subr.bf16.mxu0 %v8495_v23 }
 0x349   :  { %v10425_v37 = vadd.f32 %v7855_v58, %v10260_v59 }
 0x34a   :  { %v7857_v20 = vpop.f32.mrf.mxu0 }
 0x34b   :  { %v7858_v57 = vadd.f32 %v7857_v20, %v7856_v25  ;;  %8072 = vmatpush3.bf16.msra.mxu0 %v8496_v5 }
 0x34c   :  { %v7859_v12 = vpop.f32.mrf.mxu0  ;;  %8073 = vmatprep.subr.bf16.mxu0 %v8498_v45 }
 0x34d   :  { %v10436_v59 = vadd.f32 %v7858_v57, %v10266_v62  ;;  %v8500_v62 = vld [vmem:[%s10905_s4 + $0x108] sm:$0xff]  }
 0x34e   :  { %v7860_v60 = vpop.f32.mrf.mxu0 }
 0x34f   :  { %v7861_v46 = vadd.f32 %v7860_v60, %v7859_v12  ;;  %8074 = vmatpush3.bf16.msra.mxu0 %v8500_v62 }
 0x350   :  { %v7862_v7 = vpop.f32.mrf.mxu0  ;;  %8075 = vmatprep.subr.bf16.mxu0 %v8502_v24 }
 0x351   :  { %v10447_v49 = vadd.f32 %v7861_v46, %v10278_v42  ;;  %v8504_v42 = vld [vmem:[%s10905_s4 + $0x100] sm:$0xff]  }
 0x352   :  { %v7863_v19 = vpop.f32.mrf.mxu0 }
 0x353   :  { %v7864_v29 = vadd.f32 %v7863_v19, %v7862_v7  ;;  %8076 = vmatpush3.bf16.msra.mxu0 %v8504_v42 }
 0x354   :  { %v7865_v54 = vpop.f32.mrf.mxu0  ;;  %8105 = vmatprep.subr.bf16.mxu0 %v8506_v48 }
 0x355   :  { %v10458_v50 = vadd.f32 %v7864_v29, %v10284_v9  ;;  %v10471_v9 = vpop.f32.mrf.mxu1 }
 0x356   :  { %v7866_v58 = vpop.f32.mrf.mxu0 }
 0x357   :  { %v7867_v18 = vadd.f32 %v7866_v58, %v7865_v54  ;;  %v10476_v12 = vpop.f32.mrf.mxu1 }
 0x358   :  { %v7868_v25 = vpop.f32.mrf.mxu0 }
 0x359   :  { %v10469_v33 = vadd.f32 %v7867_v18, %v10296_v14  ;;  %v10481_v14 = vpop.f32.mrf.mxu1 }
 0x35a   :  { %v7869_v3 = vpop.f32.mrf.mxu0 }
 0x35b   :  { %v7870_v20 = vadd.f32 %v7869_v3, %v7868_v25  ;;  %v10486_v29 = vpop.f32.mrf.mxu1 }
 0x35c   :  { %v7871_v23 = vpop.f32.mrf.mxu0 }
 0x35d   :  { %v10474_v57 = vadd.f32 %v7870_v20, %v10302_v35  ;;  %v10491_v48 = vpop.f32.mrf.mxu1 }
 0x35e   :  { %v7872_v5 = vpop.f32.mrf.mxu0 }
 0x35f   :  { %v7873_v60 = vadd.f32 %v7872_v5, %v7871_v23  ;;  %v10496_v20 = vpop.f32.mrf.mxu1 }
 0x360   :  { %v7874_v45 = vpop.f32.mrf.mxu0 }
 0x361   :  { %v10479_v46 = vadd.f32 %v7873_v60, %v10314_v39 }
 0x362   :  { %v7875_v7 = vpop.f32.mrf.mxu0 }
 0x363   :  { %v7876_v62 = vadd.f32 %v7875_v7, %v7874_v45  ;;  %v10501_v45 = vpop.f32.mrf.mxu1 }
 0x364   :  { %v7877_v19 = vpop.f32.mrf.mxu0 }
 0x365   :  { %v10484_v24 = vadd.f32 %v7876_v62, %v10320_v27 }
 0x366   :  { %v7878_v35 = vpop.f32.mrf.mxu0 }
 0x367   :  { %v7879_v54 = vadd.f32 %v7878_v35, %v7877_v19  ;;  %v7907_v19 = vadd.f32 %v10354_v22, %v10346_v52 }
 0x368   :  { %v7880_v42 = vpop.f32.mrf.mxu0 }
 0x369   :  { %v10489_v58 = vadd.f32 %v7879_v54, %v10326_v44 }
 0x36a   :  { %v7881_v39 = vpop.f32.mrf.mxu0 }
 0x36b   :  { %v7882_v18 = vadd.f32 %v7881_v39, %v7880_v42 }
 0x36c   :  { %v7883_v25 = vpop.f32.mrf.mxu0 }
 0x36d   :  { %v10494_v3 = vadd.f32 %v7882_v18, %v10332_v16  ;;  %v10508_v16 = vpop.f32.mrf.mxu1  ;;  %v4514_v18 = vadd.f32 %v7907_v19, %v10227_v10  ;;  %v7913_v10 = vadd.f32 %v10404_v40, %v10399_v31 }
 0x36e   :  { %v7884_v27 = vpop.f32.mrf.mxu0 }
 0x36f   :  { %v7885_v23 = vadd.f32 %v7884_v27, %v7883_v25  ;;  %v10514_v27 = vpop.f32.mrf.mxu1 }
 0x370   :  { %v7886_v5 = vpop.f32.mrf.mxu0 }
 0x371   :  { %v10499_v60 = vadd.f32 %v7885_v23, %v10344_v13  ;;  %v7910_v13 = vadd.f32 %v10376_v15, %v10371_v32  ;;  %v10525_v15 = vpop.f32.mrf.mxu1 }
 0x372   :  { %v7887_v44 = vpop.f32.mrf.mxu0 }
 0x373   :  { %v7888_v7 = vadd.f32 %v7887_v44, %v7886_v5  ;;  %v4515_v44 = vadd.f32 %v7910_v13, %v10233_v55  ;;  %v10533_v31 = vpop.f32.mrf.mxu1 }
 0x374   :  { %v7969_v62 = vpop.f32.mrf.mxu0 }
 0x375   :  { %v10506_v35 = vadd.f32 %v7888_v7, %v10352_v47  ;;  %v10519_v47 = vld [vmem:[%s10904_s3] ss:$0 sm:$0xff] }
 0x376   :  { %v7970_v54 = vpop.f32.mrf.mxu0 }
 0x377   :  { %v7971_v42 = vadd.f32 %v7970_v54, %v7969_v62 }
 0x378   :  { %v7972_v39 = vpop.f32.mrf.mxu0 }
 0x379   :  { %v4780_v25 = vadd.f32 %v7971_v42, %v10369_v1  ;;  %v4516_v42 = vadd.f32 %v7913_v10, %v10239_v21  ;;  %v7919_v21 = vadd.f32 %v10463_v6, %v10452_v4 }
 0x37a   :  { %v7973_v23 = vpop.f32.mrf.mxu0 }
 0x37b   :  { %v4796_v5 = vadd.f32 %v4780_v25, %v4514_v18  ;;  %v7974_v52 = vadd.f32 %v7973_v23, %v7972_v39  ;;  %v7916_v39 = vadd.f32 %v10441_v61, %v10430_v2  ;;  %v10539_v61 = vpop.f32.mrf.mxu1 }
 0x37c   :  { %v7975_v22 = vpop.f32.mrf.mxu0 }
 0x37d   :  { %v4781_v32 = vadd.f32 %v7974_v52, %v10374_v8  ;;  %v4819_v7 = vadd.f32 %v10519_v47, %v4796_v5  ;;  %v4517_v52 = vadd.f32 %v7916_v39, %v10245_v28  ;;  %v7922_v28 = vadd.f32 %v10476_v12, %v10471_v9  ;;  %v10547_v6 = vpop.f32.mrf.mxu1 }
 0x37e   :  { %v7976_v1 = vpop.f32.mrf.mxu0 }
 0x37f   :  { %v4797_v62 = vadd.f32 %v4781_v32, %v4515_v44  ;;  %v7977_v19 = vadd.f32 %v7976_v1, %v7975_v22  ;;  %v4835_v40 = vmax.f32 %v4819_v7, 0.0  ;;  %v4518_v7 = vadd.f32 %v7919_v21, %v10257_v26  ;;  %v10553_v12 = vpop.f32.mrf.mxu1 }
 0x380   :  { %v7978_v54 = vpop.f32.mrf.mxu0  ;;  %v7925_v26 = vadd.f32 %v10486_v29, %v10481_v14  ;;  %v7928_v14 = vadd.f32 %v10496_v20, %v10491_v48 }
 0x381   :  { %v4820_v55 = vadd.f32 %v10519_v47, %v4797_v62  ;;  %v4782_v18 = vadd.f32 %v7977_v19, %v10394_v0 }
 0x382   :  { %v7979_v8 = vpop.f32.mrf.mxu0 }
 0x383   :  { %v4836_v13 = vmax.f32 %v4820_v55, 0.0  ;;  %v4798_v25 = vadd.f32 %v4782_v18, %v4516_v42  ;;  %v7980_v23 = vadd.f32 %v7979_v8, %v7978_v54  ;;  %v4519_v18 = vadd.f32 %v7922_v28, %v10263_v11 }
 0x384   :  { %v7981_v5 = vpop.f32.mrf.mxu0  ;;  %v4520_v11 = vadd.f32 %v7925_v26, %v10275_v30  ;;  %v7931_v30 = vadd.f32 %v10508_v16, %v10501_v45 }
 0x385   :  { %v4851_v22 = vmax.f32 %v4835_v40, %v4836_v13  ;;  %v4783_v2 = vadd.f32 %v7980_v23, %v10402_v51  ;;  %v4821_v0 = vadd.f32 %v10519_v47, %v4798_v25 }
 0x386   :  { %v7982_v44 = vpop.f32.mrf.mxu0 }
 0x387   :  { %4859 = vst [vmem:[#allocation3] sm:$0xff] %v4851_v22  ;;  %v4799_v10 = vadd.f32 %v4783_v2, %v4517_v52  ;;  %v7983_v32 = vadd.f32 %v7982_v44, %v7981_v5  ;;  %v4837_v19 = vmax.f32 %v4821_v0, 0.0  ;;  %v7941_v22 = vpop.f32.mrf.mxu1 }
 0x388   :  { %v7984_v1 = vpop.f32.mrf.mxu0 }
 0x389   :  { %v4822_v62 = vadd.f32 %v10519_v47, %v4799_v10  ;;  %v4784_v4 = vadd.f32 %v7983_v32, %v10425_v37  ;;  %v7942_v20 = vpop.f32.mrf.mxu1 }
 0x38a   :  { %v7985_v51 = vpop.f32.mrf.mxu0 }
 0x38b   :  { %v4838_v54 = vmax.f32 %v4822_v62, 0.0  ;;  %v4800_v42 = vadd.f32 %v4784_v4, %v4518_v7  ;;  %v7986_v39 = vadd.f32 %v7985_v51, %v7984_v1  ;;  %v4521_v7 = vadd.f32 %v7928_v14, %v10281_v34  ;;  %v7944_v16 = vpop.f32.mrf.mxu1 }
 0x38c   :  { %v7987_v55 = vpop.f32.mrf.mxu0  ;;  %v7934_v34 = vadd.f32 %v10525_v15, %v10514_v27 }
 0x38d   :  { %v4852_v8 = vmax.f32 %v4837_v19, %v4838_v54  ;;  %v4785_v9 = vadd.f32 %v7986_v39, %v10436_v59  ;;  %v4823_v25 = vadd.f32 %v10519_v47, %v4800_v42  ;;  %v7945_v15 = vpop.f32.mrf.mxu1 }
 0x38e   :  { %v7988_v40 = vpop.f32.mrf.mxu0  ;;  %v4867_v37 = vld [vmem:[#allocation3] ss:$2 sm:$0xf]  ;;  %v4883_v13 = vld [vmem:[#allocation3 + $0x1] ss:$2 sm:$0xf] }
 0x38f   :  { %4860 = vst [vmem:[#allocation3 + $0x8] sm:$0xff] %v4852_v8  ;;  %v4801_v23 = vadd.f32 %v4785_v9, %v4519_v18  ;;  %v7989_v5 = vadd.f32 %v7988_v40, %v7987_v55  ;;  %v4898_v52 = vmax.f32 %v4867_v37, %v4883_v13  ;;  %v4839_v44 = vmax.f32 %v4823_v25, 0.0 }
 0x390   :  { %v7990_v21 = vpop.f32.mrf.mxu0  ;;  %v4522_v55 = vadd.f32 %v7931_v30, %v10293_v17  ;;  %v4523_v13 = vadd.f32 %v7934_v34, %v10299_v53  ;;  %v7937_v17 = vadd.f32 %v10539_v61, %v10533_v31  ;;  %v7940_v53 = vadd.f32 %v10553_v12, %v10547_v6  ;;  %v7947_v61 = vpop.f32.mrf.mxu1 }
 0x391   :  { %v4824_v29 = vadd.f32 %v10519_v47, %v4801_v23  ;;  %v4786_v59 = vadd.f32 %v7989_v5, %v10447_v49  ;;  %4906 = vst [vmem:[#allocation4] sm:$0xf] %v4898_v52  ;;  %v7943_v30 = vadd.f32 %v7942_v20, %v7941_v22 }
 0x392   :  { %v7991_v2 = vpop.f32.mrf.mxu0 }
 0x393   :  { %v4840_v0 = vmax.f32 %v4824_v29, 0.0  ;;  %v4802_v10 = vadd.f32 %v4786_v59, %v4520_v11  ;;  %v7992_v32 = vadd.f32 %v7991_v2, %v7990_v21  ;;  %v4524_v59 = vadd.f32 %v7937_v17, %v10311_v41 }
 0x394   :  { %v7993_v1 = vpop.f32.mrf.mxu0 }
 0x395   :  { %v4853_v28 = vmax.f32 %v4839_v44, %v4840_v0  ;;  %v4787_v48 = vadd.f32 %v7992_v32, %v10458_v50  ;;  %v4825_v51 = vadd.f32 %v10519_v47, %v4802_v10 }
 0x396   :  { %v7994_v62 = vpop.f32.mrf.mxu0  ;;  %v4869_v4 = vld [vmem:[#allocation3 + $0x8] ss:$2 sm:$0xf]  ;;  %v4885_v49 = vld [vmem:[#allocation3 + $0x9] ss:$2 sm:$0xf] }
 0x397   :  { %4861 = vst [vmem:[#allocation3 + $0x10] sm:$0xff] %v4853_v28  ;;  %v4803_v19 = vadd.f32 %v4787_v48, %v4521_v7  ;;  %v7995_v54 = vadd.f32 %v7994_v62, %v7993_v1  ;;  %v4899_v42 = vmax.f32 %v4869_v4, %v4885_v49  ;;  %v4841_v26 = vmax.f32 %v4825_v51, 0.0  ;;  %v7948_v48 = vpop.f32.mrf.mxu1 }
 0x398   :  { %v7996_v39 = vpop.f32.mrf.mxu0  ;;  %v4525_v7 = vadd.f32 %v7940_v53, %v10317_v36 }
 0x399   :  { %v4826_v45 = vadd.f32 %v10519_v47, %v4803_v19  ;;  %v4788_v50 = vadd.f32 %v7995_v54, %v10469_v33  ;;  %4907 = vst [vmem:[#allocation4 + $0x4] sm:$0xf] %v4899_v42  ;;  %v4526_v54 = vadd.f32 %v7943_v30, %v10323_v56  ;;  %v7946_v42 = vadd.f32 %v7945_v15, %v7944_v16  ;;  %v4920_v30 = vld [vmem:[#allocation4 + $0x3] sm:$0x1] }
 0x39a   :  { %v7997_v18 = vpop.f32.mrf.mxu0 }
 0x39b   :  { %v4842_v8 = vmax.f32 %v4826_v45, 0.0  ;;  %v4804_v9 = vadd.f32 %v4788_v50, %v4522_v55  ;;  %v7998_v40 = vadd.f32 %v7997_v18, %v7996_v39  ;;  %v4527_v18 = vadd.f32 %v7946_v42, %v10329_v43  ;;  %v8503_v42 = vld [vmem:[%s10905_s4 + $0xb0] sm:$0xff]  }
 0x39c   :  { %v7999_v37 = vpop.f32.mrf.mxu0 }
 0x39d   :  { %v4854_v25 = vmax.f32 %v4841_v26, %v4842_v8  ;;  %v4789_v27 = vadd.f32 %v7998_v40, %v10474_v57  ;;  %v4827_v52 = vadd.f32 %v10519_v47, %v4804_v9  ;;  %v7949_v26 = vadd.f32 %v7948_v48, %v7947_v61 }
 0x39e   :  { %v8000_v23 = vpop.f32.mrf.mxu0  ;;  %v4871_v5 = vld [vmem:[#allocation3 + $0x10] ss:$2 sm:$0xf]  ;;  %v4887_v33 = vld [vmem:[#allocation3 + $0x11] ss:$2 sm:$0xf] }
 0x39f   :  { %4862 = vst [vmem:[#allocation3 + $0x18] sm:$0xff] %v4854_v25  ;;  %v4805_v21 = vadd.f32 %v4789_v27, %v4523_v13  ;;  %v8001_v11 = vadd.f32 %v8000_v23, %v7999_v37  ;;  %v4900_v14 = vmax.f32 %v4871_v5, %v4887_v33  ;;  %v4843_v44 = vmax.f32 %v4827_v52, 0.0 }
 0x3a0   :  { %v8002_v29 = vpop.f32.mrf.mxu0  ;;  %v4528_v15 = vadd.f32 %v7949_v26, %v10341_v63  ;;  %v8507_v26 = vld [vmem:[%s10905_s4 + $0xa8] sm:$0xff]  }
 0x3a1   :  { %v4828_v31 = vadd.f32 %v10519_v47, %v4805_v21  ;;  %v4790_v57 = vadd.f32 %v8001_v11, %v10479_v46  ;;  %4908 = vst [vmem:[#allocation4 + $0x8] sm:$0xf] %v4900_v14 }
 0x3a2   :  { %v8003_v2 = vpop.f32.mrf.mxu0 }
 0x3a3   :  { %v4844_v0 = vmax.f32 %v4828_v31, 0.0  ;;  %v4806_v10 = vadd.f32 %v4790_v57, %v4524_v59  ;;  %v8004_v32 = vadd.f32 %v8003_v2, %v8002_v29 }
 0x3a4   :  { %v8005_v1 = vpop.f32.mrf.mxu0 }
 0x3a5   :  { %v4855_v28 = vmax.f32 %v4843_v44, %v4844_v0  ;;  %v4791_v41 = vadd.f32 %v8004_v32, %v10484_v24  ;;  %v4829_v46 = vadd.f32 %v10519_v47, %v4806_v10  ;;  %v7950_v24 = vpop.f32.mrf.mxu1  ;;  %v4916_v10 = vld [vmem:[#allocation4 + $0x1] sm:$0x1] }
 0x3a6   :  { %v8006_v6 = vpop.f32.mrf.mxu0  ;;  %v4873_v12 = vld [vmem:[#allocation3 + $0x18] ss:$2 sm:$0xf]  ;;  %v4889_v62 = vld [vmem:[#allocation3 + $0x19] ss:$2 sm:$0xf] }
 0x3a7   :  { %4863 = vst [vmem:[#allocation3 + $0x20] sm:$0xff] %v4855_v28  ;;  %v4807_v4 = vadd.f32 %v4791_v41, %v4525_v7  ;;  %v8007_v49 = vadd.f32 %v8006_v6, %v8005_v1  ;;  %v4901_v51 = vmax.f32 %v4873_v12, %v4889_v62  ;;  %v4845_v39 = vmax.f32 %v4829_v46, 0.0  ;;  %v7951_v56 = vpop.f32.mrf.mxu1 }
 0x3a8   :  { %v8008_v19 = vpop.f32.mrf.mxu0  ;;  %v7952_v23 = vadd.f32 %v7951_v56, %v7950_v24  ;;  %v8505_v24 = vld [vmem:[%s10905_s4 + $0xe8] sm:$0xff]   ;;  %v8509_v56 = vld [vmem:[%s10905_s4 + $0xe0] sm:$0xff]  }
 0x3a9   :  { %v4830_v36 = vadd.f32 %v10519_v47, %v4807_v4  ;;  %v4792_v22 = vadd.f32 %v8007_v49, %v10489_v58  ;;  %4909 = vst [vmem:[#allocation4 + $0xc] sm:$0xf] %v4901_v51  ;;  %v8501_v4 = vld [vmem:[%s10905_s4 + $0xf0] sm:$0xff]  }
 0x3aa   :  { %v8009_v20 = vpop.f32.mrf.mxu0  ;;  %v4529_v14 = vadd.f32 %v7952_v23, %v10349_v38 }
 0x3ab   :  { %v4846_v55 = vmax.f32 %v4830_v36, 0.0  ;;  %v4808_v34 = vadd.f32 %v4792_v22, %v4526_v54  ;;  %v8010_v45 = vadd.f32 %v8009_v20, %v8008_v19 }
 0x3ac   :  { %v8011_v50 = vpop.f32.mrf.mxu0 }
 0x3ad   :  { %v4856_v8 = vmax.f32 %v4845_v39, %v4846_v55  ;;  %v4793_v9 = vadd.f32 %v8010_v45, %v10494_v3  ;;  %v4831_v58 = vadd.f32 %v10519_v47, %v4808_v34  ;;  %v4925_v55 = vld [vmem:[#allocation4 + $0x5] sm:$0x1]  ;;  %v4923_v34 = vld [vmem:[#allocation4 + $0x4] sm:$0x1] }
 0x3ae   :  { %v4875_v16 = vld [vmem:[#allocation3 + $0x20] ss:$2 sm:$0xf]  ;;  %v4891_v40 = vld [vmem:[#allocation3 + $0x21] ss:$2 sm:$0xf]  ;;  %v8012_v37 = vpop.f32.mrf.mxu0 }
 0x3af   :  { %4864 = vst [vmem:[#allocation3 + $0x28] sm:$0xff] %v4856_v8  ;;  %v4809_v13 = vadd.f32 %v4793_v9, %v4527_v18  ;;  %v8013_v17 = vadd.f32 %v8012_v37, %v8011_v50  ;;  %v4902_v25 = vmax.f32 %v4875_v16, %v4891_v40  ;;  %v4847_v33 = vmax.f32 %v4831_v58, 0.0  ;;  %v8508_v9 = vld [vmem:[%s10905_s4 + $0x238] sm:$0xff]   ;;  %v8510_v16 = vld [vmem:[%s10905_s4 + $0x270] sm:$0xff]  }
 0x3b0   :  { %v8014_v27 = vpop.f32.mrf.mxu0 }
 0x3b1   :  { %v4832_v43 = vadd.f32 %v10519_v47, %v4809_v13  ;;  %v4794_v5 = vadd.f32 %v8013_v17, %v10499_v60  ;;  %4910 = vst [vmem:[#allocation4 + $0x10] sm:$0xf] %v4902_v25  ;;  %v8511_v13 = vld [vmem:[%s10905_s4 + $0xa0] sm:$0xff]   ;;  %v8512_v17 = vld [vmem:[%s10905_s4 + $0x230] sm:$0xff]  }
 0x3b2   :  { %v8015_v3 = vpop.f32.mrf.mxu0 }
 0x3b3   :  { %v4848_v52 = vmax.f32 %v4832_v43, 0.0  ;;  %v4810_v21 = vadd.f32 %v4794_v5, %v4528_v15  ;;  %v8016_v11 = vadd.f32 %v8015_v3, %v8014_v27  ;;  %v8513_v27 = vld [vmem:[%s10905_s4 + $0xd8] sm:$0xff]   ;;  %v8514_v15 = vld [vmem:[%s10905_s4 + $0x268] sm:$0xff]  }
 0x3b4   :  { %v4934_v43 = vld [vmem:[#allocation4 + $0x9] sm:$0x1] }
 0x3b5   :  { %v4857_v29 = vmax.f32 %v4847_v33, %v4848_v52  ;;  %v4795_v59 = vadd.f32 %v8016_v11, %v10506_v35  ;;  %v4833_v63 = vadd.f32 %v10519_v47, %v4810_v21  ;;  %v4914_v35 = vld [vmem:[#allocation4] sm:$0x1]  ;;  %v8515_v33 = vld [vmem:[%s10905_s4 + $0x98] sm:$0xff]   ;;  %v8516_v52 = vld [vmem:[%s10905_s4 + $0x228] sm:$0xff]  }
 0x3b6   :  { %v4877_v53 = vld [vmem:[#allocation3 + $0x28] ss:$2 sm:$0xf]  ;;  %v4893_v31 = vld [vmem:[#allocation3 + $0x29] ss:$2 sm:$0xf] }
 0x3b7   :  { %4865 = vst [vmem:[#allocation3 + $0x30] sm:$0xff] %v4857_v29  ;;  %v4811_v57 = vadd.f32 %v4795_v59, %v4529_v14  ;;  %v4903_v61 = vmax.f32 %v4877_v53, %v4893_v31  ;;  %v4849_v7 = vmax.f32 %v4833_v63, 0.0  ;;  %v8517_v21 = vld [vmem:[%s10905_s4 + $0xd0] sm:$0xff]   ;;  %v8518_v11 = vld [vmem:[%s10905_s4 + $0x260] sm:$0xff]   ;;  %v8521_v59 = vld [vmem:[%s10905_s4 + $0xc8] sm:$0xff]  }
 0x3b8   :  { %v4917_v60 = vld [vmem:[#allocation4 + $0x11] sm:$0x1]  ;;  %v4915_v2 = vld [vmem:[#allocation4 + $0x10] sm:$0x1]  ;;  %v4921_v44 = vld [vmem:[#allocation4 + $0x13] sm:$0x1] }
 0x3b9   :  { %v4834_v0 = vadd.f32 %v10519_v47, %v4811_v57  ;;  %v4957_v32 = vrot.slane %v4917_v60, 7  ;;  %v4951_v1 = vrot.slane %v4915_v2, 7  ;;  %v4967_v38 = vrot.slane %v4921_v44, 7  ;;  %4911 = vst [vmem:[#allocation4 + $0x14] sm:$0xf] %v4903_v61  ;;  %v8499_v47 = vld [vmem:[%s10905_s4 + $0xb8] sm:$0xff]  }
 0x3ba   :  { %v8519_v14 = vld [vmem:[%s10905_s4 + $0x90] sm:$0xff]   ;;  %v8520_v29 = vld [vmem:[%s10905_s4 + $0x220] sm:$0xff]   ;;  %v8522_v53 = vld [vmem:[%s10905_s4 + $0x258] sm:$0xff]  }
 0x3bb   :  { %v4850_v28 = vmax.f32 %v4834_v0, 0.0  ;;  %v4958_v41 = vsel %vm4952_vm0, %v4957_v32, %v4916_v10  ;;  %v4953_v48 = vsel %vm4952_vm0, %v4951_v1, %v4914_v35  ;;  %v4968_v6 = vsel %vm4952_vm0, %v4967_v38, %v4920_v30  ;;  %v4919_v31 = vld [vmem:[#allocation4 + $0x12] sm:$0x1]  ;;  %v8523_v63 = vld [vmem:[%s10905_s4 + $0x88] sm:$0xff]   ;;  %v8524_v57 = vld [vmem:[%s10905_s4 + $0x218] sm:$0xff]  }
 0x3bc   :  { %v5031_v12 = vpack.c.bf16 %v4958_v41, %v4958_v41  ;;  %v5030_v62 = vpack.c.bf16 %v4953_v48, %v4953_v48  ;;  %v5033_v19 = vpack.c.bf16 %v4968_v6, %v4968_v6  ;;  %v8525_v60 = vld [vmem:[%s10905_s4 + $0xc0] sm:$0xff]   ;;  %v8526_v2 = vld [vmem:[%s10905_s4 + $0x250] sm:$0xff]   ;;  %v4962_v44 = vrot.slane %v4919_v31, 7  ;;  %v8529_v38 = vld [vmem:[%s10905_s4 + $0x1f8] sm:$0xff]  }
 0x3bd   :  { %v4858_v46 = vmax.f32 %v4849_v7, %v4850_v28  ;;  %v8527_v10 = vld [vmem:[%s10905_s4 + $0x80] sm:$0xff]   ;;  %v8528_v32 = vld [vmem:[%s10905_s4 + $0x210] sm:$0xff]   ;;  %v8530_v7 = vld [vmem:[%s10905_s4 + $0x248] sm:$0xff]  }
 0x3be   :  { %v4879_v49 = vld [vmem:[#allocation3 + $0x30] ss:$2 sm:$0xf]  ;;  %v4895_v51 = vld [vmem:[#allocation3 + $0x31] ss:$2 sm:$0xf]  ;;  %6109 = vmatprep.mubr.bf16.mxu1 %v5031_v12 }
 0x3bf   :  { %4866 = vst [vmem:[#allocation3 + $0x38] sm:$0xff] %v4858_v46  ;;  %6110 = vmatmul.mubr.bf16.vlgmr.msra.gmra.mxu1 %v5030_v62  ;;  %v4904_v54 = vmax.f32 %v4879_v49, %v4895_v51  ;;  %v4918_v1 = vld [vmem:[#allocation4 + $0x2] sm:$0x1]  ;;  %v4929_v30 = vld [vmem:[#allocation4 + $0x7] sm:$0x1]  ;;  %v8531_v41 = vld [vmem:[%s10905_s4 + $0x1b8] sm:$0xff]  }
 0x3c0   :  { %8040 = vmatpush3.bf16.msra.mxu1 %v8499_v47  ;;  %6149 = vmatprep.mubr.bf16.mxu1 %v5033_v19  ;;  %v4926_v36 = vld [vmem:[#allocation4 + $0x15] sm:$0x1]  ;;  %v4924_v22 = vld [vmem:[#allocation4 + $0x14] sm:$0x1]  ;;  %v4930_v61 = vld [vmem:[#allocation4 + $0x17] sm:$0x1]  ;;  %v4963_v35 = vsel %vm4952_vm0, %v4962_v44, %v4918_v1 }
 0x3c1   :  { %8041 = vmatprep.subr.bf16.mxu1 %v8501_v4  ;;  %v4977_v20 = vrot.slane %v4926_v36, 7  ;;  %v4972_v39 = vrot.slane %v4924_v22, 7  ;;  %4912 = vst [vmem:[#allocation4 + $0x18] sm:$0xf] %v4904_v54  ;;  %v4987_v0 = vrot.slane %v4930_v61, 7  ;;  %v5032_v6 = vpack.c.bf16 %v4963_v35, %v4963_v35  ;;  %v8532_v12 = vld [vmem:[%s10905_s4 + $0x208] sm:$0xff]  }
 0x3c2   :  { %v8533_v62 = vld [vmem:[%s10905_s4 + $0x1f0] sm:$0xff]   ;;  %v8534_v4 = vld [vmem:[%s10905_s4 + $0x240] sm:$0xff]   ;;  %v4932_v36 = vld [vmem:[#allocation4 + $0x8] sm:$0x1] }
 0x3c3   :  { %v4978_v45 = vsel %vm4952_vm0, %v4977_v20, %v4925_v55  ;;  %v4973_v50 = vsel %vm4952_vm0, %v4972_v39, %v4923_v34  ;;  %v4988_v28 = vsel %vm4952_vm0, %v4987_v0, %v4929_v30  ;;  %v8535_v51 = vld [vmem:[%s10905_s4 + $0x1b0] sm:$0xff]   ;;  %v8536_v54 = vld [vmem:[%s10905_s4 + $0x200] sm:$0xff]   ;;  %v8538_v22 = vld [vmem:[%s10905_s4 + $0x378] sm:$0xff]  }
 0x3c4   :  { %8042 = vmatpush3.bf16.msra.mxu1 %v8503_v42  ;;  %v5035_v18 = vpack.c.bf16 %v4978_v45, %v4978_v45  ;;  %v5034_v8 = vpack.c.bf16 %v4973_v50, %v4973_v50  ;;  %v5037_v46 = vpack.c.bf16 %v4988_v28, %v4988_v28  ;;  %v8537_v42 = vld [vmem:[%s10905_s4 + $0x1e8] sm:$0xff]   ;;  %v4943_v20 = vld [vmem:[#allocation4 + $0xd] sm:$0x1]  ;;  %v8541_v50 = vld [vmem:[%s10905_s4 + $0x1e0] sm:$0xff]  }
 0x3c5   :  { %8043 = vmatprep.subr.bf16.mxu1 %v8505_v24  ;;  %v8539_v39 = vld [vmem:[%s10905_s4 + $0x1a8] sm:$0xff]   ;;  %v8540_v34 = vld [vmem:[%s10905_s4 + $0x338] sm:$0xff]   ;;  %v8566_v1 = vld [vmem:[%s10905_s4 + $0x340] sm:$0xff]  }
 0x3c6   :  { %v4881_v40 = vld [vmem:[#allocation3 + $0x38] ss:$2 sm:$0xf]  ;;  %v4897_v37 = vld [vmem:[#allocation3 + $0x39] ss:$2 sm:$0xf]  ;;  %6189 = vmatprep.mubr.bf16.mxu0 %v5035_v18 }
 0x3c7   :  { %6190 = vmatmul.mubr.bf16.vlgmr.msra.gmra.mxu0 %v5034_v8  ;;  %v4905_v58 = vmax.f32 %v4881_v40, %v4897_v37  ;;  %v8542_v18 = vld [vmem:[%s10905_s4 + $0x370] sm:$0xff]   ;;  %v8543_v8 = vld [vmem:[%s10905_s4 + $0x1a0] sm:$0xff]   ;;  %v8547_v40 = vld [vmem:[%s10905_s4 + $0x198] sm:$0xff]  }
 0x3c8   :  { %8044 = vmatpush3.bf16.msra.mxu1 %v8507_v26  ;;  %8106 = vmatpush3.bf16.msra.mxu0 %v8508_v9  ;;  %v4935_v25 = vld [vmem:[#allocation4 + $0x19] sm:$0x1]  ;;  %v4933_v48 = vld [vmem:[#allocation4 + $0x18] sm:$0x1]  ;;  %v8544_v9 = vld [vmem:[%s10905_s4 + $0x330] sm:$0xff]  }
 0x3c9   :  { %8045 = vmatprep.subr.bf16.mxu1 %v8509_v56  ;;  %8107 = vmatprep.subr.bf16.mxu0 %v8510_v16  ;;  %v4997_v23 = vrot.slane %v4935_v25, 7  ;;  %4913 = vst [vmem:[#allocation4 + $0x1c] sm:$0xf] %v4905_v58  ;;  %v4992_v49 = vrot.slane %v4933_v48, 7  ;;  %v8545_v56 = vld [vmem:[%s10905_s4 + $0x1d8] sm:$0xff]   ;;  %v8546_v16 = vld [vmem:[%s10905_s4 + $0x368] sm:$0xff]  }
 0x3ca   :  { %v8548_v37 = vld [vmem:[%s10905_s4 + $0x328] sm:$0xff]   ;;  %v8549_v58 = vld [vmem:[%s10905_s4 + $0x1d0] sm:$0xff]   ;;  %v8552_v25 = vld [vmem:[%s10905_s4 + $0x320] sm:$0xff]  }
 0x3cb   :  { %v4998_v5 = vsel %vm4952_vm0, %v4997_v23, %v4934_v43  ;;  %v4993_v24 = vsel %vm4952_vm0, %v4992_v49, %v4932_v36  ;;  %v4928_v23 = vld [vmem:[#allocation4 + $0x16] sm:$0x1]  ;;  %v8555_v43 = vld [vmem:[%s10905_s4 + $0x188] sm:$0xff]   ;;  %v4941_v28 = vld [vmem:[#allocation4 + $0xc] sm:$0x1] }
 0x3cc   :  { %8046 = vmatpush3.bf16.msra.mxu1 %v8511_v13  ;;  %8108 = vmatpush3.bf16.msra.mxu0 %v8512_v17  ;;  %v5039_v3 = vpack.c.bf16 %v4998_v5, %v4998_v5  ;;  %v5038_v45 = vpack.c.bf16 %v4993_v24, %v4993_v24  ;;  %v8550_v13 = vld [vmem:[%s10905_s4 + $0x360] sm:$0xff]   ;;  %v8551_v17 = vld [vmem:[%s10905_s4 + $0x190] sm:$0xff]   ;;  %v4939_v5 = vld [vmem:[#allocation4 + $0x1b] sm:$0x1] }
 0x3cd   :  { %8047 = vmatprep.subr.bf16.mxu1 %v8513_v27  ;;  %8109 = vmatprep.subr.bf16.mxu0 %v8514_v15  ;;  %v8553_v27 = vld [vmem:[%s10905_s4 + $0x1c8] sm:$0xff]   ;;  %v8554_v15 = vld [vmem:[%s10905_s4 + $0x358] sm:$0xff]   ;;  %v8568_v35 = vld [vmem:[%s10905_s4 + $0x300] sm:$0xff]  }
 0x3ce   :  { %6269 = vmatprep.mubr.bf16.mxu0 %v5039_v3  ;;  %v8556_v3 = vld [vmem:[%s10905_s4 + $0x318] sm:$0xff]   ;;  %v8564_v0 = vld [vmem:[%s10905_s4 + $0x308] sm:$0xff]   ;;  %v8576_v49 = vld [vmem:[%s10905_s4 + $0x290] sm:$0xff]  }
 0x3cf   :  { %v8569_v30 = vld [vmem:[%s10905_s4 + $0x2e8] sm:$0xff]   ;;  %v8579_v36 = vld [vmem:[%s10905_s4 + $0x2c0] sm:$0xff]  }
 0x3d0   :  { %8048 = vmatpush3.bf16.msra.mxu1 %v8515_v33  ;;  %8110 = vmatpush3.bf16.msra.mxu0 %v8516_v52  ;;  %v4944_v47 = vld [vmem:[#allocation4 + $0x1d] sm:$0x1]  ;;  %v8557_v33 = vld [vmem:[%s10905_s4 + $0x1c0] sm:$0xff]   ;;  %v8558_v52 = vld [vmem:[%s10905_s4 + $0x350] sm:$0xff]  }
 0x3d1   :  { %8049 = vmatprep.subr.bf16.mxu1 %v8517_v21  ;;  %8111 = vmatprep.subr.bf16.mxu0 %v8518_v11  ;;  %v5017_v19 = vrot.slane %v4944_v47, 7  ;;  %v4982_v21 = vrot.slane %v4928_v23, 7  ;;  %v5007_v11 = vrot.slane %v4939_v5, 7  ;;  %v8570_v48 = vld [vmem:[%s10905_s4 + $0x2a8] sm:$0xff]   ;;  %v8573_v47 = vld [vmem:[%s10905_s4 + $0x2d8] sm:$0xff]   ;;  %v8595_v5 = vld [vmem:[%s10905_s4 + $0x3c0] sm:$0xff]  }
 0x3d2   :  { %v4946_v23 = vld [vmem:[#allocation4 + $0x1e] sm:$0x1] }
 0x3d3   :  { %v5018_v55 = vsel %vm4952_vm0, %v5017_v19, %v4943_v20  ;;  %v4937_v19 = vld [vmem:[#allocation4 + $0x1a] sm:$0x1]  ;;  %v8580_v20 = vld [vmem:[%s10905_s4 + $0x280] sm:$0xff]  }
 0x3d4   :  { %8050 = vmatpush3.bf16.msra.mxu1 %v8519_v14  ;;  %8112 = vmatpush3.bf16.msra.mxu0 %v8520_v29  ;;  %v5043_v26 = vpack.c.bf16 %v5018_v55, %v5018_v55  ;;  %v8559_v14 = vld [vmem:[%s10905_s4 + $0x180] sm:$0xff]   ;;  %v8560_v29 = vld [vmem:[%s10905_s4 + $0x310] sm:$0xff]   ;;  %v8581_v55 = vld [vmem:[%s10905_s4 + $0x3f8] sm:$0xff]  }
 0x3d5   :  { %8051 = vmatprep.subr.bf16.mxu1 %v8521_v59  ;;  %8113 = vmatprep.subr.bf16.mxu0 %v8522_v53  ;;  %v4927_v59 = vld [vmem:[#allocation4 + $0x6] sm:$0x1]  ;;  %v8561_v53 = vld [vmem:[%s10905_s4 + $0x2f8] sm:$0xff]  }
 0x3d6   :  { %v4983_v31 = vsel %vm4952_vm0, %v4982_v21, %v4927_v59 }
 0x3d7   :  { %v5036_v44 = vpack.c.bf16 %v4983_v31, %v4983_v31 }
 0x3d8   :  { %8052 = vmatpush3.bf16.msra.mxu1 %v8523_v63  ;;  %8114 = vmatpush3.bf16.msra.mxu0 %v8524_v57  ;;  %v8562_v63 = vld [vmem:[%s10905_s4 + $0x348] sm:$0xff]   ;;  %v4938_v57 = vld [vmem:[#allocation4 + $0xb] sm:$0x1] }
 0x3d9   :  { %8053 = vmatprep.subr.bf16.mxu1 %v8525_v60  ;;  %8115 = vmatprep.subr.bf16.mxu0 %v8526_v2  ;;  %v5008_v61 = vsel %vm4952_vm0, %v5007_v11, %v4938_v57  ;;  %v8563_v60 = vld [vmem:[%s10905_s4 + $0x2b8] sm:$0xff]   ;;  %v4942_v2 = vld [vmem:[#allocation4 + $0x1c] sm:$0x1] }
 0x3dc   :  { %8054 = vmatpush3.bf16.msra.mxu1 %v8527_v10  ;;  %8116 = vmatpush3.bf16.msra.mxu0 %v8528_v32  ;;  %v8565_v10 = vld [vmem:[%s10905_s4 + $0x2f0] sm:$0xff]   ;;  %v5041_v32 = vpack.c.bf16 %v5008_v61, %v5008_v61 }
 0x3dd   :  { %8083 = vmatprep.subr.bf16.mxu1 %v8529_v38  ;;  %8117 = vmatprep.subr.bf16.mxu0 %v8530_v7  ;;  %v5012_v38 = vrot.slane %v4942_v2, 7  ;;  %v8567_v7 = vld [vmem:[%s10905_s4 + $0x2b0] sm:$0xff]  }
 0x3df   :  { %6150 = vmatmul.mubr.bf16.vlgmr.msra.gmra.mxu1 %v5032_v6  ;;  %v8571_v6 = vld [vmem:[%s10905_s4 + $0x2e0] sm:$0xff]  }
 0x3e0   :  { %8084 = vmatpush3.bf16.msra.mxu1 %v8531_v41  ;;  %6229 = vmatprep.mubr.bf16.mxu1 %v5037_v46  ;;  %v5013_v41 = vsel %vm4952_vm0, %v5012_v38, %v4941_v28  ;;  %v8574_v46 = vld [vmem:[%s10905_s4 + $0x298] sm:$0xff]  }
 0x3e1   :  { %8118 = vmatpush3.bf16.msra.mxu0 %v8532_v12  ;;  %8085 = vmatprep.subr.bf16.mxu1 %v8533_v62  ;;  %v5042_v12 = vpack.c.bf16 %v5013_v41, %v5013_v41  ;;  %v8572_v62 = vld [vmem:[%s10905_s4 + $0x2a0] sm:$0xff]  }
 0x3e2   :  { %8119 = vmatprep.subr.bf16.mxu0 %v8534_v4  ;;  %v8575_v4 = vld [vmem:[%s10905_s4 + $0x2d0] sm:$0xff]  }
 0x3e4   :  { %8086 = vmatpush3.bf16.msra.mxu1 %v8535_v51  ;;  %v8577_v51 = vld [vmem:[%s10905_s4 + $0x2c8] sm:$0xff]  }
 0x3e5   :  { %8120 = vmatpush3.bf16.msra.mxu0 %v8536_v54  ;;  %8087 = vmatprep.subr.bf16.mxu1 %v8537_v42  ;;  %v8578_v54 = vld [vmem:[%s10905_s4 + $0x288] sm:$0xff]  }
 0x3e6   :  { %8149 = vmatprep.subr.bf16.mxu0 %v8538_v22  ;;  %v4948_v42 = vld [vmem:[#allocation4 + $0x1f] sm:$0x1]  ;;  %v5002_v22 = vrot.slane %v4937_v19, 7 }
 0x3e7   :  { %v5027_v24 = vrot.slane %v4948_v42, 7 }
 0x3e8   :  { %6270 = vmatmul.mubr.bf16.vlgmr.msra.gmra.mxu0 %v5038_v45  ;;  %8088 = vmatpush3.bf16.msra.mxu1 %v8539_v39  ;;  %v4936_v39 = vld [vmem:[#allocation4 + $0xa] sm:$0x1]  ;;  %v4947_v45 = vld [vmem:[#allocation4 + $0xf] sm:$0x1] }
 0x3e9   :  { %8150 = vmatpush3.bf16.msra.mxu0 %v8540_v34  ;;  %6349 = vmatprep.mubr.bf16.mxu0 %v5043_v26  ;;  %v5003_v34 = vsel %vm4952_vm0, %v5002_v22, %v4936_v39 }
 0x3ea   :  { %8089 = vmatprep.subr.bf16.mxu1 %v8541_v50  ;;  %8151 = vmatprep.subr.bf16.mxu0 %v8542_v18  ;;  %v5028_v50 = vsel %vm4952_vm0, %v5027_v24, %v4947_v45  ;;  %v8582_v18 = vld [vmem:[%s10905_s4 + $0x3b8] sm:$0xff]   ;;  %v5040_v26 = vpack.c.bf16 %v5003_v34, %v5003_v34 }
 0x3ec   :  { %8090 = vmatpush3.bf16.msra.mxu1 %v8543_v8  ;;  %v8583_v8 = vld [vmem:[%s10905_s4 + $0x3f0] sm:$0xff]  }
 0x3ed   :  { %8152 = vmatpush3.bf16.msra.mxu0 %v8544_v9  ;;  %8091 = vmatprep.subr.bf16.mxu1 %v8545_v56  ;;  %v5045_v9 = vpack.c.bf16 %v5028_v50, %v5028_v50  ;;  %v8584_v56 = vld [vmem:[%s10905_s4 + $0x3b0] sm:$0xff]  }
 0x3ee   :  { %8153 = vmatprep.subr.bf16.mxu0 %v8546_v16  ;;  %v8585_v16 = vld [vmem:[%s10905_s4 + $0x3e8] sm:$0xff]  }
 0x3f0   :  { %8092 = vmatpush3.bf16.msra.mxu1 %v8547_v40  ;;  %v8586_v40 = vld [vmem:[%s10905_s4 + $0x3a8] sm:$0xff]  }
 0x3f1   :  { %8154 = vmatpush3.bf16.msra.mxu0 %v8548_v37  ;;  %8093 = vmatprep.subr.bf16.mxu1 %v8549_v58  ;;  %v8587_v37 = vld [vmem:[%s10905_s4 + $0x3e0] sm:$0xff]  }
 0x3f2   :  { %8155 = vmatprep.subr.bf16.mxu0 %v8550_v13  ;;  %v8588_v58 = vld [vmem:[%s10905_s4 + $0x3a0] sm:$0xff]   ;;  %v8589_v13 = vld [vmem:[%s10905_s4 + $0x3d8] sm:$0xff]  }
 0x3f4   :  { %8094 = vmatpush3.bf16.msra.mxu1 %v8551_v17  ;;  %v8590_v17 = vld [vmem:[%s10905_s4 + $0x398] sm:$0xff]  }
 0x3f5   :  { %8156 = vmatpush3.bf16.msra.mxu0 %v8552_v25  ;;  %8095 = vmatprep.subr.bf16.mxu1 %v8553_v27  ;;  %v8591_v25 = vld [vmem:[%s10905_s4 + $0x3d0] sm:$0xff]  }
 0x3f6   :  { %8157 = vmatprep.subr.bf16.mxu0 %v8554_v15  ;;  %v8592_v27 = vld [vmem:[%s10905_s4 + $0x390] sm:$0xff]   ;;  %v8593_v15 = vld [vmem:[%s10905_s4 + $0x3c8] sm:$0xff]  }
 0x3f8   :  { %8096 = vmatpush3.bf16.msra.mxu1 %v8555_v43  ;;  %v8594_v43 = vld [vmem:[%s10905_s4 + $0x388] sm:$0xff]  }
 0x3f9   :  { %8158 = vmatpush3.bf16.msra.mxu0 %v8556_v3  ;;  %8097 = vmatprep.subr.bf16.mxu1 %v8557_v33  ;;  %v5022_v3 = vrot.slane %v4946_v23, 7  ;;  %v8596_v33 = vld [vmem:[%s10905_s4 + $0x380] sm:$0xff]   ;;  %s8620_s4 = smov [#allocation5]  }
 0x3fa   :  { %8159 = vmatprep.subr.bf16.mxu0 %v8558_v52  ;;  %v4945_v52 = vld [vmem:[#allocation4 + $0xe] sm:$0x1] }
 0x3fb   :  { %v5023_v21 = vsel %vm4952_vm0, %v5022_v3, %v4945_v52 }
 0x3fc   :  { %8098 = vmatpush3.bf16.msra.mxu1 %v8559_v14  ;;  %v5044_v11 = vpack.c.bf16 %v5023_v21, %v5023_v21 }
 0x3fd   :  { %8160 = vmatpush3.bf16.msra.mxu0 %v8560_v29  ;;  %8127 = vmatprep.subr.bf16.mxu1 %v8561_v53 }
 0x3fe   :  { %8161 = vmatprep.subr.bf16.mxu0 %v8562_v63 }
 0x3ff   :  { %6230 = vmatmul.mubr.bf16.vlgmr.msra.gmra.mxu1 %v5036_v44  ;;  %v7056_v44 = vld [vmem:[%s10906_s5] ss:$0 sm:$0xff]  ;;  %s6405_s5 = sshll.u32 %s8620_s4, 4  ;;  %s6406_s5 = int_to_ptr.vmem [resolvable:$true] %s6405_s5 }
 0x400   :  { %8128 = vmatpush3.bf16.msra.mxu1 %v8563_v60  ;;  %6309 = vmatprep.mubr.bf16.mxu1 %v5041_v32  ;;  %s8597_s10 = scalar_lea.vmem %s6406_s5, 32  ;;  %p8602_p1 = scmp.lt.s32.totalorder %s6406_s5, %s6406_s5 }
 0x401   :  { %8162 = vmatpush3.bf16.msra.mxu0 %v8564_v0  ;;  %8129 = vmatprep.subr.bf16.mxu1 %v8565_v10  ;;  %p8598_p0 = scmp.ne.s32.totalorder %s6406_s5, %s8597_s10  ;;  %p8603_p2 = scmp.lt.s32.totalorder %s8597_s10, %s8597_s10 }
 0x402   :  { %8163 = vmatprep.subr.bf16.mxu0 %v8566_v1 }
 0x403   :  { %p8604_p3 = por %p8603_p2, %p8602_p1 }
 0x404   :  { %8130 = vmatpush3.bf16.msra.mxu1 %v8567_v7 }
 0x405   :  { %8164 = vmatpush3.bf16.msra.mxu0 %v8568_v35  ;;  %8131 = vmatprep.subr.bf16.mxu1 %v8569_v30  ;;  %p8605_p4 = pnand %p8604_p3, %p8598_p0 }
 0x408   :  { %6350 = vmatmul.mubr.bf16.vlgmr.msra.gmra.mxu0 %v5042_v12  ;;  %8132 = vmatpush3.bf16.msra.mxu1 %v8570_v48 }
 0x409   :  { %8133 = vmatprep.subr.bf16.mxu1 %v8571_v6 }
 0x40c   :  { %8134 = vmatpush3.bf16.msra.mxu1 %v8572_v62 }
 0x40d   :  { %8135 = vmatprep.subr.bf16.mxu1 %v8573_v47 }
 0x410   :  { %8136 = vmatpush3.bf16.msra.mxu1 %v8574_v46 }
 0x411   :  { %8137 = vmatprep.subr.bf16.mxu1 %v8575_v4 }
 0x414   :  { %8138 = vmatpush3.bf16.msra.mxu1 %v8576_v49 }
 0x415   :  { %8139 = vmatprep.subr.bf16.mxu1 %v8577_v51 }
 0x418   :  { %8140 = vmatpush3.bf16.msra.mxu1 %v8578_v54 }
 0x419   :  { %8141 = vmatprep.subr.bf16.mxu1 %v8579_v36 }
 0x41c   :  { %8142 = vmatpush3.bf16.msra.mxu1 %v8580_v20 }
 0x41d   :  { %8171 = vmatprep.subr.bf16.mxu1 %v8581_v55 }
 0x41f   :  { %6310 = vmatmul.mubr.bf16.vlgmr.msra.gmra.mxu1 %v5040_v26 }
 0x420   :  { %8172 = vmatpush3.bf16.msra.mxu1 %v8582_v18  ;;  %6389 = vmatprep.mubr.bf16.mxu1 %v5045_v9 }
 0x421   :  { %8173 = vmatprep.subr.bf16.mxu1 %v8583_v8 }
 0x424   :  { %8174 = vmatpush3.bf16.msra.mxu1 %v8584_v56 }
 0x425   :  { %8175 = vmatprep.subr.bf16.mxu1 %v8585_v16 }
 0x428   :  { %8176 = vmatpush3.bf16.msra.mxu1 %v8586_v40 }
 0x429   :  { %8177 = vmatprep.subr.bf16.mxu1 %v8587_v37 }
 0x42c   :  { %8178 = vmatpush3.bf16.msra.mxu1 %v8588_v58 }
 0x42d   :  { %8179 = vmatprep.subr.bf16.mxu1 %v8589_v13 }
 0x430   :  { %8180 = vmatpush3.bf16.msra.mxu1 %v8590_v17 }
 0x431   :  { %8181 = vmatprep.subr.bf16.mxu1 %v8591_v25 }
 0x434   :  { %8182 = vmatpush3.bf16.msra.mxu1 %v8592_v27 }
 0x435   :  { %8183 = vmatprep.subr.bf16.mxu1 %v8593_v15 }
 0x438   :  { %8184 = vmatpush3.bf16.msra.mxu1 %v8594_v43 }
 0x439   :  { %8185 = vmatprep.subr.bf16.mxu1 %v8595_v5 }
 0x43c   :  { %8186 = vmatpush3.bf16.msra.mxu1 %v8596_v33 }
 0x43f   :  { %6390 = vmatmul.mubr.bf16.vlgmr.msra.gmra.mxu1 %v5044_v11 }
 0x47f   :  { %v8033_v14 = vpop.f32.mrf.mxu1 }
 0x481   :  { %v8034_v29 = vpop.f32.mrf.mxu1 }
 0x482   :  { %v8035_v59 = vadd.f32 %v8034_v29, %v8033_v14 }
 0x483   :  { %v8036_v53 = vpop.f32.mrf.mxu1 }
 0x484   :  { %v6112_v32 = vadd.f32 %v8035_v59, %v7056_v44 }
 0x485   :  { %v8037_v31 = vpop.f32.mrf.mxu1 }
 0x487   :  { %v8077_v63 = vpop.f32.mrf.mxu0 }
 0x489   :  { %v8078_v57 = vpop.f32.mrf.mxu0 }
 0x48a   :  { %v8079_v61 = vadd.f32 %v8078_v57, %v8077_v63 }
 0x48b   :  { %v8080_v60 = vpop.f32.mrf.mxu0 }
 0x48d   :  { %v8081_v2 = vpop.f32.mrf.mxu0 }
 0x49f   :  { %v8055_v0 = vpop.f32.mrf.mxu1 }
 0x4a1   :  { %v8056_v10 = vpop.f32.mrf.mxu1 }
 0x4a2   :  { %v8057_v1 = vadd.f32 %v8056_v10, %v8055_v0 }
 0x4a3   :  { %v8058_v38 = vpop.f32.mrf.mxu1 }
 0x4a4   :  { %v6152_v7 = vadd.f32 %v8057_v1, %v6112_v32 }
 0x4a5   :  { %v8059_v35 = vpop.f32.mrf.mxu1 }
 0x4a6   :  { %v6192_v30 = vadd.f32 %v8079_v61, %v6152_v7 }
 0x4a8   :  { %v8121_v28 = vpop.f32.mrf.mxu0 }
 0x4aa   :  { %v8122_v41 = vpop.f32.mrf.mxu0 }
 0x4ab   :  { %v8123_v48 = vadd.f32 %v8122_v41, %v8121_v28 }
 0x4ac   :  { %v8124_v6 = vpop.f32.mrf.mxu0 }
 0x4ae   :  { %v8125_v12 = vpop.f32.mrf.mxu0 }
 0x4bf   :  { %v8099_v62 = vpop.f32.mrf.mxu1 }
 0x4c1   :  { %v8100_v47 = vpop.f32.mrf.mxu1 }
 0x4c2   :  { %v8101_v46 = vadd.f32 %v8100_v47, %v8099_v62 }
 0x4c3   :  { %v8102_v4 = vpop.f32.mrf.mxu1 }
 0x4c4   :  { %v6232_v49 = vadd.f32 %v8101_v46, %v6192_v30 }
 0x4c5   :  { %v8103_v51 = vpop.f32.mrf.mxu1 }
 0x4c6   :  { %v6272_v19 = vadd.f32 %v8123_v48, %v6232_v49 }
 0x4c8   :  { %v8165_v54 = vpop.f32.mrf.mxu0 }
 0x4ca   :  { %v8166_v42 = vpop.f32.mrf.mxu0 }
 0x4cb   :  { %v8167_v18 = vadd.f32 %v8166_v42, %v8165_v54 }
 0x4cc   :  { %v8168_v36 = vpop.f32.mrf.mxu0 }
 0x4ce   :  { %v8169_v22 = vpop.f32.mrf.mxu0 }
 0x4df   :  { %v8143_v24 = vpop.f32.mrf.mxu1 }
 0x4e1   :  { %v8144_v20 = vpop.f32.mrf.mxu1 }
 0x4e2   :  { %v8145_v34 = vadd.f32 %v8144_v20, %v8143_v24 }
 0x4e3   :  { %v8146_v39 = vpop.f32.mrf.mxu1 }
 0x4e4   :  { %v6312_v45 = vadd.f32 %v8145_v34, %v6272_v19 }
 0x4e5   :  { %v8147_v55 = vpop.f32.mrf.mxu1 }
 0x4e6   :  { %v6352_v8 = vadd.f32 %v8167_v18, %v6312_v45 }
 0x4ff   :  { %v8187_v50 = vpop.f32.mrf.mxu1 }
 0x501   :  { %v8188_v26 = vpop.f32.mrf.mxu1 }
 0x502   :  { %v8189_v9 = vadd.f32 %v8188_v26, %v8187_v50 }
 0x503   :  { %v8190_v56 = vpop.f32.mrf.mxu1 }
 0x504   :  { %v6392_v16 = vadd.f32 %v8189_v9, %v6352_v8 }
 0x505   :  { %v8191_v40 = vpop.f32.mrf.mxu1 }
 0x506   :  { %v6397_v37 = vmax.f32 %v6392_v16, 0.0 }
 0x508   :  { %6398 = vst [vmem:[#allocation5] sm:$0x3] %v6397_v37 }
 0x509   :  { %8608 = shalt.err (!%p8605_p4)
}
 0x50a   :  { %6408 = dma.vmem_to_hbm [thread:$0]  %s6406_s5, 32, %s10907_s6, [#allocation6]  }
 0x50b   :  { %8617 = dma.done.wait [#allocation6], 32  }
 0x50c   :  { %8618 = vsyncadd [#allocation6], 4294967264 }
 0x50d   :  { %6412 = vsyncpa [#allocation6], 1 }

</bundles_post_ra>
